<compile_context>
chip_gen: v7x
topology: tpu7x:2x2x1
jax: 0.10.0
libtpu: 0.0.40
codegen_flags: <defaults>
</compile_context>

<pallas_src>
import functools

import jax
import jax.numpy as jnp
from jax.experimental import pallas as pl
from jax.experimental.pallas import tpu as pltpu

NEG_SLOPE = 0.05   # LeakyReLU negative slope
PRELU_A = 0.25     # PyTorch PReLU default init
# TODO(synk): PReLU is modeled with the scalar default 0.25; a trained checkpoint
#             would need (per-layer, per-channel) learnable alpha parameters.

_VMEM_LIMIT = 32 * 1024 * 1024  # safe on v5e/v6e/v7x scoped VMEM

# 3x3 tap offsets, row-major: k = (oy+1)*3 + (ox+1) matches PyTorch w[:, :, i, j].
_OFFS = tuple((oy, ox) for oy in (-1, 0, 1) for ox in (-1, 0, 1))


def _lane_roll(v, s, n):
    """result[:, f] = v[:, (f + s) % n]  (static shift; 2-piece lane concat)."""
    s = s % n
    if s == 0:
        return v
    return jnp.concatenate([v[:, s:], v[:, :s]], axis=1)


# ----------------------------------------------------------------------------
# Fused IMDModule kernel (one grid step per batch element).
# ----------------------------------------------------------------------------
def _imd_kernel(x_ref, border_ref, w1_ref, b1_ref, w2_ref, b2_ref, w3_ref,
                b3_ref, w4_ref, b4_ref, w5_ref, b5_ref, wa_ref, ba_ref,
                bal_ref, o_ref, *, H, W, C, dC, Cr):
    HW = H * W

    x = x_ref[0]                                         # (C, HW) f32
    border = border_ref[...]                             # (9, HW) f32 {0,1}

    def taps3x3(v):
        # v: (Cin, HW) f32 -> 9 zero-padded shifted taps as bf16 MXU operands.
        taps = []
        for k, (oy, ox) in enumerate(_OFFS):
            t = _lane_roll(v, oy * W + ox, HW)
            if (oy, ox) != (0, 0):
                t = t * border[k:k + 1]                  # zero out-of-image taps
            taps.append(t.astype(jnp.bfloat16))
        return taps

    def conv3x3(v, w_ref_, b_ref_, leaky):
        # v: (Cin, HW) f32; w_ref_: (9, Cout, Cin); b_ref_: (Cout, 1).
        # 9 accumulate matmuls, all lane-dense (N = HW); f32 accumulation.
        taps = taps3x3(v)
        acc = jnp.dot(w_ref_[0].astype(jnp.bfloat16), taps[0],
                      preferred_element_type=jnp.float32)
        for k in range(1, 9):
            acc = acc + jnp.dot(w_ref_[k].astype(jnp.bfloat16), taps[k],
                                preferred_element_type=jnp.float32)
        acc = acc + b_ref_[...]
        if leaky:
            acc = jnp.where(acc >= 0, acc, NEG_SLOPE * acc)
        return acc                                       # (Cout, HW) f32

    # ---- distillation chain (channel splits are cheap sublane slices) ----
    out_c1 = conv3x3(x, w1_ref, b1_ref, True)            # (C, HW)
    d1, r1 = out_c1[:dC], out_c1[dC:]
    out_c2 = conv3x3(r1, w2_ref, b2_ref, True)
    d2, r2 = out_c2[:dC], out_c2[dC:]
    out_c3 = conv3x3(r2, w3_ref, b3_ref, True)
    d3, r3 = out_c3[:dC], out_c3[dC:]
    out_c4 = conv3x3(r3, w4_ref, b4_ref, False)           # (dC, HW), no act

    # c5 (1x1) over cat([d1, d2, d3, out_c4]) as 4 partial matmuls (no concat).
    c5 = jnp.dot(w5_ref[0].astype(jnp.bfloat16), d1.astype(jnp.bfloat16),
                 preferred_element_type=jnp.float32)
    for j, piece in enumerate((d2, d3, out_c4), start=1):
        c5 = c5 + jnp.dot(w5_ref[j].astype(jnp.bfloat16),
                          piece.astype(jnp.bfloat16),
                          preferred_element_type=jnp.float32)
    c5 = c5 + b5_ref[...]                                 # (C, HW) f32

    # ---- NonLocalAttention(x): match1|match2|assembly fused in one matmul ----
    emb = jnp.dot(wa_ref[...].astype(jnp.bfloat16), x.astype(jnp.bfloat16),
                  preferred_element_type=jnp.float32)     # (2*Cr + C, HW)
    emb = emb + ba_ref[...]
    emb = jnp.where(emb >= 0, emb, PRELU_A * emb)         # PReLU (scalar alpha)
    e1, e2, asm = emb[:Cr], emb[Cr:2 * Cr], emb[2 * Cr:]

    # score[q, k] = <e1[:, q], e2[:, k]>, softmax over keys (lane axis).
    # TODO(synk): for large H*W tile the key axis with an online (flash-style)
    #             softmax instead of the full (HW, HW) score; required to stay
    #             inside v7x's 64 MiB VMEM at realistic SR resolutions.
    e1t = jnp.transpose(e1)                               # (HW, Cr) f32
    score = jnp.dot(e1t.astype(jnp.bfloat16), e2.astype(jnp.bfloat16),
                    preferred_element_type=jnp.float32)   # (HW, HW)
    m = jnp.max(score, axis=-1, keepdims=True)
    p = jnp.exp(score - m)
    denom = jnp.sum(p, axis=-1, keepdims=True)
    p = p * pl.reciprocal(denom, approx=True)

    # attn[c, q] = sum_k asm[c, k] * p[q, k]  (lane-dense (C, HW) output).
    attn = jax.lax.dot_general(
        asm.astype(jnp.bfloat16), p.astype(jnp.bfloat16),
        dimension_numbers=(((1,), (1,)), ((), ())),
        preferred_element_type=jnp.float32)               # (C, HW)

    # ---- Balance: w * c5 + (1 - w) * attn (fused epilogue) ----
    wbal = bal_ref[0, 0]
    o_ref[0] = (wbal * c5 + (1.0 - wbal) * attn).astype(o_ref.dtype)


# ----------------------------------------------------------------------------
# Parameters & IMDModule forward
# ----------------------------------------------------------------------------
def init_params(key, in_channels, distillation_rate=0.25, reduction=2):
    dC = int(in_channels * distillation_rate)
    rC = in_channels - dC
    Cr = in_channels // reduction
    ks = jax.random.split(key, 16)

    def wconv(k, cout, cin):   # PyTorch Conv2d layout (Cout, Cin, 3, 3)
        return 0.1 * jax.random.normal(k, (cout, cin, 3, 3), jnp.float32)

    def w1x1(k, cout, cin):    # 1x1 conv as (Cout, Cin)
        return 0.1 * jax.random.normal(k, (cout, cin), jnp.float32)

    def bias(k, cout):
        return 0.01 * jax.random.normal(k, (cout,), jnp.float32)

    return {
        # NOTE: no integer entries in the pytree -> all slicing stays static under jit.
        "c1_w": wconv(ks[0], in_channels, in_channels), "c1_b": bias(ks[1], in_channels),
        "c2_w": wconv(ks[2], in_channels, rC),          "c2_b": bias(ks[3], in_channels),
        "c3_w": wconv(ks[4], in_channels, rC),          "c3_b": bias(ks[5], in_channels),
        "c4_w": wconv(ks[6], dC, rC),                   "c4_b": bias(ks[7], dC),
        "c5_w": w1x1(ks[8], in_channels, 4 * dC),       "c5_b": bias(ks[9], in_channels),
        "m1_w": w1x1(ks[10], Cr, in_channels),          "m1_b": bias(ks[11], Cr),
        "m2_w": w1x1(ks[12], Cr, in_channels),          "m2_b": bias(ks[13], Cr),
        "asm_w": w1x1(ks[14], in_channels, in_channels), "asm_b": bias(ks[15], in_channels),
        "balance_w": jnp.full((1, 1), 0.5, jnp.float32),  # Balance() scalar weight
    }


def imd_module(x_nchw, params):
    B, C, H, W = x_nchw.shape
    HW = H * W
    dC = params["c4_w"].shape[0]          # static (from weight shapes)
    rC = C - dC
    Cr = params["m1_w"].shape[0]
    Na = 2 * Cr + C

    # (Cout, Cin, 3, 3) -> (9, Cout, Cin);  k = i*3 + j matches _OFFS order.
    def conv9(w):
        return jnp.transpose(w, (2, 3, 0, 1)).reshape(9, w.shape[0], w.shape[1])

    w1, w2, w3, w4 = (conv9(params[n]) for n in ("c1_w", "c2_w", "c3_w", "c4_w"))
    # c5 weight (C, 4*dC) -> (4, C, dC) so the kernel indexes per concat piece.
    w5 = jnp.transpose(params["c5_w"].reshape(C, 4, dC), (1, 0, 2))
    wa = jnp.concatenate([params["m1_w"], params["m2_w"], params["asm_w"]], axis=0)

    col = lambda b: b.reshape(-1, 1)
    b1, b2, b3 = col(params["c1_b"]), col(params["c2_b"]), col(params["c3_b"])
    b4, b5 = col(params["c4_b"]), col(params["c5_b"])
    ba = jnp.concatenate(
        [col(params["m1_b"]), col(params["m2_b"]), col(params["asm_b"])], axis=0)

    # Zero-padding border masks for the 9 conv taps (center row is all ones).
    fi = jnp.arange(HW, dtype=jnp.int32)
    xi, yi = fi % W, fi // W
    border = jnp.stack([((yi + oy >= 0) & (yi + oy < H) &
                         (xi + ox >= 0) & (xi + ox < W)) for oy, ox in _OFFS]
                       ).astype(jnp.float32)              # (9, HW)

    x2 = x_nchw.reshape(B, C, HW)                         # free reshape, no transpose

    flops = 2 * B * HW * (9 * C * C + 2 * 9 * rC * C + 9 * rC * dC
                          + 4 * dC * C + Na * C + HW * Cr + HW * C)
    ins = (x2, border, w1, b1, w2, b2, w3, b3, w4, b4, w5, b5, wa, ba)
    bytes_accessed = 4 * (sum(a.size for a in ins) + B * C * HW)

    kern = functools.partial(_imd_kernel, H=H, W=W, C=C, dC=dC, Cr=Cr)
    c2_ = lambda b: (0, 0)
    c3_ = lambda b: (0, 0, 0)
    out = pl.pallas_call(
        kern,
        out_shape=jax.ShapeDtypeStruct((B, C, HW), x_nchw.dtype),
        grid=(B,),
        in_specs=[
            pl.BlockSpec((1, C, HW), lambda b: (b, 0, 0)),
            pl.BlockSpec((9, HW), c2_),
            pl.BlockSpec((9, C, C), c3_),   pl.BlockSpec((C, 1), c2_),
            pl.BlockSpec((9, C, rC), c3_),  pl.BlockSpec((C, 1), c2_),
            pl.BlockSpec((9, C, rC), c3_),  pl.BlockSpec((C, 1), c2_),
            pl.BlockSpec((9, dC, rC), c3_), pl.BlockSpec((dC, 1), c2_),
            pl.BlockSpec((4, C, dC), c3_),  pl.BlockSpec((C, 1), c2_),
            pl.BlockSpec((Na, C), c2_),     pl.BlockSpec((Na, 1), c2_),
            pl.BlockSpec((1, 1), c2_, memory_space=pltpu.MemorySpace.SMEM),
        ],
        out_specs=pl.BlockSpec((1, C, HW), lambda b: (b, 0, 0)),
        compiler_params=pltpu.CompilerParams(
            dimension_semantics=("parallel",),
            vmem_limit_bytes=_VMEM_LIMIT),
        cost_estimate=pl.CostEstimate(flops=flops, transcendentals=B * HW * HW,
                                      bytes_accessed=bytes_accessed),
    )(*ins, params["balance_w"])

    return out.reshape(B, C, H, W)


if __name__ == "__main__":
    key = jax.random.PRNGKey(0)
    kx, kp = jax.random.split(key)

    B, C, H, W = 2, 16, 16, 16  # in_channels=16 -> distilled=4, remaining=12
    x = jax.random.normal(kx, (B, C, H, W), jnp.float32)
    params = init_params(kp, C)

    out = jax.jit(imd_module)(x, params)
    out = jax.block_until_ready(out)
    assert out.shape == (B, C, H, W), out.shape
    assert bool(jnp.all(jnp.isfinite(out)))
    print("KERNEL_OK")
</pallas_src>

<mosaic_0001>
module attributes {stable_mosaic.version = 11 : i64} {
  func.func @_imd_kernel(%arg0: i32, %arg1: memref<1x16x256xf32, #tpu.memory_space<vmem>>, %arg2: memref<9x256xf32, #tpu.memory_space<vmem>>, %arg3: memref<9x16x16xf32, #tpu.memory_space<vmem>>, %arg4: memref<16x1xf32, #tpu.memory_space<vmem>>, %arg5: memref<9x16x12xf32, #tpu.memory_space<vmem>>, %arg6: memref<16x1xf32, #tpu.memory_space<vmem>>, %arg7: memref<9x16x12xf32, #tpu.memory_space<vmem>>, %arg8: memref<16x1xf32, #tpu.memory_space<vmem>>, %arg9: memref<9x4x12xf32, #tpu.memory_space<vmem>>, %arg10: memref<4x1xf32, #tpu.memory_space<vmem>>, %arg11: memref<4x16x4xf32, #tpu.memory_space<vmem>>, %arg12: memref<16x1xf32, #tpu.memory_space<vmem>>, %arg13: memref<32x16xf32, #tpu.memory_space<vmem>>, %arg14: memref<32x1xf32, #tpu.memory_space<vmem>>, %arg15: memref<1x1xf32, #tpu.memory_space<smem>>, %arg16: memref<1x16x256xf32, #tpu.memory_space<vmem>>) attributes {dimension_semantics = [#tpu.dimension_semantics<parallel>], iteration_bounds = array<i64: 2>, scalar_prefetch = 0 : i64, scratch_operands = 0 : i64, tpu.core_type = #tpu.core_type<tc>, window_params = [{transform_indices = @transform_0, window_bounds = array<i64: 1, 16, 256>}, {pipeline_mode = #tpu.pipeline_mode<synchronous>, transform_indices = @transform_1, window_bounds = array<i64: 9, 256>}, {pipeline_mode = #tpu.pipeline_mode<synchronous>, transform_indices = @transform_2, window_bounds = array<i64: 9, 16, 16>}, {pipeline_mode = #tpu.pipeline_mode<synchronous>, transform_indices = @transform_3, window_bounds = array<i64: 16, 1>}, {pipeline_mode = #tpu.pipeline_mode<synchronous>, transform_indices = @transform_4, window_bounds = array<i64: 9, 16, 12>}, {pipeline_mode = #tpu.pipeline_mode<synchronous>, transform_indices = @transform_5, window_bounds = array<i64: 16, 1>}, {pipeline_mode = #tpu.pipeline_mode<synchronous>, transform_indices = @transform_6, window_bounds = array<i64: 9, 16, 12>}, {pipeline_mode = #tpu.pipeline_mode<synchronous>, transform_indices = @transform_7, window_bounds = array<i64: 16, 1>}, {pipeline_mode = #tpu.pipeline_mode<synchronous>, transform_indices = @transform_8, window_bounds = array<i64: 9, 4, 12>}, {pipeline_mode = #tpu.pipeline_mode<synchronous>, transform_indices = @transform_9, window_bounds = array<i64: 4, 1>}, {pipeline_mode = #tpu.pipeline_mode<synchronous>, transform_indices = @transform_10, window_bounds = array<i64: 4, 16, 4>}, {pipeline_mode = #tpu.pipeline_mode<synchronous>, transform_indices = @transform_11, window_bounds = array<i64: 16, 1>}, {pipeline_mode = #tpu.pipeline_mode<synchronous>, transform_indices = @transform_12, window_bounds = array<i64: 32, 16>}, {pipeline_mode = #tpu.pipeline_mode<synchronous>, transform_indices = @transform_13, window_bounds = array<i64: 32, 1>}, {transform_indices = @transform_14, window_bounds = array<i64: 1, 1>}, {transform_indices = @transform_15, window_bounds = array<i64: 1, 16, 256>}]} {
    %c0 = arith.constant 0 : index
    %c0_0 = arith.constant 0 : index
    %c0_1 = arith.constant 0 : index
    %0 = vector.load %arg1[%c0, %c0_0, %c0_1] : memref<1x16x256xf32, #tpu.memory_space<vmem>>, vector<1x16x256xf32>
    %1 = vector.shape_cast %0 : vector<1x16x256xf32> to vector<16x256xf32>
    %c0_2 = arith.constant 0 : index
    %c0_3 = arith.constant 0 : index
    %2 = vector.load %arg2[%c0_2, %c0_3] : memref<9x256xf32, #tpu.memory_space<vmem>>, vector<9x256xf32>
    %3 = vector.extract_strided_slice %1 {offsets = [0, 239], sizes = [16, 17], strides = [1, 1]} : vector<16x256xf32> to vector<16x17xf32>
    %4 = vector.extract_strided_slice %1 {offsets = [0, 0], sizes = [16, 239], strides = [1, 1]} : vector<16x256xf32> to vector<16x239xf32>
    %5 = tpu.concatenate %3, %4 in 1 : vector<16x17xf32>, vector<16x239xf32> -> vector<16x256xf32>
    %6 = vector.extract_strided_slice %2 {offsets = [0, 0], sizes = [1, 256], strides = [1, 1]} : vector<9x256xf32> to vector<1x256xf32>
    %7 = vector.broadcast %6 : vector<1x256xf32> to vector<16x256xf32>
    %8 = arith.mulf %5, %7 : vector<16x256xf32>
    %9 = arith.truncf %8 : vector<16x256xf32> to vector<16x256xbf16>
    %10 = vector.extract_strided_slice %1 {offsets = [0, 240], sizes = [16, 16], strides = [1, 1]} : vector<16x256xf32> to vector<16x16xf32>
    %11 = vector.extract_strided_slice %1 {offsets = [0, 0], sizes = [16, 240], strides = [1, 1]} : vector<16x256xf32> to vector<16x240xf32>
    %12 = tpu.concatenate %10, %11 in 1 : vector<16x16xf32>, vector<16x240xf32> -> vector<16x256xf32>
    %13 = vector.extract_strided_slice %2 {offsets = [1, 0], sizes = [1, 256], strides = [1, 1]} : vector<9x256xf32> to vector<1x256xf32>
    %14 = vector.broadcast %13 : vector<1x256xf32> to vector<16x256xf32>
    %15 = arith.mulf %12, %14 : vector<16x256xf32>
    %16 = arith.truncf %15 : vector<16x256xf32> to vector<16x256xbf16>
    %17 = vector.extract_strided_slice %1 {offsets = [0, 241], sizes = [16, 15], strides = [1, 1]} : vector<16x256xf32> to vector<16x15xf32>
    %18 = vector.extract_strided_slice %1 {offsets = [0, 0], sizes = [16, 241], strides = [1, 1]} : vector<16x256xf32> to vector<16x241xf32>
    %19 = tpu.concatenate %17, %18 in 1 : vector<16x15xf32>, vector<16x241xf32> -> vector<16x256xf32>
    %20 = vector.extract_strided_slice %2 {offsets = [2, 0], sizes = [1, 256], strides = [1, 1]} : vector<9x256xf32> to vector<1x256xf32>
    %21 = vector.broadcast %20 : vector<1x256xf32> to vector<16x256xf32>
    %22 = arith.mulf %19, %21 : vector<16x256xf32>
    %23 = arith.truncf %22 : vector<16x256xf32> to vector<16x256xbf16>
    %24 = vector.extract_strided_slice %1 {offsets = [0, 255], sizes = [16, 1], strides = [1, 1]} : vector<16x256xf32> to vector<16x1xf32>
    %25 = vector.extract_strided_slice %1 {offsets = [0, 0], sizes = [16, 255], strides = [1, 1]} : vector<16x256xf32> to vector<16x255xf32>
    %26 = tpu.concatenate %24, %25 in 1 : vector<16x1xf32>, vector<16x255xf32> -> vector<16x256xf32>
    %27 = vector.extract_strided_slice %2 {offsets = [3, 0], sizes = [1, 256], strides = [1, 1]} : vector<9x256xf32> to vector<1x256xf32>
    %28 = vector.broadcast %27 : vector<1x256xf32> to vector<16x256xf32>
    %29 = arith.mulf %26, %28 : vector<16x256xf32>
    %30 = arith.truncf %29 : vector<16x256xf32> to vector<16x256xbf16>
    %31 = arith.truncf %1 : vector<16x256xf32> to vector<16x256xbf16>
    %32 = vector.extract_strided_slice %1 {offsets = [0, 1], sizes = [16, 255], strides = [1, 1]} : vector<16x256xf32> to vector<16x255xf32>
    %33 = vector.extract_strided_slice %1 {offsets = [0, 0], sizes = [16, 1], strides = [1, 1]} : vector<16x256xf32> to vector<16x1xf32>
    %34 = tpu.concatenate %32, %33 in 1 : vector<16x255xf32>, vector<16x1xf32> -> vector<16x256xf32>
    %35 = vector.extract_strided_slice %2 {offsets = [5, 0], sizes = [1, 256], strides = [1, 1]} : vector<9x256xf32> to vector<1x256xf32>
    %36 = vector.broadcast %35 : vector<1x256xf32> to vector<16x256xf32>
    %37 = arith.mulf %34, %36 : vector<16x256xf32>
    %38 = arith.truncf %37 : vector<16x256xf32> to vector<16x256xbf16>
    %39 = vector.extract_strided_slice %1 {offsets = [0, 15], sizes = [16, 241], strides = [1, 1]} : vector<16x256xf32> to vector<16x241xf32>
    %40 = vector.extract_strided_slice %1 {offsets = [0, 0], sizes = [16, 15], strides = [1, 1]} : vector<16x256xf32> to vector<16x15xf32>
    %41 = tpu.concatenate %39, %40 in 1 : vector<16x241xf32>, vector<16x15xf32> -> vector<16x256xf32>
    %42 = vector.extract_strided_slice %2 {offsets = [6, 0], sizes = [1, 256], strides = [1, 1]} : vector<9x256xf32> to vector<1x256xf32>
    %43 = vector.broadcast %42 : vector<1x256xf32> to vector<16x256xf32>
    %44 = arith.mulf %41, %43 : vector<16x256xf32>
    %45 = arith.truncf %44 : vector<16x256xf32> to vector<16x256xbf16>
    %46 = vector.extract_strided_slice %1 {offsets = [0, 16], sizes = [16, 240], strides = [1, 1]} : vector<16x256xf32> to vector<16x240xf32>
    %47 = vector.extract_strided_slice %1 {offsets = [0, 0], sizes = [16, 16], strides = [1, 1]} : vector<16x256xf32> to vector<16x16xf32>
    %48 = tpu.concatenate %46, %47 in 1 : vector<16x240xf32>, vector<16x16xf32> -> vector<16x256xf32>
    %49 = vector.extract_strided_slice %2 {offsets = [7, 0], sizes = [1, 256], strides = [1, 1]} : vector<9x256xf32> to vector<1x256xf32>
    %50 = vector.broadcast %49 : vector<1x256xf32> to vector<16x256xf32>
    %51 = arith.mulf %48, %50 : vector<16x256xf32>
    %52 = arith.truncf %51 : vector<16x256xf32> to vector<16x256xbf16>
    %53 = vector.extract_strided_slice %1 {offsets = [0, 17], sizes = [16, 239], strides = [1, 1]} : vector<16x256xf32> to vector<16x239xf32>
    %54 = vector.extract_strided_slice %1 {offsets = [0, 0], sizes = [16, 17], strides = [1, 1]} : vector<16x256xf32> to vector<16x17xf32>
    %55 = tpu.concatenate %53, %54 in 1 : vector<16x239xf32>, vector<16x17xf32> -> vector<16x256xf32>
    %56 = vector.extract_strided_slice %2 {offsets = [8, 0], sizes = [1, 256], strides = [1, 1]} : vector<9x256xf32> to vector<1x256xf32>
    %57 = vector.broadcast %56 : vector<1x256xf32> to vector<16x256xf32>
    %58 = arith.mulf %55, %57 : vector<16x256xf32>
    %59 = arith.truncf %58 : vector<16x256xf32> to vector<16x256xbf16>
    %c0_4 = arith.constant 0 : index
    %c0_5 = arith.constant 0 : index
    %c0_6 = arith.constant 0 : index
    %60 = vector.load %arg3[%c0_4, %c0_5, %c0_6] : memref<9x16x16xf32, #tpu.memory_space<vmem>>, vector<1x16x16xf32>
    %61 = vector.shape_cast %60 : vector<1x16x16xf32> to vector<16x16xf32>
    %62 = arith.truncf %61 : vector<16x16xf32> to vector<16x16xbf16>
    %cst = arith.constant dense<0.000000e+00> : vector<16x256xf32>
    %63 = tpu.matmul %62, %9, %cst {dimension_numbers = #tpu.dot_dimension_numbers<[1], [0], [0], [1], [0, 0, 1, 1], [], []>} : vector<16x16xbf16>, vector<16x256xbf16>, vector<16x256xf32> -> vector<16x256xf32>
    %c1 = arith.constant 1 : index
    %c0_7 = arith.constant 0 : index
    %c0_8 = arith.constant 0 : index
    %64 = vector.load %arg3[%c1, %c0_7, %c0_8] : memref<9x16x16xf32, #tpu.memory_space<vmem>>, vector<1x16x16xf32>
    %65 = vector.shape_cast %64 : vector<1x16x16xf32> to vector<16x16xf32>
    %66 = arith.truncf %65 : vector<16x16xf32> to vector<16x16xbf16>
    %cst_9 = arith.constant dense<0.000000e+00> : vector<16x256xf32>
    %67 = tpu.matmul %66, %16, %cst_9 {dimension_numbers = #tpu.dot_dimension_numbers<[1], [0], [0], [1], [0, 0, 1, 1], [], []>} : vector<16x16xbf16>, vector<16x256xbf16>, vector<16x256xf32> -> vector<16x256xf32>
    %68 = arith.addf %63, %67 : vector<16x256xf32>
    %c2 = arith.constant 2 : index
    %c0_10 = arith.constant 0 : index
    %c0_11 = arith.constant 0 : index
    %69 = vector.load %arg3[%c2, %c0_10, %c0_11] : memref<9x16x16xf32, #tpu.memory_space<vmem>>, vector<1x16x16xf32>
    %70 = vector.shape_cast %69 : vector<1x16x16xf32> to vector<16x16xf32>
    %71 = arith.truncf %70 : vector<16x16xf32> to vector<16x16xbf16>
    %cst_12 = arith.constant dense<0.000000e+00> : vector<16x256xf32>
    %72 = tpu.matmul %71, %23, %cst_12 {dimension_numbers = #tpu.dot_dimension_numbers<[1], [0], [0], [1], [0, 0, 1, 1], [], []>} : vector<16x16xbf16>, vector<16x256xbf16>, vector<16x256xf32> -> vector<16x256xf32>
    %73 = arith.addf %68, %72 : vector<16x256xf32>
    %c3 = arith.constant 3 : index
    %c0_13 = arith.constant 0 : index
    %c0_14 = arith.constant 0 : index
    %74 = vector.load %arg3[%c3, %c0_13, %c0_14] : memref<9x16x16xf32, #tpu.memory_space<vmem>>, vector<1x16x16xf32>
    %75 = vector.shape_cast %74 : vector<1x16x16xf32> to vector<16x16xf32>
    %76 = arith.truncf %75 : vector<16x16xf32> to vector<16x16xbf16>
    %cst_15 = arith.constant dense<0.000000e+00> : vector<16x256xf32>
    %77 = tpu.matmul %76, %30, %cst_15 {dimension_numbers = #tpu.dot_dimension_numbers<[1], [0], [0], [1], [0, 0, 1, 1], [], []>} : vector<16x16xbf16>, vector<16x256xbf16>, vector<16x256xf32> -> vector<16x256xf32>
    %78 = arith.addf %73, %77 : vector<16x256xf32>
    %c4 = arith.constant 4 : index
    %c0_16 = arith.constant 0 : index
    %c0_17 = arith.constant 0 : index
    %79 = vector.load %arg3[%c4, %c0_16, %c0_17] : memref<9x16x16xf32, #tpu.memory_space<vmem>>, vector<1x16x16xf32>
    %80 = vector.shape_cast %79 : vector<1x16x16xf32> to vector<16x16xf32>
    %81 = arith.truncf %80 : vector<16x16xf32> to vector<16x16xbf16>
    %cst_18 = arith.constant dense<0.000000e+00> : vector<16x256xf32>
    %82 = tpu.matmul %81, %31, %cst_18 {dimension_numbers = #tpu.dot_dimension_numbers<[1], [0], [0], [1], [0, 0, 1, 1], [], []>} : vector<16x16xbf16>, vector<16x256xbf16>, vector<16x256xf32> -> vector<16x256xf32>
    %83 = arith.addf %78, %82 : vector<16x256xf32>
    %c5 = arith.constant 5 : index
    %c0_19 = arith.constant 0 : index
    %c0_20 = arith.constant 0 : index
    %84 = vector.load %arg3[%c5, %c0_19, %c0_20] : memref<9x16x16xf32, #tpu.memory_space<vmem>>, vector<1x16x16xf32>
    %85 = vector.shape_cast %84 : vector<1x16x16xf32> to vector<16x16xf32>
    %86 = arith.truncf %85 : vector<16x16xf32> to vector<16x16xbf16>
    %cst_21 = arith.constant dense<0.000000e+00> : vector<16x256xf32>
    %87 = tpu.matmul %86, %38, %cst_21 {dimension_numbers = #tpu.dot_dimension_numbers<[1], [0], [0], [1], [0, 0, 1, 1], [], []>} : vector<16x16xbf16>, vector<16x256xbf16>, vector<16x256xf32> -> vector<16x256xf32>
    %88 = arith.addf %83, %87 : vector<16x256xf32>
    %c6 = arith.constant 6 : index
    %c0_22 = arith.constant 0 : index
    %c0_23 = arith.constant 0 : index
    %89 = vector.load %arg3[%c6, %c0_22, %c0_23] : memref<9x16x16xf32, #tpu.memory_space<vmem>>, vector<1x16x16xf32>
    %90 = vector.shape_cast %89 : vector<1x16x16xf32> to vector<16x16xf32>
    %91 = arith.truncf %90 : vector<16x16xf32> to vector<16x16xbf16>
    %cst_24 = arith.constant dense<0.000000e+00> : vector<16x256xf32>
    %92 = tpu.matmul %91, %45, %cst_24 {dimension_numbers = #tpu.dot_dimension_numbers<[1], [0], [0], [1], [0, 0, 1, 1], [], []>} : vector<16x16xbf16>, vector<16x256xbf16>, vector<16x256xf32> -> vector<16x256xf32>
    %93 = arith.addf %88, %92 : vector<16x256xf32>
    %c7 = arith.constant 7 : index
    %c0_25 = arith.constant 0 : index
    %c0_26 = arith.constant 0 : index
    %94 = vector.load %arg3[%c7, %c0_25, %c0_26] : memref<9x16x16xf32, #tpu.memory_space<vmem>>, vector<1x16x16xf32>
    %95 = vector.shape_cast %94 : vector<1x16x16xf32> to vector<16x16xf32>
    %96 = arith.truncf %95 : vector<16x16xf32> to vector<16x16xbf16>
    %cst_27 = arith.constant dense<0.000000e+00> : vector<16x256xf32>
    %97 = tpu.matmul %96, %52, %cst_27 {dimension_numbers = #tpu.dot_dimension_numbers<[1], [0], [0], [1], [0, 0, 1, 1], [], []>} : vector<16x16xbf16>, vector<16x256xbf16>, vector<16x256xf32> -> vector<16x256xf32>
    %98 = arith.addf %93, %97 : vector<16x256xf32>
    %c8 = arith.constant 8 : index
    %c0_28 = arith.constant 0 : index
    %c0_29 = arith.constant 0 : index
    %99 = vector.load %arg3[%c8, %c0_28, %c0_29] : memref<9x16x16xf32, #tpu.memory_space<vmem>>, vector<1x16x16xf32>
    %100 = vector.shape_cast %99 : vector<1x16x16xf32> to vector<16x16xf32>
    %101 = arith.truncf %100 : vector<16x16xf32> to vector<16x16xbf16>
    %cst_30 = arith.constant dense<0.000000e+00> : vector<16x256xf32>
    %102 = tpu.matmul %101, %59, %cst_30 {dimension_numbers = #tpu.dot_dimension_numbers<[1], [0], [0], [1], [0, 0, 1, 1], [], []>} : vector<16x16xbf16>, vector<16x256xbf16>, vector<16x256xf32> -> vector<16x256xf32>
    %103 = arith.addf %98, %102 : vector<16x256xf32>
    %c0_31 = arith.constant 0 : index
    %c0_32 = arith.constant 0 : index
    %104 = vector.load %arg4[%c0_31, %c0_32] : memref<16x1xf32, #tpu.memory_space<vmem>>, vector<16x1xf32>
    %105 = vector.broadcast %104 : vector<16x1xf32> to vector<16x256xf32>
    %106 = arith.addf %103, %105 : vector<16x256xf32>
    %cst_33 = arith.constant 0.000000e+00 : f32
    %107 = vector.broadcast %cst_33 : f32 to vector<16x256xf32>
    %108 = arith.cmpf oge, %106, %107 : vector<16x256xf32>
    %cst_34 = arith.constant 5.000000e-02 : f32
    %109 = vector.broadcast %cst_34 : f32 to vector<16x256xf32>
    %110 = arith.mulf %109, %106 : vector<16x256xf32>
    %111 = arith.select %108, %106, %110 : vector<16x256xi1>, vector<16x256xf32>
    %112 = vector.extract_strided_slice %111 {offsets = [0, 0], sizes = [4, 256], strides = [1, 1]} : vector<16x256xf32> to vector<4x256xf32>
    %113 = vector.extract_strided_slice %111 {offsets = [4, 0], sizes = [12, 256], strides = [1, 1]} : vector<16x256xf32> to vector<12x256xf32>
    %114 = vector.extract_strided_slice %113 {offsets = [0, 239], sizes = [12, 17], strides = [1, 1]} : vector<12x256xf32> to vector<12x17xf32>
    %115 = vector.extract_strided_slice %113 {offsets = [0, 0], sizes = [12, 239], strides = [1, 1]} : vector<12x256xf32> to vector<12x239xf32>
    %116 = tpu.concatenate %114, %115 in 1 : vector<12x17xf32>, vector<12x239xf32> -> vector<12x256xf32>
    %117 = vector.extract_strided_slice %2 {offsets = [0, 0], sizes = [1, 256], strides = [1, 1]} : vector<9x256xf32> to vector<1x256xf32>
    %118 = vector.broadcast %117 : vector<1x256xf32> to vector<12x256xf32>
    %119 = arith.mulf %116, %118 : vector<12x256xf32>
    %120 = arith.truncf %119 : vector<12x256xf32> to vector<12x256xbf16>
    %121 = vector.extract_strided_slice %113 {offsets = [0, 240], sizes = [12, 16], strides = [1, 1]} : vector<12x256xf32> to vector<12x16xf32>
    %122 = vector.extract_strided_slice %113 {offsets = [0, 0], sizes = [12, 240], strides = [1, 1]} : vector<12x256xf32> to vector<12x240xf32>
    %123 = tpu.concatenate %121, %122 in 1 : vector<12x16xf32>, vector<12x240xf32> -> vector<12x256xf32>
    %124 = vector.extract_strided_slice %2 {offsets = [1, 0], sizes = [1, 256], strides = [1, 1]} : vector<9x256xf32> to vector<1x256xf32>
    %125 = vector.broadcast %124 : vector<1x256xf32> to vector<12x256xf32>
    %126 = arith.mulf %123, %125 : vector<12x256xf32>
    %127 = arith.truncf %126 : vector<12x256xf32> to vector<12x256xbf16>
    %128 = vector.extract_strided_slice %113 {offsets = [0, 241], sizes = [12, 15], strides = [1, 1]} : vector<12x256xf32> to vector<12x15xf32>
    %129 = vector.extract_strided_slice %113 {offsets = [0, 0], sizes = [12, 241], strides = [1, 1]} : vector<12x256xf32> to vector<12x241xf32>
    %130 = tpu.concatenate %128, %129 in 1 : vector<12x15xf32>, vector<12x241xf32> -> vector<12x256xf32>
    %131 = vector.extract_strided_slice %2 {offsets = [2, 0], sizes = [1, 256], strides = [1, 1]} : vector<9x256xf32> to vector<1x256xf32>
    %132 = vector.broadcast %131 : vector<1x256xf32> to vector<12x256xf32>
    %133 = arith.mulf %130, %132 : vector<12x256xf32>
    %134 = arith.truncf %133 : vector<12x256xf32> to vector<12x256xbf16>
    %135 = vector.extract_strided_slice %113 {offsets = [0, 255], sizes = [12, 1], strides = [1, 1]} : vector<12x256xf32> to vector<12x1xf32>
    %136 = vector.extract_strided_slice %113 {offsets = [0, 0], sizes = [12, 255], strides = [1, 1]} : vector<12x256xf32> to vector<12x255xf32>
    %137 = tpu.concatenate %135, %136 in 1 : vector<12x1xf32>, vector<12x255xf32> -> vector<12x256xf32>
    %138 = vector.extract_strided_slice %2 {offsets = [3, 0], sizes = [1, 256], strides = [1, 1]} : vector<9x256xf32> to vector<1x256xf32>
    %139 = vector.broadcast %138 : vector<1x256xf32> to vector<12x256xf32>
    %140 = arith.mulf %137, %139 : vector<12x256xf32>
    %141 = arith.truncf %140 : vector<12x256xf32> to vector<12x256xbf16>
    %142 = arith.truncf %113 : vector<12x256xf32> to vector<12x256xbf16>
    %143 = vector.extract_strided_slice %113 {offsets = [0, 1], sizes = [12, 255], strides = [1, 1]} : vector<12x256xf32> to vector<12x255xf32>
    %144 = vector.extract_strided_slice %113 {offsets = [0, 0], sizes = [12, 1], strides = [1, 1]} : vector<12x256xf32> to vector<12x1xf32>
    %145 = tpu.concatenate %143, %144 in 1 : vector<12x255xf32>, vector<12x1xf32> -> vector<12x256xf32>
    %146 = vector.extract_strided_slice %2 {offsets = [5, 0], sizes = [1, 256], strides = [1, 1]} : vector<9x256xf32> to vector<1x256xf32>
    %147 = vector.broadcast %146 : vector<1x256xf32> to vector<12x256xf32>
    %148 = arith.mulf %145, %147 : vector<12x256xf32>
    %149 = arith.truncf %148 : vector<12x256xf32> to vector<12x256xbf16>
    %150 = vector.extract_strided_slice %113 {offsets = [0, 15], sizes = [12, 241], strides = [1, 1]} : vector<12x256xf32> to vector<12x241xf32>
    %151 = vector.extract_strided_slice %113 {offsets = [0, 0], sizes = [12, 15], strides = [1, 1]} : vector<12x256xf32> to vector<12x15xf32>
    %152 = tpu.concatenate %150, %151 in 1 : vector<12x241xf32>, vector<12x15xf32> -> vector<12x256xf32>
    %153 = vector.extract_strided_slice %2 {offsets = [6, 0], sizes = [1, 256], strides = [1, 1]} : vector<9x256xf32> to vector<1x256xf32>
    %154 = vector.broadcast %153 : vector<1x256xf32> to vector<12x256xf32>
    %155 = arith.mulf %152, %154 : vector<12x256xf32>
    %156 = arith.truncf %155 : vector<12x256xf32> to vector<12x256xbf16>
    %157 = vector.extract_strided_slice %113 {offsets = [0, 16], sizes = [12, 240], strides = [1, 1]} : vector<12x256xf32> to vector<12x240xf32>
    %158 = vector.extract_strided_slice %113 {offsets = [0, 0], sizes = [12, 16], strides = [1, 1]} : vector<12x256xf32> to vector<12x16xf32>
    %159 = tpu.concatenate %157, %158 in 1 : vector<12x240xf32>, vector<12x16xf32> -> vector<12x256xf32>
    %160 = vector.extract_strided_slice %2 {offsets = [7, 0], sizes = [1, 256], strides = [1, 1]} : vector<9x256xf32> to vector<1x256xf32>
    %161 = vector.broadcast %160 : vector<1x256xf32> to vector<12x256xf32>
    %162 = arith.mulf %159, %161 : vector<12x256xf32>
    %163 = arith.truncf %162 : vector<12x256xf32> to vector<12x256xbf16>
    %164 = vector.extract_strided_slice %113 {offsets = [0, 17], sizes = [12, 239], strides = [1, 1]} : vector<12x256xf32> to vector<12x239xf32>
    %165 = vector.extract_strided_slice %113 {offsets = [0, 0], sizes = [12, 17], strides = [1, 1]} : vector<12x256xf32> to vector<12x17xf32>
    %166 = tpu.concatenate %164, %165 in 1 : vector<12x239xf32>, vector<12x17xf32> -> vector<12x256xf32>
    %167 = vector.extract_strided_slice %2 {offsets = [8, 0], sizes = [1, 256], strides = [1, 1]} : vector<9x256xf32> to vector<1x256xf32>
    %168 = vector.broadcast %167 : vector<1x256xf32> to vector<12x256xf32>
    %169 = arith.mulf %166, %168 : vector<12x256xf32>
    %170 = arith.truncf %169 : vector<12x256xf32> to vector<12x256xbf16>
    %c0_35 = arith.constant 0 : index
    %c0_36 = arith.constant 0 : index
    %c0_37 = arith.constant 0 : index
    %171 = vector.load %arg5[%c0_35, %c0_36, %c0_37] : memref<9x16x12xf32, #tpu.memory_space<vmem>>, vector<1x16x12xf32>
    %172 = vector.shape_cast %171 : vector<1x16x12xf32> to vector<16x12xf32>
    %173 = arith.truncf %172 : vector<16x12xf32> to vector<16x12xbf16>
    %cst_38 = arith.constant dense<0.000000e+00> : vector<16x256xf32>
    %174 = tpu.matmul %173, %120, %cst_38 {dimension_numbers = #tpu.dot_dimension_numbers<[1], [0], [0], [1], [0, 0, 1, 1], [], []>} : vector<16x12xbf16>, vector<12x256xbf16>, vector<16x256xf32> -> vector<16x256xf32>
    %c1_39 = arith.constant 1 : index
    %c0_40 = arith.constant 0 : index
    %c0_41 = arith.constant 0 : index
    %175 = vector.load %arg5[%c1_39, %c0_40, %c0_41] : memref<9x16x12xf32, #tpu.memory_space<vmem>>, vector<1x16x12xf32>
    %176 = vector.shape_cast %175 : vector<1x16x12xf32> to vector<16x12xf32>
    %177 = arith.truncf %176 : vector<16x12xf32> to vector<16x12xbf16>
    %cst_42 = arith.constant dense<0.000000e+00> : vector<16x256xf32>
    %178 = tpu.matmul %177, %127, %cst_42 {dimension_numbers = #tpu.dot_dimension_numbers<[1], [0], [0], [1], [0, 0, 1, 1], [], []>} : vector<16x12xbf16>, vector<12x256xbf16>, vector<16x256xf32> -> vector<16x256xf32>
    %179 = arith.addf %174, %178 : vector<16x256xf32>
    %c2_43 = arith.constant 2 : index
    %c0_44 = arith.constant 0 : index
    %c0_45 = arith.constant 0 : index
    %180 = vector.load %arg5[%c2_43, %c0_44, %c0_45] : memref<9x16x12xf32, #tpu.memory_space<vmem>>, vector<1x16x12xf32>
    %181 = vector.shape_cast %180 : vector<1x16x12xf32> to vector<16x12xf32>
    %182 = arith.truncf %181 : vector<16x12xf32> to vector<16x12xbf16>
    %cst_46 = arith.constant dense<0.000000e+00> : vector<16x256xf32>
    %183 = tpu.matmul %182, %134, %cst_46 {dimension_numbers = #tpu.dot_dimension_numbers<[1], [0], [0], [1], [0, 0, 1, 1], [], []>} : vector<16x12xbf16>, vector<12x256xbf16>, vector<16x256xf32> -> vector<16x256xf32>
    %184 = arith.addf %179, %183 : vector<16x256xf32>
    %c3_47 = arith.constant 3 : index
    %c0_48 = arith.constant 0 : index
    %c0_49 = arith.constant 0 : index
    %185 = vector.load %arg5[%c3_47, %c0_48, %c0_49] : memref<9x16x12xf32, #tpu.memory_space<vmem>>, vector<1x16x12xf32>
    %186 = vector.shape_cast %185 : vector<1x16x12xf32> to vector<16x12xf32>
    %187 = arith.truncf %186 : vector<16x12xf32> to vector<16x12xbf16>
    %cst_50 = arith.constant dense<0.000000e+00> : vector<16x256xf32>
    %188 = tpu.matmul %187, %141, %cst_50 {dimension_numbers = #tpu.dot_dimension_numbers<[1], [0], [0], [1], [0, 0, 1, 1], [], []>} : vector<16x12xbf16>, vector<12x256xbf16>, vector<16x256xf32> -> vector<16x256xf32>
    %189 = arith.addf %184, %188 : vector<16x256xf32>
    %c4_51 = arith.constant 4 : index
    %c0_52 = arith.constant 0 : index
    %c0_53 = arith.constant 0 : index
    %190 = vector.load %arg5[%c4_51, %c0_52, %c0_53] : memref<9x16x12xf32, #tpu.memory_space<vmem>>, vector<1x16x12xf32>
    %191 = vector.shape_cast %190 : vector<1x16x12xf32> to vector<16x12xf32>
    %192 = arith.truncf %191 : vector<16x12xf32> to vector<16x12xbf16>
    %cst_54 = arith.constant dense<0.000000e+00> : vector<16x256xf32>
    %193 = tpu.matmul %192, %142, %cst_54 {dimension_numbers = #tpu.dot_dimension_numbers<[1], [0], [0], [1], [0, 0, 1, 1], [], []>} : vector<16x12xbf16>, vector<12x256xbf16>, vector<16x256xf32> -> vector<16x256xf32>
    %194 = arith.addf %189, %193 : vector<16x256xf32>
    %c5_55 = arith.constant 5 : index
    %c0_56 = arith.constant 0 : index
    %c0_57 = arith.constant 0 : index
    %195 = vector.load %arg5[%c5_55, %c0_56, %c0_57] : memref<9x16x12xf32, #tpu.memory_space<vmem>>, vector<1x16x12xf32>
    %196 = vector.shape_cast %195 : vector<1x16x12xf32> to vector<16x12xf32>
    %197 = arith.truncf %196 : vector<16x12xf32> to vector<16x12xbf16>
    %cst_58 = arith.constant dense<0.000000e+00> : vector<16x256xf32>
    %198 = tpu.matmul %197, %149, %cst_58 {dimension_numbers = #tpu.dot_dimension_numbers<[1], [0], [0], [1], [0, 0, 1, 1], [], []>} : vector<16x12xbf16>, vector<12x256xbf16>, vector<16x256xf32> -> vector<16x256xf32>
    %199 = arith.addf %194, %198 : vector<16x256xf32>
    %c6_59 = arith.constant 6 : index
    %c0_60 = arith.constant 0 : index
    %c0_61 = arith.constant 0 : index
    %200 = vector.load %arg5[%c6_59, %c0_60, %c0_61] : memref<9x16x12xf32, #tpu.memory_space<vmem>>, vector<1x16x12xf32>
    %201 = vector.shape_cast %200 : vector<1x16x12xf32> to vector<16x12xf32>
    %202 = arith.truncf %201 : vector<16x12xf32> to vector<16x12xbf16>
    %cst_62 = arith.constant dense<0.000000e+00> : vector<16x256xf32>
    %203 = tpu.matmul %202, %156, %cst_62 {dimension_numbers = #tpu.dot_dimension_numbers<[1], [0], [0], [1], [0, 0, 1, 1], [], []>} : vector<16x12xbf16>, vector<12x256xbf16>, vector<16x256xf32> -> vector<16x256xf32>
    %204 = arith.addf %199, %203 : vector<16x256xf32>
    %c7_63 = arith.constant 7 : index
    %c0_64 = arith.constant 0 : index
    %c0_65 = arith.constant 0 : index
    %205 = vector.load %arg5[%c7_63, %c0_64, %c0_65] : memref<9x16x12xf32, #tpu.memory_space<vmem>>, vector<1x16x12xf32>
    %206 = vector.shape_cast %205 : vector<1x16x12xf32> to vector<16x12xf32>
    %207 = arith.truncf %206 : vector<16x12xf32> to vector<16x12xbf16>
    %cst_66 = arith.constant dense<0.000000e+00> : vector<16x256xf32>
    %208 = tpu.matmul %207, %163, %cst_66 {dimension_numbers = #tpu.dot_dimension_numbers<[1], [0], [0], [1], [0, 0, 1, 1], [], []>} : vector<16x12xbf16>, vector<12x256xbf16>, vector<16x256xf32> -> vector<16x256xf32>
    %209 = arith.addf %204, %208 : vector<16x256xf32>
    %c8_67 = arith.constant 8 : index
    %c0_68 = arith.constant 0 : index
    %c0_69 = arith.constant 0 : index
    %210 = vector.load %arg5[%c8_67, %c0_68, %c0_69] : memref<9x16x12xf32, #tpu.memory_space<vmem>>, vector<1x16x12xf32>
    %211 = vector.shape_cast %210 : vector<1x16x12xf32> to vector<16x12xf32>
    %212 = arith.truncf %211 : vector<16x12xf32> to vector<16x12xbf16>
    %cst_70 = arith.constant dense<0.000000e+00> : vector<16x256xf32>
    %213 = tpu.matmul %212, %170, %cst_70 {dimension_numbers = #tpu.dot_dimension_numbers<[1], [0], [0], [1], [0, 0, 1, 1], [], []>} : vector<16x12xbf16>, vector<12x256xbf16>, vector<16x256xf32> -> vector<16x256xf32>
    %214 = arith.addf %209, %213 : vector<16x256xf32>
    %c0_71 = arith.constant 0 : index
    %c0_72 = arith.constant 0 : index
    %215 = vector.load %arg6[%c0_71, %c0_72] : memref<16x1xf32, #tpu.memory_space<vmem>>, vector<16x1xf32>
    %216 = vector.broadcast %215 : vector<16x1xf32> to vector<16x256xf32>
    %217 = arith.addf %214, %216 : vector<16x256xf32>
    %cst_73 = arith.constant 0.000000e+00 : f32
    %218 = vector.broadcast %cst_73 : f32 to vector<16x256xf32>
    %219 = arith.cmpf oge, %217, %218 : vector<16x256xf32>
    %cst_74 = arith.constant 5.000000e-02 : f32
    %220 = vector.broadcast %cst_74 : f32 to vector<16x256xf32>
    %221 = arith.mulf %220, %217 : vector<16x256xf32>
    %222 = arith.select %219, %217, %221 : vector<16x256xi1>, vector<16x256xf32>
    %223 = vector.extract_strided_slice %222 {offsets = [0, 0], sizes = [4, 256], strides = [1, 1]} : vector<16x256xf32> to vector<4x256xf32>
    %224 = vector.extract_strided_slice %222 {offsets = [4, 0], sizes = [12, 256], strides = [1, 1]} : vector<16x256xf32> to vector<12x256xf32>
    %225 = vector.extract_strided_slice %224 {offsets = [0, 239], sizes = [12, 17], strides = [1, 1]} : vector<12x256xf32> to vector<12x17xf32>
    %226 = vector.extract_strided_slice %224 {offsets = [0, 0], sizes = [12, 239], strides = [1, 1]} : vector<12x256xf32> to vector<12x239xf32>
    %227 = tpu.concatenate %225, %226 in 1 : vector<12x17xf32>, vector<12x239xf32> -> vector<12x256xf32>
    %228 = vector.extract_strided_slice %2 {offsets = [0, 0], sizes = [1, 256], strides = [1, 1]} : vector<9x256xf32> to vector<1x256xf32>
    %229 = vector.broadcast %228 : vector<1x256xf32> to vector<12x256xf32>
    %230 = arith.mulf %227, %229 : vector<12x256xf32>
    %231 = arith.truncf %230 : vector<12x256xf32> to vector<12x256xbf16>
    %232 = vector.extract_strided_slice %224 {offsets = [0, 240], sizes = [12, 16], strides = [1, 1]} : vector<12x256xf32> to vector<12x16xf32>
    %233 = vector.extract_strided_slice %224 {offsets = [0, 0], sizes = [12, 240], strides = [1, 1]} : vector<12x256xf32> to vector<12x240xf32>
    %234 = tpu.concatenate %232, %233 in 1 : vector<12x16xf32>, vector<12x240xf32> -> vector<12x256xf32>
    %235 = vector.extract_strided_slice %2 {offsets = [1, 0], sizes = [1, 256], strides = [1, 1]} : vector<9x256xf32> to vector<1x256xf32>
    %236 = vector.broadcast %235 : vector<1x256xf32> to vector<12x256xf32>
    %237 = arith.mulf %234, %236 : vector<12x256xf32>
    %238 = arith.truncf %237 : vector<12x256xf32> to vector<12x256xbf16>
    %239 = vector.extract_strided_slice %224 {offsets = [0, 241], sizes = [12, 15], strides = [1, 1]} : vector<12x256xf32> to vector<12x15xf32>
    %240 = vector.extract_strided_slice %224 {offsets = [0, 0], sizes = [12, 241], strides = [1, 1]} : vector<12x256xf32> to vector<12x241xf32>
    %241 = tpu.concatenate %239, %240 in 1 : vector<12x15xf32>, vector<12x241xf32> -> vector<12x256xf32>
    %242 = vector.extract_strided_slice %2 {offsets = [2, 0], sizes = [1, 256], strides = [1, 1]} : vector<9x256xf32> to vector<1x256xf32>
    %243 = vector.broadcast %242 : vector<1x256xf32> to vector<12x256xf32>
    %244 = arith.mulf %241, %243 : vector<12x256xf32>
    %245 = arith.truncf %244 : vector<12x256xf32> to vector<12x256xbf16>
    %246 = vector.extract_strided_slice %224 {offsets = [0, 255], sizes = [12, 1], strides = [1, 1]} : vector<12x256xf32> to vector<12x1xf32>
    %247 = vector.extract_strided_slice %224 {offsets = [0, 0], sizes = [12, 255], strides = [1, 1]} : vector<12x256xf32> to vector<12x255xf32>
    %248 = tpu.concatenate %246, %247 in 1 : vector<12x1xf32>, vector<12x255xf32> -> vector<12x256xf32>
    %249 = vector.extract_strided_slice %2 {offsets = [3, 0], sizes = [1, 256], strides = [1, 1]} : vector<9x256xf32> to vector<1x256xf32>
    %250 = vector.broadcast %249 : vector<1x256xf32> to vector<12x256xf32>
    %251 = arith.mulf %248, %250 : vector<12x256xf32>
    %252 = arith.truncf %251 : vector<12x256xf32> to vector<12x256xbf16>
    %253 = arith.truncf %224 : vector<12x256xf32> to vector<12x256xbf16>
    %254 = vector.extract_strided_slice %224 {offsets = [0, 1], sizes = [12, 255], strides = [1, 1]} : vector<12x256xf32> to vector<12x255xf32>
    %255 = vector.extract_strided_slice %224 {offsets = [0, 0], sizes = [12, 1], strides = [1, 1]} : vector<12x256xf32> to vector<12x1xf32>
    %256 = tpu.concatenate %254, %255 in 1 : vector<12x255xf32>, vector<12x1xf32> -> vector<12x256xf32>
    %257 = vector.extract_strided_slice %2 {offsets = [5, 0], sizes = [1, 256], strides = [1, 1]} : vector<9x256xf32> to vector<1x256xf32>
    %258 = vector.broadcast %257 : vector<1x256xf32> to vector<12x256xf32>
    %259 = arith.mulf %256, %258 : vector<12x256xf32>
    %260 = arith.truncf %259 : vector<12x256xf32> to vector<12x256xbf16>
    %261 = vector.extract_strided_slice %224 {offsets = [0, 15], sizes = [12, 241], strides = [1, 1]} : vector<12x256xf32> to vector<12x241xf32>
    %262 = vector.extract_strided_slice %224 {offsets = [0, 0], sizes = [12, 15], strides = [1, 1]} : vector<12x256xf32> to vector<12x15xf32>
    %263 = tpu.concatenate %261, %262 in 1 : vector<12x241xf32>, vector<12x15xf32> -> vector<12x256xf32>
    %264 = vector.extract_strided_slice %2 {offsets = [6, 0], sizes = [1, 256], strides = [1, 1]} : vector<9x256xf32> to vector<1x256xf32>
    %265 = vector.broadcast %264 : vector<1x256xf32> to vector<12x256xf32>
    %266 = arith.mulf %263, %265 : vector<12x256xf32>
    %267 = arith.truncf %266 : vector<12x256xf32> to vector<12x256xbf16>
    %268 = vector.extract_strided_slice %224 {offsets = [0, 16], sizes = [12, 240], strides = [1, 1]} : vector<12x256xf32> to vector<12x240xf32>
    %269 = vector.extract_strided_slice %224 {offsets = [0, 0], sizes = [12, 16], strides = [1, 1]} : vector<12x256xf32> to vector<12x16xf32>
    %270 = tpu.concatenate %268, %269 in 1 : vector<12x240xf32>, vector<12x16xf32> -> vector<12x256xf32>
    %271 = vector.extract_strided_slice %2 {offsets = [7, 0], sizes = [1, 256], strides = [1, 1]} : vector<9x256xf32> to vector<1x256xf32>
    %272 = vector.broadcast %271 : vector<1x256xf32> to vector<12x256xf32>
    %273 = arith.mulf %270, %272 : vector<12x256xf32>
    %274 = arith.truncf %273 : vector<12x256xf32> to vector<12x256xbf16>
    %275 = vector.extract_strided_slice %224 {offsets = [0, 17], sizes = [12, 239], strides = [1, 1]} : vector<12x256xf32> to vector<12x239xf32>
    %276 = vector.extract_strided_slice %224 {offsets = [0, 0], sizes = [12, 17], strides = [1, 1]} : vector<12x256xf32> to vector<12x17xf32>
    %277 = tpu.concatenate %275, %276 in 1 : vector<12x239xf32>, vector<12x17xf32> -> vector<12x256xf32>
    %278 = vector.extract_strided_slice %2 {offsets = [8, 0], sizes = [1, 256], strides = [1, 1]} : vector<9x256xf32> to vector<1x256xf32>
    %279 = vector.broadcast %278 : vector<1x256xf32> to vector<12x256xf32>
    %280 = arith.mulf %277, %279 : vector<12x256xf32>
    %281 = arith.truncf %280 : vector<12x256xf32> to vector<12x256xbf16>
    %c0_75 = arith.constant 0 : index
    %c0_76 = arith.constant 0 : index
    %c0_77 = arith.constant 0 : index
    %282 = vector.load %arg7[%c0_75, %c0_76, %c0_77] : memref<9x16x12xf32, #tpu.memory_space<vmem>>, vector<1x16x12xf32>
    %283 = vector.shape_cast %282 : vector<1x16x12xf32> to vector<16x12xf32>
    %284 = arith.truncf %283 : vector<16x12xf32> to vector<16x12xbf16>
    %cst_78 = arith.constant dense<0.000000e+00> : vector<16x256xf32>
    %285 = tpu.matmul %284, %231, %cst_78 {dimension_numbers = #tpu.dot_dimension_numbers<[1], [0], [0], [1], [0, 0, 1, 1], [], []>} : vector<16x12xbf16>, vector<12x256xbf16>, vector<16x256xf32> -> vector<16x256xf32>
    %c1_79 = arith.constant 1 : index
    %c0_80 = arith.constant 0 : index
    %c0_81 = arith.constant 0 : index
    %286 = vector.load %arg7[%c1_79, %c0_80, %c0_81] : memref<9x16x12xf32, #tpu.memory_space<vmem>>, vector<1x16x12xf32>
    %287 = vector.shape_cast %286 : vector<1x16x12xf32> to vector<16x12xf32>
    %288 = arith.truncf %287 : vector<16x12xf32> to vector<16x12xbf16>
    %cst_82 = arith.constant dense<0.000000e+00> : vector<16x256xf32>
    %289 = tpu.matmul %288, %238, %cst_82 {dimension_numbers = #tpu.dot_dimension_numbers<[1], [0], [0], [1], [0, 0, 1, 1], [], []>} : vector<16x12xbf16>, vector<12x256xbf16>, vector<16x256xf32> -> vector<16x256xf32>
    %290 = arith.addf %285, %289 : vector<16x256xf32>
    %c2_83 = arith.constant 2 : index
    %c0_84 = arith.constant 0 : index
    %c0_85 = arith.constant 0 : index
    %291 = vector.load %arg7[%c2_83, %c0_84, %c0_85] : memref<9x16x12xf32, #tpu.memory_space<vmem>>, vector<1x16x12xf32>
    %292 = vector.shape_cast %291 : vector<1x16x12xf32> to vector<16x12xf32>
    %293 = arith.truncf %292 : vector<16x12xf32> to vector<16x12xbf16>
    %cst_86 = arith.constant dense<0.000000e+00> : vector<16x256xf32>
    %294 = tpu.matmul %293, %245, %cst_86 {dimension_numbers = #tpu.dot_dimension_numbers<[1], [0], [0], [1], [0, 0, 1, 1], [], []>} : vector<16x12xbf16>, vector<12x256xbf16>, vector<16x256xf32> -> vector<16x256xf32>
    %295 = arith.addf %290, %294 : vector<16x256xf32>
    %c3_87 = arith.constant 3 : index
    %c0_88 = arith.constant 0 : index
    %c0_89 = arith.constant 0 : index
    %296 = vector.load %arg7[%c3_87, %c0_88, %c0_89] : memref<9x16x12xf32, #tpu.memory_space<vmem>>, vector<1x16x12xf32>
    %297 = vector.shape_cast %296 : vector<1x16x12xf32> to vector<16x12xf32>
    %298 = arith.truncf %297 : vector<16x12xf32> to vector<16x12xbf16>
    %cst_90 = arith.constant dense<0.000000e+00> : vector<16x256xf32>
    %299 = tpu.matmul %298, %252, %cst_90 {dimension_numbers = #tpu.dot_dimension_numbers<[1], [0], [0], [1], [0, 0, 1, 1], [], []>} : vector<16x12xbf16>, vector<12x256xbf16>, vector<16x256xf32> -> vector<16x256xf32>
    %300 = arith.addf %295, %299 : vector<16x256xf32>
    %c4_91 = arith.constant 4 : index
    %c0_92 = arith.constant 0 : index
    %c0_93 = arith.constant 0 : index
    %301 = vector.load %arg7[%c4_91, %c0_92, %c0_93] : memref<9x16x12xf32, #tpu.memory_space<vmem>>, vector<1x16x12xf32>
    %302 = vector.shape_cast %301 : vector<1x16x12xf32> to vector<16x12xf32>
    %303 = arith.truncf %302 : vector<16x12xf32> to vector<16x12xbf16>
    %cst_94 = arith.constant dense<0.000000e+00> : vector<16x256xf32>
    %304 = tpu.matmul %303, %253, %cst_94 {dimension_numbers = #tpu.dot_dimension_numbers<[1], [0], [0], [1], [0, 0, 1, 1], [], []>} : vector<16x12xbf16>, vector<12x256xbf16>, vector<16x256xf32> -> vector<16x256xf32>
    %305 = arith.addf %300, %304 : vector<16x256xf32>
    %c5_95 = arith.constant 5 : index
    %c0_96 = arith.constant 0 : index
    %c0_97 = arith.constant 0 : index
    %306 = vector.load %arg7[%c5_95, %c0_96, %c0_97] : memref<9x16x12xf32, #tpu.memory_space<vmem>>, vector<1x16x12xf32>
    %307 = vector.shape_cast %306 : vector<1x16x12xf32> to vector<16x12xf32>
    %308 = arith.truncf %307 : vector<16x12xf32> to vector<16x12xbf16>
    %cst_98 = arith.constant dense<0.000000e+00> : vector<16x256xf32>
    %309 = tpu.matmul %308, %260, %cst_98 {dimension_numbers = #tpu.dot_dimension_numbers<[1], [0], [0], [1], [0, 0, 1, 1], [], []>} : vector<16x12xbf16>, vector<12x256xbf16>, vector<16x256xf32> -> vector<16x256xf32>
    %310 = arith.addf %305, %309 : vector<16x256xf32>
    %c6_99 = arith.constant 6 : index
    %c0_100 = arith.constant 0 : index
    %c0_101 = arith.constant 0 : index
    %311 = vector.load %arg7[%c6_99, %c0_100, %c0_101] : memref<9x16x12xf32, #tpu.memory_space<vmem>>, vector<1x16x12xf32>
    %312 = vector.shape_cast %311 : vector<1x16x12xf32> to vector<16x12xf32>
    %313 = arith.truncf %312 : vector<16x12xf32> to vector<16x12xbf16>
    %cst_102 = arith.constant dense<0.000000e+00> : vector<16x256xf32>
    %314 = tpu.matmul %313, %267, %cst_102 {dimension_numbers = #tpu.dot_dimension_numbers<[1], [0], [0], [1], [0, 0, 1, 1], [], []>} : vector<16x12xbf16>, vector<12x256xbf16>, vector<16x256xf32> -> vector<16x256xf32>
    %315 = arith.addf %310, %314 : vector<16x256xf32>
    %c7_103 = arith.constant 7 : index
    %c0_104 = arith.constant 0 : index
    %c0_105 = arith.constant 0 : index
    %316 = vector.load %arg7[%c7_103, %c0_104, %c0_105] : memref<9x16x12xf32, #tpu.memory_space<vmem>>, vector<1x16x12xf32>
    %317 = vector.shape_cast %316 : vector<1x16x12xf32> to vector<16x12xf32>
    %318 = arith.truncf %317 : vector<16x12xf32> to vector<16x12xbf16>
    %cst_106 = arith.constant dense<0.000000e+00> : vector<16x256xf32>
    %319 = tpu.matmul %318, %274, %cst_106 {dimension_numbers = #tpu.dot_dimension_numbers<[1], [0], [0], [1], [0, 0, 1, 1], [], []>} : vector<16x12xbf16>, vector<12x256xbf16>, vector<16x256xf32> -> vector<16x256xf32>
    %320 = arith.addf %315, %319 : vector<16x256xf32>
    %c8_107 = arith.constant 8 : index
    %c0_108 = arith.constant 0 : index
    %c0_109 = arith.constant 0 : index
    %321 = vector.load %arg7[%c8_107, %c0_108, %c0_109] : memref<9x16x12xf32, #tpu.memory_space<vmem>>, vector<1x16x12xf32>
    %322 = vector.shape_cast %321 : vector<1x16x12xf32> to vector<16x12xf32>
    %323 = arith.truncf %322 : vector<16x12xf32> to vector<16x12xbf16>
    %cst_110 = arith.constant dense<0.000000e+00> : vector<16x256xf32>
    %324 = tpu.matmul %323, %281, %cst_110 {dimension_numbers = #tpu.dot_dimension_numbers<[1], [0], [0], [1], [0, 0, 1, 1], [], []>} : vector<16x12xbf16>, vector<12x256xbf16>, vector<16x256xf32> -> vector<16x256xf32>
    %325 = arith.addf %320, %324 : vector<16x256xf32>
    %c0_111 = arith.constant 0 : index
    %c0_112 = arith.constant 0 : index
    %326 = vector.load %arg8[%c0_111, %c0_112] : memref<16x1xf32, #tpu.memory_space<vmem>>, vector<16x1xf32>
    %327 = vector.broadcast %326 : vector<16x1xf32> to vector<16x256xf32>
    %328 = arith.addf %325, %327 : vector<16x256xf32>
    %cst_113 = arith.constant 0.000000e+00 : f32
    %329 = vector.broadcast %cst_113 : f32 to vector<16x256xf32>
    %330 = arith.cmpf oge, %328, %329 : vector<16x256xf32>
    %cst_114 = arith.constant 5.000000e-02 : f32
    %331 = vector.broadcast %cst_114 : f32 to vector<16x256xf32>
    %332 = arith.mulf %331, %328 : vector<16x256xf32>
    %333 = arith.select %330, %328, %332 : vector<16x256xi1>, vector<16x256xf32>
    %334 = vector.extract_strided_slice %333 {offsets = [0, 0], sizes = [4, 256], strides = [1, 1]} : vector<16x256xf32> to vector<4x256xf32>
    %335 = vector.extract_strided_slice %333 {offsets = [4, 0], sizes = [12, 256], strides = [1, 1]} : vector<16x256xf32> to vector<12x256xf32>
    %336 = vector.extract_strided_slice %335 {offsets = [0, 239], sizes = [12, 17], strides = [1, 1]} : vector<12x256xf32> to vector<12x17xf32>
    %337 = vector.extract_strided_slice %335 {offsets = [0, 0], sizes = [12, 239], strides = [1, 1]} : vector<12x256xf32> to vector<12x239xf32>
    %338 = tpu.concatenate %336, %337 in 1 : vector<12x17xf32>, vector<12x239xf32> -> vector<12x256xf32>
    %339 = vector.extract_strided_slice %2 {offsets = [0, 0], sizes = [1, 256], strides = [1, 1]} : vector<9x256xf32> to vector<1x256xf32>
    %340 = vector.broadcast %339 : vector<1x256xf32> to vector<12x256xf32>
    %341 = arith.mulf %338, %340 : vector<12x256xf32>
    %342 = arith.truncf %341 : vector<12x256xf32> to vector<12x256xbf16>
    %343 = vector.extract_strided_slice %335 {offsets = [0, 240], sizes = [12, 16], strides = [1, 1]} : vector<12x256xf32> to vector<12x16xf32>
    %344 = vector.extract_strided_slice %335 {offsets = [0, 0], sizes = [12, 240], strides = [1, 1]} : vector<12x256xf32> to vector<12x240xf32>
    %345 = tpu.concatenate %343, %344 in 1 : vector<12x16xf32>, vector<12x240xf32> -> vector<12x256xf32>
    %346 = vector.extract_strided_slice %2 {offsets = [1, 0], sizes = [1, 256], strides = [1, 1]} : vector<9x256xf32> to vector<1x256xf32>
    %347 = vector.broadcast %346 : vector<1x256xf32> to vector<12x256xf32>
    %348 = arith.mulf %345, %347 : vector<12x256xf32>
    %349 = arith.truncf %348 : vector<12x256xf32> to vector<12x256xbf16>
    %350 = vector.extract_strided_slice %335 {offsets = [0, 241], sizes = [12, 15], strides = [1, 1]} : vector<12x256xf32> to vector<12x15xf32>
    %351 = vector.extract_strided_slice %335 {offsets = [0, 0], sizes = [12, 241], strides = [1, 1]} : vector<12x256xf32> to vector<12x241xf32>
    %352 = tpu.concatenate %350, %351 in 1 : vector<12x15xf32>, vector<12x241xf32> -> vector<12x256xf32>
    %353 = vector.extract_strided_slice %2 {offsets = [2, 0], sizes = [1, 256], strides = [1, 1]} : vector<9x256xf32> to vector<1x256xf32>
    %354 = vector.broadcast %353 : vector<1x256xf32> to vector<12x256xf32>
    %355 = arith.mulf %352, %354 : vector<12x256xf32>
    %356 = arith.truncf %355 : vector<12x256xf32> to vector<12x256xbf16>
    %357 = vector.extract_strided_slice %335 {offsets = [0, 255], sizes = [12, 1], strides = [1, 1]} : vector<12x256xf32> to vector<12x1xf32>
    %358 = vector.extract_strided_slice %335 {offsets = [0, 0], sizes = [12, 255], strides = [1, 1]} : vector<12x256xf32> to vector<12x255xf32>
    %359 = tpu.concatenate %357, %358 in 1 : vector<12x1xf32>, vector<12x255xf32> -> vector<12x256xf32>
    %360 = vector.extract_strided_slice %2 {offsets = [3, 0], sizes = [1, 256], strides = [1, 1]} : vector<9x256xf32> to vector<1x256xf32>
    %361 = vector.broadcast %360 : vector<1x256xf32> to vector<12x256xf32>
    %362 = arith.mulf %359, %361 : vector<12x256xf32>
    %363 = arith.truncf %362 : vector<12x256xf32> to vector<12x256xbf16>
    %364 = arith.truncf %335 : vector<12x256xf32> to vector<12x256xbf16>
    %365 = vector.extract_strided_slice %335 {offsets = [0, 1], sizes = [12, 255], strides = [1, 1]} : vector<12x256xf32> to vector<12x255xf32>
    %366 = vector.extract_strided_slice %335 {offsets = [0, 0], sizes = [12, 1], strides = [1, 1]} : vector<12x256xf32> to vector<12x1xf32>
    %367 = tpu.concatenate %365, %366 in 1 : vector<12x255xf32>, vector<12x1xf32> -> vector<12x256xf32>
    %368 = vector.extract_strided_slice %2 {offsets = [5, 0], sizes = [1, 256], strides = [1, 1]} : vector<9x256xf32> to vector<1x256xf32>
    %369 = vector.broadcast %368 : vector<1x256xf32> to vector<12x256xf32>
    %370 = arith.mulf %367, %369 : vector<12x256xf32>
    %371 = arith.truncf %370 : vector<12x256xf32> to vector<12x256xbf16>
    %372 = vector.extract_strided_slice %335 {offsets = [0, 15], sizes = [12, 241], strides = [1, 1]} : vector<12x256xf32> to vector<12x241xf32>
    %373 = vector.extract_strided_slice %335 {offsets = [0, 0], sizes = [12, 15], strides = [1, 1]} : vector<12x256xf32> to vector<12x15xf32>
    %374 = tpu.concatenate %372, %373 in 1 : vector<12x241xf32>, vector<12x15xf32> -> vector<12x256xf32>
    %375 = vector.extract_strided_slice %2 {offsets = [6, 0], sizes = [1, 256], strides = [1, 1]} : vector<9x256xf32> to vector<1x256xf32>
    %376 = vector.broadcast %375 : vector<1x256xf32> to vector<12x256xf32>
    %377 = arith.mulf %374, %376 : vector<12x256xf32>
    %378 = arith.truncf %377 : vector<12x256xf32> to vector<12x256xbf16>
    %379 = vector.extract_strided_slice %335 {offsets = [0, 16], sizes = [12, 240], strides = [1, 1]} : vector<12x256xf32> to vector<12x240xf32>
    %380 = vector.extract_strided_slice %335 {offsets = [0, 0], sizes = [12, 16], strides = [1, 1]} : vector<12x256xf32> to vector<12x16xf32>
    %381 = tpu.concatenate %379, %380 in 1 : vector<12x240xf32>, vector<12x16xf32> -> vector<12x256xf32>
    %382 = vector.extract_strided_slice %2 {offsets = [7, 0], sizes = [1, 256], strides = [1, 1]} : vector<9x256xf32> to vector<1x256xf32>
    %383 = vector.broadcast %382 : vector<1x256xf32> to vector<12x256xf32>
    %384 = arith.mulf %381, %383 : vector<12x256xf32>
    %385 = arith.truncf %384 : vector<12x256xf32> to vector<12x256xbf16>
    %386 = vector.extract_strided_slice %335 {offsets = [0, 17], sizes = [12, 239], strides = [1, 1]} : vector<12x256xf32> to vector<12x239xf32>
    %387 = vector.extract_strided_slice %335 {offsets = [0, 0], sizes = [12, 17], strides = [1, 1]} : vector<12x256xf32> to vector<12x17xf32>
    %388 = tpu.concatenate %386, %387 in 1 : vector<12x239xf32>, vector<12x17xf32> -> vector<12x256xf32>
    %389 = vector.extract_strided_slice %2 {offsets = [8, 0], sizes = [1, 256], strides = [1, 1]} : vector<9x256xf32> to vector<1x256xf32>
    %390 = vector.broadcast %389 : vector<1x256xf32> to vector<12x256xf32>
    %391 = arith.mulf %388, %390 : vector<12x256xf32>
    %392 = arith.truncf %391 : vector<12x256xf32> to vector<12x256xbf16>
    %c0_115 = arith.constant 0 : index
    %c0_116 = arith.constant 0 : index
    %c0_117 = arith.constant 0 : index
    %393 = vector.load %arg9[%c0_115, %c0_116, %c0_117] : memref<9x4x12xf32, #tpu.memory_space<vmem>>, vector<1x4x12xf32>
    %394 = vector.shape_cast %393 : vector<1x4x12xf32> to vector<4x12xf32>
    %395 = arith.truncf %394 : vector<4x12xf32> to vector<4x12xbf16>
    %cst_118 = arith.constant dense<0.000000e+00> : vector<4x256xf32>
    %396 = tpu.matmul %395, %342, %cst_118 {dimension_numbers = #tpu.dot_dimension_numbers<[1], [0], [0], [1], [0, 0, 1, 1], [], []>} : vector<4x12xbf16>, vector<12x256xbf16>, vector<4x256xf32> -> vector<4x256xf32>
    %c1_119 = arith.constant 1 : index
    %c0_120 = arith.constant 0 : index
    %c0_121 = arith.constant 0 : index
    %397 = vector.load %arg9[%c1_119, %c0_120, %c0_121] : memref<9x4x12xf32, #tpu.memory_space<vmem>>, vector<1x4x12xf32>
    %398 = vector.shape_cast %397 : vector<1x4x12xf32> to vector<4x12xf32>
    %399 = arith.truncf %398 : vector<4x12xf32> to vector<4x12xbf16>
    %cst_122 = arith.constant dense<0.000000e+00> : vector<4x256xf32>
    %400 = tpu.matmul %399, %349, %cst_122 {dimension_numbers = #tpu.dot_dimension_numbers<[1], [0], [0], [1], [0, 0, 1, 1], [], []>} : vector<4x12xbf16>, vector<12x256xbf16>, vector<4x256xf32> -> vector<4x256xf32>
    %401 = arith.addf %396, %400 : vector<4x256xf32>
    %c2_123 = arith.constant 2 : index
    %c0_124 = arith.constant 0 : index
    %c0_125 = arith.constant 0 : index
    %402 = vector.load %arg9[%c2_123, %c0_124, %c0_125] : memref<9x4x12xf32, #tpu.memory_space<vmem>>, vector<1x4x12xf32>
    %403 = vector.shape_cast %402 : vector<1x4x12xf32> to vector<4x12xf32>
    %404 = arith.truncf %403 : vector<4x12xf32> to vector<4x12xbf16>
    %cst_126 = arith.constant dense<0.000000e+00> : vector<4x256xf32>
    %405 = tpu.matmul %404, %356, %cst_126 {dimension_numbers = #tpu.dot_dimension_numbers<[1], [0], [0], [1], [0, 0, 1, 1], [], []>} : vector<4x12xbf16>, vector<12x256xbf16>, vector<4x256xf32> -> vector<4x256xf32>
    %406 = arith.addf %401, %405 : vector<4x256xf32>
    %c3_127 = arith.constant 3 : index
    %c0_128 = arith.constant 0 : index
    %c0_129 = arith.constant 0 : index
    %407 = vector.load %arg9[%c3_127, %c0_128, %c0_129] : memref<9x4x12xf32, #tpu.memory_space<vmem>>, vector<1x4x12xf32>
    %408 = vector.shape_cast %407 : vector<1x4x12xf32> to vector<4x12xf32>
    %409 = arith.truncf %408 : vector<4x12xf32> to vector<4x12xbf16>
    %cst_130 = arith.constant dense<0.000000e+00> : vector<4x256xf32>
    %410 = tpu.matmul %409, %363, %cst_130 {dimension_numbers = #tpu.dot_dimension_numbers<[1], [0], [0], [1], [0, 0, 1, 1], [], []>} : vector<4x12xbf16>, vector<12x256xbf16>, vector<4x256xf32> -> vector<4x256xf32>
    %411 = arith.addf %406, %410 : vector<4x256xf32>
    %c4_131 = arith.constant 4 : index
    %c0_132 = arith.constant 0 : index
    %c0_133 = arith.constant 0 : index
    %412 = vector.load %arg9[%c4_131, %c0_132, %c0_133] : memref<9x4x12xf32, #tpu.memory_space<vmem>>, vector<1x4x12xf32>
    %413 = vector.shape_cast %412 : vector<1x4x12xf32> to vector<4x12xf32>
    %414 = arith.truncf %413 : vector<4x12xf32> to vector<4x12xbf16>
    %cst_134 = arith.constant dense<0.000000e+00> : vector<4x256xf32>
    %415 = tpu.matmul %414, %364, %cst_134 {dimension_numbers = #tpu.dot_dimension_numbers<[1], [0], [0], [1], [0, 0, 1, 1], [], []>} : vector<4x12xbf16>, vector<12x256xbf16>, vector<4x256xf32> -> vector<4x256xf32>
    %416 = arith.addf %411, %415 : vector<4x256xf32>
    %c5_135 = arith.constant 5 : index
    %c0_136 = arith.constant 0 : index
    %c0_137 = arith.constant 0 : index
    %417 = vector.load %arg9[%c5_135, %c0_136, %c0_137] : memref<9x4x12xf32, #tpu.memory_space<vmem>>, vector<1x4x12xf32>
    %418 = vector.shape_cast %417 : vector<1x4x12xf32> to vector<4x12xf32>
    %419 = arith.truncf %418 : vector<4x12xf32> to vector<4x12xbf16>
    %cst_138 = arith.constant dense<0.000000e+00> : vector<4x256xf32>
    %420 = tpu.matmul %419, %371, %cst_138 {dimension_numbers = #tpu.dot_dimension_numbers<[1], [0], [0], [1], [0, 0, 1, 1], [], []>} : vector<4x12xbf16>, vector<12x256xbf16>, vector<4x256xf32> -> vector<4x256xf32>
    %421 = arith.addf %416, %420 : vector<4x256xf32>
    %c6_139 = arith.constant 6 : index
    %c0_140 = arith.constant 0 : index
    %c0_141 = arith.constant 0 : index
    %422 = vector.load %arg9[%c6_139, %c0_140, %c0_141] : memref<9x4x12xf32, #tpu.memory_space<vmem>>, vector<1x4x12xf32>
    %423 = vector.shape_cast %422 : vector<1x4x12xf32> to vector<4x12xf32>
    %424 = arith.truncf %423 : vector<4x12xf32> to vector<4x12xbf16>
    %cst_142 = arith.constant dense<0.000000e+00> : vector<4x256xf32>
    %425 = tpu.matmul %424, %378, %cst_142 {dimension_numbers = #tpu.dot_dimension_numbers<[1], [0], [0], [1], [0, 0, 1, 1], [], []>} : vector<4x12xbf16>, vector<12x256xbf16>, vector<4x256xf32> -> vector<4x256xf32>
    %426 = arith.addf %421, %425 : vector<4x256xf32>
    %c7_143 = arith.constant 7 : index
    %c0_144 = arith.constant 0 : index
    %c0_145 = arith.constant 0 : index
    %427 = vector.load %arg9[%c7_143, %c0_144, %c0_145] : memref<9x4x12xf32, #tpu.memory_space<vmem>>, vector<1x4x12xf32>
    %428 = vector.shape_cast %427 : vector<1x4x12xf32> to vector<4x12xf32>
    %429 = arith.truncf %428 : vector<4x12xf32> to vector<4x12xbf16>
    %cst_146 = arith.constant dense<0.000000e+00> : vector<4x256xf32>
    %430 = tpu.matmul %429, %385, %cst_146 {dimension_numbers = #tpu.dot_dimension_numbers<[1], [0], [0], [1], [0, 0, 1, 1], [], []>} : vector<4x12xbf16>, vector<12x256xbf16>, vector<4x256xf32> -> vector<4x256xf32>
    %431 = arith.addf %426, %430 : vector<4x256xf32>
    %c8_147 = arith.constant 8 : index
    %c0_148 = arith.constant 0 : index
    %c0_149 = arith.constant 0 : index
    %432 = vector.load %arg9[%c8_147, %c0_148, %c0_149] : memref<9x4x12xf32, #tpu.memory_space<vmem>>, vector<1x4x12xf32>
    %433 = vector.shape_cast %432 : vector<1x4x12xf32> to vector<4x12xf32>
    %434 = arith.truncf %433 : vector<4x12xf32> to vector<4x12xbf16>
    %cst_150 = arith.constant dense<0.000000e+00> : vector<4x256xf32>
    %435 = tpu.matmul %434, %392, %cst_150 {dimension_numbers = #tpu.dot_dimension_numbers<[1], [0], [0], [1], [0, 0, 1, 1], [], []>} : vector<4x12xbf16>, vector<12x256xbf16>, vector<4x256xf32> -> vector<4x256xf32>
    %436 = arith.addf %431, %435 : vector<4x256xf32>
    %c0_151 = arith.constant 0 : index
    %c0_152 = arith.constant 0 : index
    %437 = vector.load %arg10[%c0_151, %c0_152] : memref<4x1xf32, #tpu.memory_space<vmem>>, vector<4x1xf32>
    %438 = vector.broadcast %437 : vector<4x1xf32> to vector<4x256xf32>
    %439 = arith.addf %436, %438 : vector<4x256xf32>
    %c0_153 = arith.constant 0 : index
    %c0_154 = arith.constant 0 : index
    %c0_155 = arith.constant 0 : index
    %440 = vector.load %arg11[%c0_153, %c0_154, %c0_155] : memref<4x16x4xf32, #tpu.memory_space<vmem>>, vector<1x16x4xf32>
    %441 = vector.shape_cast %440 : vector<1x16x4xf32> to vector<16x4xf32>
    %442 = arith.truncf %441 : vector<16x4xf32> to vector<16x4xbf16>
    %443 = arith.truncf %112 : vector<4x256xf32> to vector<4x256xbf16>
    %cst_156 = arith.constant dense<0.000000e+00> : vector<16x256xf32>
    %444 = tpu.matmul %442, %443, %cst_156 {dimension_numbers = #tpu.dot_dimension_numbers<[1], [0], [0], [1], [0, 0, 1, 1], [], []>} : vector<16x4xbf16>, vector<4x256xbf16>, vector<16x256xf32> -> vector<16x256xf32>
    %c1_157 = arith.constant 1 : index
    %c0_158 = arith.constant 0 : index
    %c0_159 = arith.constant 0 : index
    %445 = vector.load %arg11[%c1_157, %c0_158, %c0_159] : memref<4x16x4xf32, #tpu.memory_space<vmem>>, vector<1x16x4xf32>
    %446 = vector.shape_cast %445 : vector<1x16x4xf32> to vector<16x4xf32>
    %447 = arith.truncf %446 : vector<16x4xf32> to vector<16x4xbf16>
    %448 = arith.truncf %223 : vector<4x256xf32> to vector<4x256xbf16>
    %cst_160 = arith.constant dense<0.000000e+00> : vector<16x256xf32>
    %449 = tpu.matmul %447, %448, %cst_160 {dimension_numbers = #tpu.dot_dimension_numbers<[1], [0], [0], [1], [0, 0, 1, 1], [], []>} : vector<16x4xbf16>, vector<4x256xbf16>, vector<16x256xf32> -> vector<16x256xf32>
    %450 = arith.addf %444, %449 : vector<16x256xf32>
    %c2_161 = arith.constant 2 : index
    %c0_162 = arith.constant 0 : index
    %c0_163 = arith.constant 0 : index
    %451 = vector.load %arg11[%c2_161, %c0_162, %c0_163] : memref<4x16x4xf32, #tpu.memory_space<vmem>>, vector<1x16x4xf32>
    %452 = vector.shape_cast %451 : vector<1x16x4xf32> to vector<16x4xf32>
    %453 = arith.truncf %452 : vector<16x4xf32> to vector<16x4xbf16>
    %454 = arith.truncf %334 : vector<4x256xf32> to vector<4x256xbf16>
    %cst_164 = arith.constant dense<0.000000e+00> : vector<16x256xf32>
    %455 = tpu.matmul %453, %454, %cst_164 {dimension_numbers = #tpu.dot_dimension_numbers<[1], [0], [0], [1], [0, 0, 1, 1], [], []>} : vector<16x4xbf16>, vector<4x256xbf16>, vector<16x256xf32> -> vector<16x256xf32>
    %456 = arith.addf %450, %455 : vector<16x256xf32>
    %c3_165 = arith.constant 3 : index
    %c0_166 = arith.constant 0 : index
    %c0_167 = arith.constant 0 : index
    %457 = vector.load %arg11[%c3_165, %c0_166, %c0_167] : memref<4x16x4xf32, #tpu.memory_space<vmem>>, vector<1x16x4xf32>
    %458 = vector.shape_cast %457 : vector<1x16x4xf32> to vector<16x4xf32>
    %459 = arith.truncf %458 : vector<16x4xf32> to vector<16x4xbf16>
    %460 = arith.truncf %439 : vector<4x256xf32> to vector<4x256xbf16>
    %cst_168 = arith.constant dense<0.000000e+00> : vector<16x256xf32>
    %461 = tpu.matmul %459, %460, %cst_168 {dimension_numbers = #tpu.dot_dimension_numbers<[1], [0], [0], [1], [0, 0, 1, 1], [], []>} : vector<16x4xbf16>, vector<4x256xbf16>, vector<16x256xf32> -> vector<16x256xf32>
    %462 = arith.addf %456, %461 : vector<16x256xf32>
    %c0_169 = arith.constant 0 : index
    %c0_170 = arith.constant 0 : index
    %463 = vector.load %arg12[%c0_169, %c0_170] : memref<16x1xf32, #tpu.memory_space<vmem>>, vector<16x1xf32>
    %464 = vector.broadcast %463 : vector<16x1xf32> to vector<16x256xf32>
    %465 = arith.addf %462, %464 : vector<16x256xf32>
    %c0_171 = arith.constant 0 : index
    %c0_172 = arith.constant 0 : index
    %466 = vector.load %arg13[%c0_171, %c0_172] : memref<32x16xf32, #tpu.memory_space<vmem>>, vector<32x16xf32>
    %467 = arith.truncf %466 : vector<32x16xf32> to vector<32x16xbf16>
    %468 = arith.truncf %1 : vector<16x256xf32> to vector<16x256xbf16>
    %cst_173 = arith.constant dense<0.000000e+00> : vector<32x256xf32>
    %469 = tpu.matmul %467, %468, %cst_173 {dimension_numbers = #tpu.dot_dimension_numbers<[1], [0], [0], [1], [0, 0, 1, 1], [], []>} : vector<32x16xbf16>, vector<16x256xbf16>, vector<32x256xf32> -> vector<32x256xf32>
    %c0_174 = arith.constant 0 : index
    %c0_175 = arith.constant 0 : index
    %470 = vector.load %arg14[%c0_174, %c0_175] : memref<32x1xf32, #tpu.memory_space<vmem>>, vector<32x1xf32>
    %471 = vector.broadcast %470 : vector<32x1xf32> to vector<32x256xf32>
    %472 = arith.addf %469, %471 : vector<32x256xf32>
    %cst_176 = arith.constant 0.000000e+00 : f32
    %473 = vector.broadcast %cst_176 : f32 to vector<32x256xf32>
    %474 = arith.cmpf oge, %472, %473 : vector<32x256xf32>
    %cst_177 = arith.constant 2.500000e-01 : f32
    %475 = vector.broadcast %cst_177 : f32 to vector<32x256xf32>
    %476 = arith.mulf %475, %472 : vector<32x256xf32>
    %477 = arith.select %474, %472, %476 : vector<32x256xi1>, vector<32x256xf32>
    %478 = vector.extract_strided_slice %477 {offsets = [0, 0], sizes = [8, 256], strides = [1, 1]} : vector<32x256xf32> to vector<8x256xf32>
    %479 = vector.extract_strided_slice %477 {offsets = [8, 0], sizes = [8, 256], strides = [1, 1]} : vector<32x256xf32> to vector<8x256xf32>
    %480 = vector.extract_strided_slice %477 {offsets = [16, 0], sizes = [16, 256], strides = [1, 1]} : vector<32x256xf32> to vector<16x256xf32>
    %481 = tpu.transpose %478, [1, 0] : vector<8x256xf32> -> vector<256x8xf32>
    %482 = arith.truncf %481 : vector<256x8xf32> to vector<256x8xbf16>
    %483 = arith.truncf %479 : vector<8x256xf32> to vector<8x256xbf16>
    %cst_178 = arith.constant dense<0.000000e+00> : vector<256x256xf32>
    %484 = tpu.matmul %482, %483, %cst_178 {dimension_numbers = #tpu.dot_dimension_numbers<[1], [0], [0], [1], [0, 0, 1, 1], [], []>} : vector<256x8xbf16>, vector<8x256xbf16>, vector<256x256xf32> -> vector<256x256xf32>
    %cst_179 = arith.constant dense<0xFF800000> : vector<256xf32>
    %485 = vector.multi_reduction <maximumf>, %484, %cst_179 [1] : vector<256x256xf32> to vector<256xf32>
    %486 = vector.shape_cast %485 : vector<256xf32> to vector<256x1xf32>
    %487 = vector.broadcast %486 : vector<256x1xf32> to vector<256x256xf32>
    %488 = arith.subf %484, %487 : vector<256x256xf32>
    %489 = math.exp %488 : vector<256x256xf32>
    %cst_180 = arith.constant dense<0.000000e+00> : vector<256xf32>
    %490 = vector.multi_reduction <add>, %489, %cst_180 [1] : vector<256x256xf32> to vector<256xf32>
    %491 = vector.shape_cast %490 : vector<256xf32> to vector<256x1xf32>
    %492 = tpu.reciprocal %491 {approx = true} : vector<256x1xf32> -> vector<256x1xf32>
    %493 = vector.broadcast %492 : vector<256x1xf32> to vector<256x256xf32>
    %494 = arith.mulf %489, %493 : vector<256x256xf32>
    %495 = arith.truncf %480 : vector<16x256xf32> to vector<16x256xbf16>
    %496 = arith.truncf %494 : vector<256x256xf32> to vector<256x256xbf16>
    %cst_181 = arith.constant dense<0.000000e+00> : vector<16x256xf32>
    %497 = tpu.matmul %495, %496, %cst_181 {dimension_numbers = #tpu.dot_dimension_numbers<[1], [1], [0], [0], [0, 0, 1, 0], [], []>} : vector<16x256xbf16>, vector<256x256xbf16>, vector<16x256xf32> -> vector<16x256xf32>
    %c0_182 = arith.constant 0 : index
    %c0_183 = arith.constant 0 : index
    %498 = memref.load %arg15[%c0_182, %c0_183] : memref<1x1xf32, #tpu.memory_space<smem>>
    %499 = vector.broadcast %498 : f32 to vector<16x256xf32>
    %500 = arith.mulf %499, %465 : vector<16x256xf32>
    %cst_184 = arith.constant 1.000000e+00 : f32
    %501 = arith.subf %cst_184, %498 : f32
    %502 = vector.broadcast %501 : f32 to vector<16x256xf32>
    %503 = arith.mulf %502, %497 : vector<16x256xf32>
    %504 = arith.addf %500, %503 : vector<16x256xf32>
    %c0_185 = arith.constant 0 : index
    %c0_186 = arith.constant 0 : index
    %c0_187 = arith.constant 0 : index
    %505 = vector.load %arg16[%c0_185, %c0_186, %c0_187] : memref<1x16x256xf32, #tpu.memory_space<vmem>>, vector<1x16x256xf32>
    %506 = vector.shape_cast %505 : vector<1x16x256xf32> to vector<16x256xf32>
    %507 = vector.shape_cast %504 : vector<16x256xf32> to vector<1x16x256xf32>
    tpu.vector_store %arg16[%c0_185, %c0_186, %c0_187], %507 {strides = array<i32>} : memref<1x16x256xf32, #tpu.memory_space<vmem>>, vector<1x16x256xf32>,
    return
  }
  func.func @transform_0(%arg0: i32) -> (i32, i32, i32) {
    %c0_i32 = arith.constant 0 : i32
    %c0_i32_0 = arith.constant 0 : i32
    %c0_i32_1 = arith.constant 0 : i32
    return %arg0, %c0_i32, %c0_i32_0 : i32, i32, i32
  }
  func.func @transform_1(%arg0: i32) -> (i32, i32) {
    %c0_i32 = arith.constant 0 : i32
    %c0_i32_0 = arith.constant 0 : i32
    %c0_i32_1 = arith.constant 0 : i32
    return %c0_i32, %c0_i32_0 : i32, i32
  }
  func.func @transform_2(%arg0: i32) -> (i32, i32, i32) {
    %c0_i32 = arith.constant 0 : i32
    %c0_i32_0 = arith.constant 0 : i32
    %c0_i32_1 = arith.constant 0 : i32
    %c0_i32_2 = arith.constant 0 : i32
    return %c0_i32, %c0_i32_0, %c0_i32_1 : i32, i32, i32
  }
  func.func @transform_3(%arg0: i32) -> (i32, i32) {
    %c0_i32 = arith.constant 0 : i32
    %c0_i32_0 = arith.constant 0 : i32
    %c0_i32_1 = arith.constant 0 : i32
    return %c0_i32, %c0_i32_0 : i32, i32
  }
  func.func @transform_4(%arg0: i32) -> (i32, i32, i32) {
    %c0_i32 = arith.constant 0 : i32
    %c0_i32_0 = arith.constant 0 : i32
    %c0_i32_1 = arith.constant 0 : i32
    %c0_i32_2 = arith.constant 0 : i32
    return %c0_i32, %c0_i32_0, %c0_i32_1 : i32, i32, i32
  }
  func.func @transform_5(%arg0: i32) -> (i32, i32) {
    %c0_i32 = arith.constant 0 : i32
    %c0_i32_0 = arith.constant 0 : i32
    %c0_i32_1 = arith.constant 0 : i32
    return %c0_i32, %c0_i32_0 : i32, i32
  }
  func.func @transform_6(%arg0: i32) -> (i32, i32, i32) {
    %c0_i32 = arith.constant 0 : i32
    %c0_i32_0 = arith.constant 0 : i32
    %c0_i32_1 = arith.constant 0 : i32
    %c0_i32_2 = arith.constant 0 : i32
    return %c0_i32, %c0_i32_0, %c0_i32_1 : i32, i32, i32
  }
  func.func @transform_7(%arg0: i32) -> (i32, i32) {
    %c0_i32 = arith.constant 0 : i32
    %c0_i32_0 = arith.constant 0 : i32
    %c0_i32_1 = arith.constant 0 : i32
    return %c0_i32, %c0_i32_0 : i32, i32
  }
  func.func @transform_8(%arg0: i32) -> (i32, i32, i32) {
    %c0_i32 = arith.constant 0 : i32
    %c0_i32_0 = arith.constant 0 : i32
    %c0_i32_1 = arith.constant 0 : i32
    %c0_i32_2 = arith.constant 0 : i32
    return %c0_i32, %c0_i32_0, %c0_i32_1 : i32, i32, i32
  }
  func.func @transform_9(%arg0: i32) -> (i32, i32) {
    %c0_i32 = arith.constant 0 : i32
    %c0_i32_0 = arith.constant 0 : i32
    %c0_i32_1 = arith.constant 0 : i32
    return %c0_i32, %c0_i32_0 : i32, i32
  }
  func.func @transform_10(%arg0: i32) -> (i32, i32, i32) {
    %c0_i32 = arith.constant 0 : i32
    %c0_i32_0 = arith.constant 0 : i32
    %c0_i32_1 = arith.constant 0 : i32
    %c0_i32_2 = arith.constant 0 : i32
    return %c0_i32, %c0_i32_0, %c0_i32_1 : i32, i32, i32
  }
  func.func @transform_11(%arg0: i32) -> (i32, i32) {
    %c0_i32 = arith.constant 0 : i32
    %c0_i32_0 = arith.constant 0 : i32
    %c0_i32_1 = arith.constant 0 : i32
    return %c0_i32, %c0_i32_0 : i32, i32
  }
  func.func @transform_12(%arg0: i32) -> (i32, i32) {
    %c0_i32 = arith.constant 0 : i32
    %c0_i32_0 = arith.constant 0 : i32
    %c0_i32_1 = arith.constant 0 : i32
    return %c0_i32, %c0_i32_0 : i32, i32
  }
  func.func @transform_13(%arg0: i32) -> (i32, i32) {
    %c0_i32 = arith.constant 0 : i32
    %c0_i32_0 = arith.constant 0 : i32
    %c0_i32_1 = arith.constant 0 : i32
    return %c0_i32, %c0_i32_0 : i32, i32
  }
  func.func @transform_14(%arg0: i32) -> (i32, i32) {
    %c0_i32 = arith.constant 0 : i32
    %c0_i32_0 = arith.constant 0 : i32
    %c0_i32_1 = arith.constant 0 : i32
    return %c0_i32, %c0_i32_0 : i32, i32
  }
  func.func @transform_15(%arg0: i32) -> (i32, i32, i32) {
    %c0_i32 = arith.constant 0 : i32
    %c0_i32_0 = arith.constant 0 : i32
    %c0_i32_1 = arith.constant 0 : i32
    return %arg0, %c0_i32, %c0_i32_0 : i32, i32, i32
  }
}

</mosaic_0001>

<bundles_post_ra>
// kernel: imd_module.1
= control target key start
LH: loop header
LB: loop body
LE: loop exit
PB: predicated region body
PF: predicated region fallthrough
CT: control target
= control target key end

     0   :  { %s5522_s20 = smov 0   ;;  %s7201_s0 = inlined_call_operand.vmem [shape: f32[2,16,256], index: 0, kind: input, shape index: {}]   ;;  %s7202_s1 = inlined_call_operand.vmem [shape: f32[9,256], index: 1, kind: input, shape index: {}]   ;;  %s7203_s2 = inlined_call_operand.vmem [shape: f32[9,16,16], index: 2, kind: input, shape index: {}]   ;;  %s7204_s3 = inlined_call_operand.vmem [shape: f32[16,1], index: 3, kind: input, shape index: {}]   ;;  %s7205_s4 = inlined_call_operand.vmem [shape: f32[9,16,12], index: 4, kind: input, shape index: {}]   ;;  %s7206_s5 = inlined_call_operand.vmem [shape: f32[16,1], index: 5, kind: input, shape index: {}]   ;;  %s7207_s6 = inlined_call_operand.vmem [shape: f32[9,16,12], index: 6, kind: input, shape index: {}]   ;;  %s7208_s7 = inlined_call_operand.vmem [shape: f32[16,1], index: 7, kind: input, shape index: {}]   ;;  %s7209_s8 = inlined_call_operand.vmem [shape: f32[9,4,12], index: 8, kind: input, shape index: {}]   ;;  %s7210_s9 = inlined_call_operand.vmem [shape: f32[4,1], index: 9, kind: input, shape index: {}]   ;;  %s7211_s10 = inlined_call_operand.vmem [shape: f32[4,16,4], index: 10, kind: input, shape index: {}]   ;;  %s7212_s11 = inlined_call_operand.vmem [shape: f32[16,1], index: 11, kind: input, shape index: {}]   ;;  %s7213_s12 = inlined_call_operand.vmem [shape: f32[32,16], index: 12, kind: input, shape index: {}]   ;;  %s7214_s13 = inlined_call_operand.vmem [shape: f32[32,1], index: 13, kind: input, shape index: {}]   ;;  %s7215_s14 = inlined_call_operand.<no memory space> [shape: f32[1,1], index: 14, kind: input, shape index: {}]   ;;  %s7216_s15 = inlined_call_operand.vmem [shape: f32[2,16,256], index: 15, kind: output, shape index: {}]  }
   0x1   :  { %20 = sst [smem:[#allocation2]] %s7215_s14 }
   0x2 LB: > { %s4933_s21 = sadd.s32 4294967295, %s5428_s20   ;;  %p4937_p0 = scmp.ge.s32.totalorder %s5428_s20, 1  ;;  %s5428_s20 = sphi %s5522_s20, %s26_s20  }
   0x3   : > { %p438_p1 = scmp.lt.s32.totalorder %s5428_s20, 3 }
   0x5   : > { %p439_p2 = pnand %p4937_p0, %p438_p1 }
   0x7   : > { %442 = sbr.rel (%p439_p2) target bundleno = 3048 (0xbe8), region = 80 }
   0xe   : > { %p486_p3 = scmp.lt.s32.totalorder %s4933_s21, 1  ;;  %v5430_v2 = vmov 0   ;;  %s5431_s25 = smov 16   ;;  %v528_v7 = vlaneseq  ;;  %v5584_v10 = vld [vmem:[%s7202_s1 + $0x8] sm:$0xff]  ;;  %v5589_v11 = vld [vmem:[%s7202_s1] sm:$0xff]  ;;  %vm552_vm0 = vcmask 130048  }
   0xf   : > { %817 = vmatprep.mubr.bf16.mxu0 %v5430_v2  ;;  %5226 = vset.pattern.permute.xlu0 %v5430_v2  ;;  %s5432_s26 = smov 17   ;;  %s5433_s27 = smov 15   ;;  %v1252_v14 = vld [vmem:[%s7204_s3] sm:$0xff]  ;;  %v1253_v15 = vld [vmem:[%s7204_s3 + $0x8] sm:$0xff]  ;;  %v4944_v32 = vld [vmem:[%s7203_s2 + $0x10] sm:$0xff]  ;;  %vm519_vm1 = vcmask 138240  }
  0x10   : > { %s7329_s21 = smov (!%p486_p3, %s4933_s21), 1  ;;  %5227 = vset.pattern.permute.xlu1 %v5430_v2  ;;  %1840 = vmatprep.mubr.bf16.mxu1 %v5430_v2  ;;  %s5434_s28 = smov 1   ;;  %v5576_v8 = vshrl.u32 %v528_v7, 7  ;;  %v4945_v33 = vld [vmem:[%s7203_s2 + $0x18] sm:$0xff]  ;;  %v775_v56 = vld [vmem:[%s7203_s2] sm:$0xff]  ;;  %v776_v57 = vld [vmem:[%s7203_s2 + $0x8] sm:$0xff] }
  0x11   : > { %s7217_s14 = sshll.u32 %s7329_s21, 5  ;;  %s7224_s29 = smov 127   ;;  %v781_v40 = vpack.c.bf16 %v4945_v33, %v4944_v32  ;;  %vm585_vm2 = vcmask 121856   ;;  %v777_v62 = vpack.c.bf16 %v776_v57, %v775_v56  ;;  %vm618_vm3 = vcmask 7168  }
  0x12   : > { %s490_s24 = scalar_lea.vmem %s7201_s0, %s7217_s14  ;;  %s7222_s30 = smov 113   ;;  %v730_v9 = vsub.s32 7, %v5576_v8  ;;  %v563_v16 = vsub.s32 1, %v5576_v8  ;;  %v530_v27 = vsub.s32 0, %v5576_v8  ;;  %v596_v43 = vsub.s32 2, %v5576_v8 }
  0x13   : > { %v498_v0 = vld [vmem:[%s490_s24 + $0x8] sm:$0xff]  ;;  %v497_v1 = vld [vmem:[%s490_s24] sm:$0xff]  ;;  %v500_v3 = vld [vmem:[%s490_s24 + $0x18] sm:$0xff]  ;;  %s7220_s16 = smov 112   ;;  %s7218_s17 = smov 111   ;;  %v629_v63 = vsub.s32 3, %v5576_v8 }
  0x14   : > { %542 = vrot.lane.b32.xlu0 %v498_v0, %s5431_s25  ;;  %548 = vrot.lane.b32.xlu1 %v497_v1, %s5431_s25  ;;  %v499_v4 = vld [vmem:[%s490_s24 + $0x10] sm:$0xff]  ;;  %v5562_v5 = vpack.c.bf16 %v500_v3, %v498_v0  ;;  %v5592_v12 = vrot.slane %v5589_v11, %v730_v9  ;;  %v5595_v13 = vrot.slane %v5584_v10, %v730_v9  ;;  %vm651_vm4 = vcmask 1039360   ;;  %s7253_s14 = smov 112  }
  0x15   : > { %v5564_v6 = vpack.c.bf16 %v499_v4, %v497_v1  ;;  %v5605_v19 = vrot.slane %v5584_v10, %v563_v16  ;;  %v5608_v20 = vrot.slane %v5589_v11, %v563_v16  ;;  %v5626_v38 = vrot.slane %v5589_v11, %v530_v27 }
  0x16   : > { %v5629_v39 = vrot.slane %v5584_v10, %v530_v27  ;;  %v5649_v58 = vrot.slane %v5589_v11, %v596_v43  ;;  %v5652_v59 = vrot.slane %v5584_v10, %v596_v43  ;;  %v664_v43 = vsub.s32 5, %v5576_v8 }
  0x17   : > { %v697_v57 = vsub.s32 6, %v5576_v8  ;;  %vm684_vm5 = vcmask 924672   ;;  %vm717_vm6 = vcmask 916480   ;;  %vm750_vm7 = vcmask 908288  }
  0x18   : > { %544 = vrot.lane.b32.xlu0 %v500_v3, %s5431_s25  ;;  %550 = vrot.lane.b32.xlu1 %v499_v4, %s5431_s25  ;;  %vm1493_vm12 = vcmask 1045504   ;;  %vm1489_vm13 = vcmask 97280  }
  0x1c   : > { %507 = vrot.lane.b32.xlu0 %v498_v0, %s5432_s26  ;;  %509 = vrot.lane.b32.xlu1 %v500_v3, %s5432_s26 }
  0x20   : > { %515 = vrot.lane.b32.xlu0 %v497_v1, %s5432_s26  ;;  %517 = vrot.lane.b32.xlu1 %v499_v4, %s5432_s26 }
  0x24   : > { %575 = vrot.lane.b32.xlu0 %v498_v0, %s5433_s27  ;;  %577 = vrot.lane.b32.xlu1 %v500_v3, %s5433_s27 }
  0x28   : > { %581 = vrot.lane.b32.xlu0 %v497_v1, %s5433_s27  ;;  %583 = vrot.lane.b32.xlu1 %v499_v4, %s5433_s27 }
  0x2c   : > { %608 = vrot.lane.b32.xlu0 %v498_v0, %s5434_s28  ;;  %610 = vrot.lane.b32.xlu1 %v500_v3, %s5434_s28 }
  0x30   : > { %614 = vrot.lane.b32.xlu0 %v497_v1, %s5434_s28  ;;  %616 = vrot.lane.b32.xlu1 %v499_v4, %s5434_s28 }
  0x34   : > { %643 = vrot.lane.b32.xlu0 %v497_v1, %s7224_s29  ;;  %645 = vrot.lane.b32.xlu1 %v498_v0, %s7224_s29 }
  0x38   : > { %647 = vrot.lane.b32.xlu0 %v499_v4, %s7224_s29  ;;  %649 = vrot.lane.b32.xlu1 %v500_v3, %s7224_s29 }
  0x3c   : > { %676 = vrot.lane.b32.xlu0 %v497_v1, %s7222_s30  ;;  %678 = vrot.lane.b32.xlu1 %v498_v0, %s7222_s30 }
  0x40   : > { %680 = vrot.lane.b32.xlu0 %v499_v4, %s7222_s30  ;;  %682 = vrot.lane.b32.xlu1 %v500_v3, %s7222_s30 }
  0x44   : > { %709 = vrot.lane.b32.xlu0 %v497_v1, %s7220_s16  ;;  %711 = vrot.lane.b32.xlu1 %v498_v0, %s7220_s16 }
  0x48   : > { %713 = vrot.lane.b32.xlu0 %v499_v4, %s7220_s16  ;;  %715 = vrot.lane.b32.xlu1 %v500_v3, %s7220_s16  ;;  %s7254_s16 = smov 111  }
  0x4c   : > { %742 = vrot.lane.b32.xlu0 %v497_v1, %s7218_s17  ;;  %744 = vrot.lane.b32.xlu1 %v498_v0, %s7218_s17 }
  0x50   : > { %746 = vrot.lane.b32.xlu0 %v499_v4, %s7218_s17  ;;  %748 = vrot.lane.b32.xlu1 %v500_v3, %s7218_s17  ;;  %s7327_s17 = sshll.u32 %s7329_s21, 5 }
  0x51   : > { %s495_s22 = scalar_lea.vmem %s7216_s15, %s7327_s17 }
  0x54   : > { %1256 = vperm.xlu0 %5226, %v1252_v14   ;;  %1261 = vperm.xlu1 %5227, %v1253_v15  }
  0x86   : > { %v543_v17 = vpop.permute.xlu0 %542  ;;  %v549_v18 = vpop.permute.xlu1 %548 }
  0x87   : > { %v559_v21 = vsel %vm552_vm0, %v543_v17, %v549_v18  ;;  %v553_v22 = vsel %vm552_vm0, %v549_v18, %v543_v17 }
  0x88   : > { %v570_v28 = vmul.f32 %v5605_v19, %v553_v22  ;;  %v569_v30 = vmul.f32 %v5608_v20, %v559_v21  ;;  %v5665_v22 = vrot.slane %v5584_v10, %v629_v63 }
  0x8a   : > { %v545_v23 = vpop.permute.xlu0 %544  ;;  %v551_v24 = vpop.permute.xlu1 %550 }
  0x8b   : > { %v560_v25 = vsel %vm552_vm0, %v545_v23, %v551_v24  ;;  %v554_v26 = vsel %vm552_vm0, %v551_v24, %v545_v23  ;;  %v5668_v23 = vrot.slane %v5589_v11, %v629_v63 }
  0x8c   : > { %v572_v29 = vmul.f32 %v5605_v19, %v554_v26  ;;  %v571_v31 = vmul.f32 %v5608_v20, %v560_v25 }
  0x8e   : > { %v508_v34 = vpop.permute.xlu0 %507  ;;  %v510_v35 = vpop.permute.xlu1 %509  ;;  %v574_v36 = vpack.c.bf16 %v572_v29, %v570_v28  ;;  %v573_v37 = vpack.c.bf16 %v571_v31, %v569_v30 }
  0x90   : > { %785 = vmatprep.subr.bf16.mxu0 %v574_v36 }
  0x91   : > { %786 = vmatpush1.bf16.msra.mxu0 %v573_v37 }
  0x92   : > { %v516_v41 = vpop.permute.xlu0 %515  ;;  %v518_v42 = vpop.permute.xlu1 %517 }
  0x93   : > { %v520_v44 = vsel %vm519_vm1, %v516_v41, %v508_v34  ;;  %v526_v45 = vsel %vm519_vm1, %v508_v34, %v516_v41  ;;  %v521_v46 = vsel %vm519_vm1, %v518_v42, %v510_v35  ;;  %v527_v47 = vsel %vm519_vm1, %v510_v35, %v518_v42  ;;  %v4948_v34 = vld [vmem:[%s7203_s2 + $0x20] sm:$0xff]  ;;  %v4949_v35 = vld [vmem:[%s7203_s2 + $0x28] sm:$0xff] }
  0x94   : > { %v536_v48 = vmul.f32 %v5626_v38, %v526_v45  ;;  %v537_v49 = vmul.f32 %v5629_v39, %v520_v44  ;;  %v538_v50 = vmul.f32 %v5626_v38, %v527_v47  ;;  %v539_v51 = vmul.f32 %v5629_v39, %v521_v46  ;;  %4946 = vmatmul.mubr.msk.bf16.vlgmr.msra.gmra.mrb[0].mxu0 %vm552_vm0, %v781_v40 }
  0x95   : > { %863 = vmatprep.mubr.bf16.mxu0 %v5430_v2  ;;  %v877_v41 = vpack.c.bf16 %v4949_v35, %v4948_v34  ;;  %v5689_v46 = vrot.slane %v5584_v10, %v664_v43  ;;  %v4958_v34 = vld [vmem:[%s7203_s2 + $0x58] sm:$0xff] }
  0x96   : > { %v540_v52 = vpack.c.bf16 %v538_v50, %v536_v48  ;;  %v541_v53 = vpack.c.bf16 %v539_v51, %v537_v49  ;;  %v576_v54 = vpop.permute.xlu0 %575  ;;  %v578_v55 = vpop.permute.xlu1 %577  ;;  %v4951_v49 = vld [vmem:[%s7203_s2 + $0x30] sm:$0xff]  ;;  %v4952_v50 = vld [vmem:[%s7203_s2 + $0x38] sm:$0xff] }
  0x98   : > { %831 = vmatprep.subr.bf16.mxu0 %v541_v53 }
  0x99   : > { %832 = vmatpush1.bf16.msra.mxu0 %v540_v52 }
  0x9a   : > { %v582_v60 = vpop.permute.xlu0 %581  ;;  %v584_v61 = vpop.permute.xlu1 %583 }
  0x9b   : > { %v586_v0 = vsel %vm585_vm2, %v582_v60, %v576_v54  ;;  %v592_v1 = vsel %vm585_vm2, %v576_v54, %v582_v60  ;;  %v587_v3 = vsel %vm585_vm2, %v584_v61, %v578_v55  ;;  %v593_v4 = vsel %vm585_vm2, %v578_v55, %v584_v61 }
  0x9c   : > { %v602_v7 = vmul.f32 %v5649_v58, %v592_v1  ;;  %v603_v9 = vmul.f32 %v5652_v59, %v586_v0  ;;  %v604_v14 = vmul.f32 %v5649_v58, %v593_v4  ;;  %v605_v15 = vmul.f32 %v5652_v59, %v587_v3 }
  0x9d   : > { %v931_v55 = vpack.c.bf16 %v4952_v50, %v4951_v49  ;;  %v5712_v1 = vrot.slane %v5584_v10, %v697_v57  ;;  %v5752_v49 = vld [vmem:[%s7202_s1 + $0x18] ss:$0 sm:$0xff] }
  0x9e   : > { %v606_v16 = vpack.c.bf16 %v604_v14, %v602_v7  ;;  %v607_v17 = vpack.c.bf16 %v605_v15, %v603_v9  ;;  %v609_v18 = vpop.permute.xlu0 %608  ;;  %v611_v21 = vpop.permute.xlu1 %610  ;;  %v4954_v9 = vld [vmem:[%s7203_s2 + $0x40] sm:$0xff]  ;;  %v4955_v14 = vld [vmem:[%s7203_s2 + $0x48] sm:$0xff] }
  0xa0   : > { %4947 = vmatmul.mubr.msk.bf16.vlgmr.msra.gmra.mrb[0].mxu0 %vm552_vm0, %v777_v62  ;;  %881 = vmatprep.subr.bf16.mxu0 %v607_v17  ;;  %v5705_v62 = vrot.slane %v5589_v11, %v664_v43 }
  0xa1   : > { %882 = vmatpush1.bf16.msra.mxu0 %v606_v16  ;;  %913 = vmatprep.mubr.bf16.mxu0 %v5430_v2 }
  0xa2   : > { %v615_v24 = vpop.permute.xlu0 %614  ;;  %v617_v25 = vpop.permute.xlu1 %616 }
  0xa3   : > { %v619_v26 = vsel %vm618_vm3, %v615_v24, %v609_v18  ;;  %v625_v27 = vsel %vm618_vm3, %v609_v18, %v615_v24  ;;  %v620_v28 = vsel %vm618_vm3, %v617_v25, %v611_v21  ;;  %v626_v29 = vsel %vm618_vm3, %v611_v21, %v617_v25 }
  0xa4   : > { %v636_v30 = vmul.f32 %v5665_v22, %v619_v26  ;;  %v638_v31 = vmul.f32 %v5665_v22, %v620_v28  ;;  %v635_v32 = vmul.f32 %v5668_v23, %v625_v27  ;;  %v637_v33 = vmul.f32 %v5668_v23, %v626_v29 }
  0xa5   : > { %v985_v18 = vpack.c.bf16 %v4955_v14, %v4954_v9  ;;  %v5728_v27 = vrot.slane %v5589_v11, %v697_v57  ;;  %v4957_v11 = vld [vmem:[%s7203_s2 + $0x50] sm:$0xff]  ;;  %v4964_v14 = vld [vmem:[%s7203_s2 + $0x78] sm:$0xff] }
  0xa6   : > { %v640_v36 = vpack.c.bf16 %v638_v31, %v636_v30  ;;  %v644_v37 = vpop.permute.xlu0 %643  ;;  %v646_v40 = vpop.permute.xlu1 %645  ;;  %v639_v42 = vpack.c.bf16 %v637_v33, %v635_v32  ;;  %v4963_v9 = vld [vmem:[%s7203_s2 + $0x70] sm:$0xff] }
  0xa7   : > { %v660_v47 = vsel %vm651_vm4, %v646_v40, %v644_v37  ;;  %v652_v63 = vsel %vm651_vm4, %v644_v37, %v646_v40 }
  0xa8   : > { %935 = vmatprep.subr.bf16.mxu0 %v640_v36  ;;  %v671_v51 = vmul.f32 %v5689_v46, %v660_v47  ;;  %v670_v4 = vmul.f32 %v5705_v62, %v652_v63 }
  0xaa   : > { %v648_v44 = vpop.permute.xlu0 %647  ;;  %v650_v45 = vpop.permute.xlu1 %649 }
  0xab   : > { %v661_v48 = vsel %vm651_vm4, %v650_v45, %v648_v44  ;;  %v653_v0 = vsel %vm651_vm4, %v648_v44, %v650_v45 }
  0xac   : > { %4950 = vmatmul.mubr.msk.bf16.vlgmr.msra.gmra.mrb[0].mxu0 %vm552_vm0, %v877_v41  ;;  %v673_v52 = vmul.f32 %v5689_v46, %v661_v48  ;;  %v672_v7 = vmul.f32 %v5705_v62, %v653_v0  ;;  %v1039_v41 = vpack.c.bf16 %v4958_v34, %v4957_v11  ;;  %v5771_v0 = vld [vmem:[%s7202_s1 + $0x10] ss:$0 sm:$0xff] }
  0xad   : > { %936 = vmatpush1.bf16.msra.mxu0 %v639_v42  ;;  %967 = vmatprep.mubr.bf16.mxu0 %v5430_v2 }
  0xae   : > { %989 = vmatprep.subr.bf16.mxu0 %v5562_v5  ;;  %v677_v53 = vpop.permute.xlu0 %676  ;;  %v679_v54 = vpop.permute.xlu1 %678  ;;  %v675_v56 = vpack.c.bf16 %v673_v52, %v671_v51  ;;  %v674_v21 = vpack.c.bf16 %v672_v7, %v670_v4 }
  0xaf   : > { %v693_v8 = vsel %vm684_vm5, %v679_v54, %v677_v53  ;;  %v685_v28 = vsel %vm684_vm5, %v677_v53, %v679_v54  ;;  %v4960_v54 = vld [vmem:[%s7203_s2 + $0x60] sm:$0xff] }
  0xb0   : > { %v704_v15 = vmul.f32 %v5712_v1, %v693_v8  ;;  %v703_v32 = vmul.f32 %v5728_v27, %v685_v28 }
  0xb2   : > { %v681_v60 = vpop.permute.xlu0 %680  ;;  %v683_v61 = vpop.permute.xlu1 %682 }
  0xb3   : > { %v694_v3 = vsel %vm684_vm5, %v683_v61, %v681_v60  ;;  %v686_v29 = vsel %vm684_vm5, %v681_v60, %v683_v61 }
  0xb4   : > { %v706_v10 = vmul.f32 %v5712_v1, %v694_v3  ;;  %v705_v33 = vmul.f32 %v5728_v27, %v686_v29 }
  0xb6   : > { %v710_v16 = vpop.permute.xlu0 %709  ;;  %v712_v17 = vpop.permute.xlu1 %711  ;;  %v708_v24 = vpack.c.bf16 %v706_v10, %v704_v15  ;;  %v707_v42 = vpack.c.bf16 %v705_v33, %v703_v32  ;;  %v1147_v15 = vpack.c.bf16 %v4964_v14, %v4963_v9 }
  0xb7   : > { %v726_v30 = vsel %vm717_vm6, %v712_v17, %v710_v16  ;;  %v718_v47 = vsel %vm717_vm6, %v710_v16, %v712_v17  ;;  %v4966_v16 = vld [vmem:[%s7203_s2 + $0x80] sm:$0xff]  ;;  %v4967_v17 = vld [vmem:[%s7203_s2 + $0x88] sm:$0xff] }
  0xb8   : > { %4953 = vmatmul.mubr.msk.bf16.vlgmr.msra.gmra.mrb[0].mxu0 %vm552_vm0, %v931_v55  ;;  %v737_v35 = vmul.f32 %v5595_v13, %v726_v30  ;;  %v736_v52 = vmul.f32 %v5592_v12, %v718_v47  ;;  %v4961_v55 = vld [vmem:[%s7203_s2 + $0x68] sm:$0xff] }
  0xb9   : > { %990 = vmatpush1.bf16.msra.mxu0 %v5564_v6  ;;  %1021 = vmatprep.mubr.bf16.mxu0 %v5430_v2  ;;  %v1093_v60 = vpack.c.bf16 %v4961_v55, %v4960_v54  ;;  %v2048_v47 = vld [vmem:[%s7206_s5 + $0x8] sm:$0xff] }
  0xba   : > { %1043 = vmatprep.subr.bf16.mxu0 %v675_v56  ;;  %v714_v25 = vpop.permute.xlu0 %713  ;;  %v716_v26 = vpop.permute.xlu1 %715 }
  0xbb   : > { %v727_v31 = vsel %vm717_vm6, %v716_v26, %v714_v25  ;;  %v719_v48 = vsel %vm717_vm6, %v714_v25, %v716_v26 }
  0xbc   : > { %v739_v36 = vmul.f32 %v5595_v13, %v727_v31  ;;  %v738_v53 = vmul.f32 %v5592_v12, %v719_v48 }
  0xbe   : > { %v743_v37 = vpop.permute.xlu0 %742  ;;  %v745_v40 = vpop.permute.xlu1 %744  ;;  %v741_v43 = vpack.c.bf16 %v739_v36, %v737_v35  ;;  %v740_v61 = vpack.c.bf16 %v738_v53, %v736_v52 }
  0xbf   : > { %v759_v50 = vsel %vm750_vm7, %v745_v40, %v743_v37  ;;  %v751_v8 = vsel %vm750_vm7, %v743_v37, %v745_v40 }
  0xc0   : > { %v770_v56 = vmul.f32 %v5752_v49, %v759_v50  ;;  %v769_v4 = vmul.f32 %v5771_v0, %v751_v8 }
  0xc2   : > { %v747_v44 = vpop.permute.xlu0 %746  ;;  %v749_v45 = vpop.permute.xlu1 %748 }
  0xc3   : > { %v760_v51 = vsel %vm750_vm7, %v749_v45, %v747_v44  ;;  %v752_v3 = vsel %vm750_vm7, %v747_v44, %v749_v45  ;;  %v2047_v45 = vld [vmem:[%s7206_s5] sm:$0xff] }
  0xc4   : > { %4956 = vmatmul.mubr.msk.bf16.vlgmr.msra.gmra.mrb[0].mxu0 %vm552_vm0, %v985_v18  ;;  %v772_v57 = vmul.f32 %v5752_v49, %v760_v51  ;;  %v771_v7 = vmul.f32 %v5771_v0, %v752_v3  ;;  %v1201_v18 = vpack.c.bf16 %v4967_v17, %v4966_v16 }
  0xc5   : > { %1044 = vmatpush1.bf16.msra.mxu0 %v674_v21  ;;  %1075 = vmatprep.mubr.bf16.mxu0 %v5430_v2 }
  0xc6   : > { %1097 = vmatprep.subr.bf16.mxu0 %v708_v24  ;;  %v774_v63 = vpack.c.bf16 %v772_v57, %v770_v56  ;;  %v773_v10 = vpack.c.bf16 %v771_v7, %v769_v4 }
  0xd0   : > { %4959 = vmatmul.mubr.msk.bf16.vlgmr.msra.gmra.mrb[0].mxu0 %vm552_vm0, %v1039_v41 }
  0xd1   : > { %1098 = vmatpush1.bf16.msra.mxu0 %v707_v42  ;;  %1129 = vmatprep.mubr.bf16.mxu0 %v5430_v2 }
  0xd2   : > { %1151 = vmatprep.subr.bf16.mxu0 %v741_v43 }
  0xd3   : > { %v1257_v21 = vpop.permute.xlu0 %1256  ;;  %v1262_v25 = vpop.permute.xlu1 %1261 }
  0xdc   : > { %4962 = vmatmul.mubr.msk.bf16.vlgmr.msra.gmra.mrb[0].mxu0 %vm552_vm0, %v1093_v60 }
  0xdd   : > { %1152 = vmatpush1.bf16.msra.mxu0 %v740_v61  ;;  %1183 = vmatprep.mubr.bf16.mxu0 %v5430_v2 }
  0xde   : > { %1205 = vmatprep.subr.bf16.mxu0 %v774_v63 }
  0xe8   : > { %4965 = vmatmul.mubr.msk.bf16.vlgmr.msra.gmra.mrb[0].mxu0 %vm552_vm0, %v1147_v15 }
  0xe9   : > { %1206 = vmatpush1.bf16.msra.mxu0 %v773_v10  ;;  %1237 = vmatprep.mubr.bf16.mxu0 %v5430_v2 }
  0xf4   : > { %4968 = vmatmul.mubr.msk.bf16.vlgmr.msra.gmra.mrb[0].mxu0 %vm552_vm0, %v1201_v18  ;;  %v4969_v18 = vld [vmem:[%s7205_s4 + $0x10] sm:$0xff] }
  0xf5   : > { %1532 = vmatprep.mubr.bf16.mxu0 %v5430_v2 }
 0x1c7   : > { %v1239_v24 = vpop.f32.mrb[0].mxu0 }
 0x1c8   : > { %v1264_v26 = vadd.f32 %v1257_v21, %v1239_v24  ;;  %v1241_v28 = vpop.f32.mrb[1].mxu0 }
 0x1c9   : > { %v1265_v29 = vadd.f32 %v1257_v21, %v1241_v28  ;;  %v1243_v30 = vpop.f32.mrb[2].mxu0  ;;  %v4970_v21 = vld [vmem:[%s7205_s4 + $0x18] sm:$0xff] }
 0x1ca   : > { %vm1268_vm8 = vcmp.ge.f32.partialorder %v1264_v26, 0.0  ;;  %v1272_v31 = vmul.f32 0.05, %v1264_v26  ;;  %v1266_v32 = vadd.f32 %v1262_v25, %v1243_v30  ;;  %v1245_v33 = vpop.f32.mrb[3].mxu0 }
 0x1cb   : > { %vm1269_vm9 = vcmp.ge.f32.partialorder %v1265_v29, 0.0  ;;  %v1273_v11 = vmul.f32 0.05, %v1265_v29  ;;  %v1267_v34 = vadd.f32 %v1262_v25, %v1245_v33 }
 0x1cc   : > { %v5793_v35 = vsel %vm1268_vm8, %v1264_v26, %v1272_v31  ;;  %vm1270_vm10 = vcmp.ge.f32.partialorder %v1266_v32, 0.0  ;;  %v1274_v36 = vmul.f32 0.05, %v1266_v32 }
 0x1cd   : > { %v5795_v37 = vsel %vm1269_vm9, %v1265_v29, %v1273_v11  ;;  %vm1271_vm11 = vcmp.ge.f32.partialorder %v1267_v34, 0.0  ;;  %v1275_v40 = vmul.f32 0.05, %v1267_v34  ;;  %1314 = vrot.lane.b32.xlu1 %v5793_v35, %s5431_s25 }
 0x1ce   : > { %v5799_v41 = vsel %vm1270_vm10, %v1266_v32, %v1274_v36  ;;  %1384 = vrot.lane.b32.xlu0 %v5795_v37, %s7224_s29  ;;  %v1484_v32 = vpack.c.bf16 %v4970_v21, %v4969_v18  ;;  %v1479_v21 = vld [vmem:[%s7205_s4 + $0x8] sm:$0xff]  ;;  %vm3615_vm10 = vcmask 1041408  }
 0x1cf   : > { %v5803_v42 = vsel %vm1271_vm11, %v1267_v34, %v1275_v40  ;;  %v1380_v43 = vpack.c.bf16 %v5799_v41, %v5793_v35  ;;  %vm3611_vm11 = vcmask 31744  }
 0x1d0   : > { %v1381_v44 = vpack.c.bf16 %v5803_v42, %v5795_v37 }
 0x1d1   : > { %1290 = vrot.lane.b32.xlu1 %v5793_v35, %s5432_s26 }
 0x1d2   : > { %1316 = vrot.lane.b32.xlu0 %v5799_v41, %s5431_s25 }
 0x1d5   : > { %1382 = vrot.lane.b32.xlu1 %v5793_v35, %s7224_s29 }
 0x1d6   : > { %1292 = vrot.lane.b32.xlu0 %v5799_v41, %s5432_s26 }
 0x1d9   : > { %1338 = vrot.lane.b32.xlu1 %v5793_v35, %s5433_s27 }
 0x1da   : > { %1340 = vrot.lane.b32.xlu0 %v5799_v41, %s5433_s27 }
 0x1dd   : > { %1308 = vrot.lane.b32.xlu1 %v5795_v37, %s5431_s25 }
 0x1de   : > { %1310 = vrot.lane.b32.xlu0 %v5803_v42, %s5431_s25 }
 0x1e1   : > { %1282 = vrot.lane.b32.xlu1 %v5795_v37, %s5432_s26 }
 0x1e2   : > { %1408 = vrot.lane.b32.xlu0 %v5795_v37, %s7222_s30 }
 0x1e5   : > { %1332 = vrot.lane.b32.xlu1 %v5795_v37, %s5433_s27 }
 0x1e6   : > { %1284 = vrot.lane.b32.xlu0 %v5803_v42, %s5432_s26 }
 0x1e9   : > { %1386 = vrot.lane.b32.xlu1 %v5799_v41, %s7224_s29 }
 0x1ea   : > { %1388 = vrot.lane.b32.xlu0 %v5803_v42, %s7224_s29  ;;  %s7255_s29 = smov 127  }
 0x1ed   : > { %1406 = vrot.lane.b32.xlu1 %v5793_v35, %s7222_s30 }
 0x1ee   : > { %1364 = vrot.lane.b32.xlu0 %v5799_v41, %s5434_s28 }
 0x1f1   : > { %1410 = vrot.lane.b32.xlu1 %v5799_v41, %s7222_s30 }
 0x1f2   : > { %1334 = vrot.lane.b32.xlu0 %v5803_v42, %s5433_s27 }
 0x1f5   : > { %1356 = vrot.lane.b32.xlu1 %v5795_v37, %s5434_s28 }
 0x1f6   : > { %1412 = vrot.lane.b32.xlu0 %v5803_v42, %s7222_s30  ;;  %s7256_s30 = smov 113  }
 0x1f9   : > { %1362 = vrot.lane.b32.xlu1 %v5793_v35, %s5434_s28 }
 0x1fa   : > { %1432 = vrot.lane.b32.xlu0 %v5795_v37, %s7253_s14 }
 0x1fd   : > { %1430 = vrot.lane.b32.xlu1 %v5793_v35, %s7253_s14 }
 0x1fe   : > { %1358 = vrot.lane.b32.xlu0 %v5803_v42, %s5434_s28 }
 0x201   : > { %1434 = vrot.lane.b32.xlu1 %v5799_v41, %s7253_s14 }
 0x202   : > { %1436 = vrot.lane.b32.xlu0 %v5803_v42, %s7253_s14 }
 0x205   : > { %1454 = vrot.lane.b32.xlu1 %v5793_v35, %s7254_s16 }
 0x206   : > { %1456 = vrot.lane.b32.xlu0 %v5795_v37, %s7254_s16 }
 0x209   : > { %1458 = vrot.lane.b32.xlu1 %v5799_v41, %s7254_s16 }
 0x20a   : > { %1460 = vrot.lane.b32.xlu0 %v5803_v42, %s7254_s16  ;;  %v4996_v42 = vld [vmem:[%s7205_s4 + $0x78] sm:$0xff] }
 0x20d   : > { %2051 = vperm.xlu1 %5227, %v2047_v45  }
 0x20e   : > { %2056 = vperm.xlu0 %5226, %v2048_v47  }
 0x23f   : > { %v1315_v48 = vpop.permute.xlu1 %1314 }
 0x240   : > { %v1385_v50 = vpop.permute.xlu0 %1384 }
 0x243   : > { %v1291_v51 = vpop.permute.xlu1 %1290 }
 0x244   : > { %v1317_v52 = vpop.permute.xlu0 %1316 }
 0x247   : > { %v1383_v53 = vpop.permute.xlu1 %1382 }
 0x248   : > { %v1293_v54 = vpop.permute.xlu0 %1292  ;;  %v1398_v33 = vsel %vm651_vm4, %v1385_v50, %v1383_v53 }
 0x24b   : > { %v5875_v55 = vpop.permute.xlu1 %1338 }
 0x24c   : > { %v5877_v56 = vpop.permute.xlu0 %1340 }
 0x24f   : > { %v1309_v57 = vpop.permute.xlu1 %1308 }
 0x250   : > { %v1318_v60 = vsel %vm552_vm0, %v1315_v48, %v1309_v57  ;;  %v1324_v61 = vsel %vm552_vm0, %v1309_v57, %v1315_v48  ;;  %v1311_v63 = vpop.permute.xlu0 %1310 }
 0x251   : > { %v1326_v8 = vmul.f32 %v1324_v61, %v5608_v20  ;;  %v1327_v3 = vmul.f32 %v1318_v60, %v5605_v19  ;;  %v1319_v4 = vsel %vm552_vm0, %v1317_v52, %v1311_v63  ;;  %v1325_v7 = vsel %vm552_vm0, %v1311_v63, %v1317_v52 }
 0x252   : > { %v1328_v9 = vmul.f32 %v1325_v7, %v5608_v20  ;;  %v1329_v14 = vmul.f32 %v1319_v4, %v5605_v19  ;;  %v1401_v63 = vmul.f32 %v1398_v33, %v5689_v46 }
 0x253   : > { %v1283_v15 = vpop.permute.xlu1 %1282 }
 0x254   : > { %v1330_v10 = vpack.c.bf16 %v1328_v9, %v1326_v8  ;;  %v1331_v16 = vpack.c.bf16 %v1329_v14, %v1327_v3  ;;  %v5887_v17 = vpop.permute.xlu0 %1408  ;;  %v1294_v26 = vsel %vm519_vm1, %v1291_v51, %v1283_v15  ;;  %v1300_v28 = vsel %vm519_vm1, %v1283_v15, %v1291_v51 }
 0x255   : > { %v1302_v36 = vmul.f32 %v1300_v28, %v5626_v38  ;;  %v1303_v40 = vmul.f32 %v1294_v26, %v5629_v39  ;;  %v1390_v51 = vsel %vm651_vm4, %v1383_v53, %v1385_v50 }
 0x256   : > { %v1487_v24 = vrot.slane %v1330_v10, 2  ;;  %v1488_v25 = vrot.slane %v1331_v16, 2  ;;  %v1400_v50 = vmul.f32 %v1390_v51, %v5705_v62  ;;  %v1478_v10 = vld [vmem:[%s7205_s4] sm:$0xff] }
 0x257   : > { %v1333_v29 = vpop.permute.xlu1 %1332 }
 0x258   : > { %4971 = vmatprep.subr.msk.bf16.mxu0 %vm1493_vm12, %v1488_v25  ;;  %v1285_v30 = vpop.permute.xlu0 %1284  ;;  %v1495_v31 = vsel %vm1493_vm12, %v1487_v24, 0  ;;  %v1348_v16 = vsel %vm585_vm2, %v1333_v29, %v5875_v55  ;;  %v4987_v24 = vld [vmem:[%s7205_s4 + $0x50] sm:$0xff]  ;;  %v4988_v25 = vld [vmem:[%s7205_s4 + $0x58] sm:$0xff]  ;;  %v1342_v28 = vsel %vm585_vm2, %v5875_v55, %v1333_v29 }
 0x259   : > { %v1295_v11 = vsel %vm519_vm1, %v1293_v54, %v1285_v30  ;;  %v1301_v34 = vsel %vm519_vm1, %v1285_v30, %v1293_v54  ;;  %1501 = vmatpush1.bf16.msra.mxu0 %v1495_v31  ;;  %v1351_v29 = vmul.f32 %v1342_v28, %v5652_v59 }
 0x25a   : > { %v1304_v45 = vmul.f32 %v1301_v34, %v5626_v38  ;;  %v1305_v47 = vmul.f32 %v1295_v11, %v5629_v39  ;;  %v1480_v11 = vpack.c.bf16 %v1479_v21, %v1478_v10  ;;  %v1794_v34 = vpack.c.bf16 %v4988_v25, %v4987_v24  ;;  %v4975_v10 = vld [vmem:[%s7205_s4 + $0x20] sm:$0xff]  ;;  %v4992_v24 = vld [vmem:[%s7205_s4 + $0x68] sm:$0xff] }
 0x25b   : > { %v1387_v48 = vpop.permute.xlu1 %1386  ;;  %v4991_v21 = vld [vmem:[%s7205_s4 + $0x60] sm:$0xff] }
 0x25c   : > { %v1306_v52 = vpack.c.bf16 %v1304_v45, %v1302_v36  ;;  %v1307_v57 = vpack.c.bf16 %v1305_v47, %v1303_v40  ;;  %4972 = vmatmul.mubr.msk.bf16.vlgmr.msra.gmra.mrb[4].mxu0 %vm1489_vm13, %v1484_v32  ;;  %v1389_v60 = vpop.permute.xlu0 %1388  ;;  %v1350_v32 = vmul.f32 %v1348_v16, %v5649_v58 }
 0x25d   : > { %v1391_v54 = vsel %vm651_vm4, %v1387_v48, %v1389_v60  ;;  %v1399_v61 = vsel %vm651_vm4, %v1389_v60, %v1387_v48  ;;  %1588 = vmatprep.mubr.bf16.mxu0 %v5430_v2 }
 0x25e   : > { %v1545_v8 = vrot.slane %v1306_v52, 2  ;;  %v1546_v3 = vrot.slane %v1307_v57, 2  ;;  %v1402_v4 = vmul.f32 %v1391_v54, %v5705_v62  ;;  %v1403_v7 = vmul.f32 %v1399_v61, %v5689_v46 }
 0x25f   : > { %v1407_v53 = vpop.permute.xlu1 %1406 }
 0x260   : > { %4973 = vmatprep.subr.msk.bf16.mxu0 %vm1493_vm12, %v1546_v3  ;;  %v5916_v9 = vpop.permute.xlu0 %1364  ;;  %v1551_v14 = vsel %vm1493_vm12, %v1545_v8, 0  ;;  %v1405_v15 = vpack.c.bf16 %v1403_v7, %v1401_v63  ;;  %v1404_v18 = vpack.c.bf16 %v1402_v4, %v1400_v50  ;;  %v1414_v36 = vsel %vm684_vm5, %v1407_v53, %v5887_v17 }
 0x261   : > { %1557 = vmatpush1.bf16.msra.mxu0 %v1551_v14  ;;  %v1422_v47 = vsel %vm684_vm5, %v5887_v17, %v1407_v53  ;;  %v1424_v57 = vmul.f32 %v1414_v36, %v5728_v27 }
 0x262   : > { %v1798_v26 = vrot.slane %v1405_v15, 2  ;;  %v1797_v31 = vrot.slane %v1404_v18, 2  ;;  %v1425_v61 = vmul.f32 %v1422_v47, %v5712_v1  ;;  %v4976_v18 = vld [vmem:[%s7205_s4 + $0x28] sm:$0xff] }
 0x263   : > { %v1411_v30 = vpop.permute.xlu1 %1410 }
 0x264   : > { %4989 = vmatprep.subr.msk.bf16.mxu1 %vm1493_vm12, %v1798_v26  ;;  %v1335_v33 = vpop.permute.xlu0 %1334  ;;  %v1803_v55 = vsel %vm1493_vm12, %v1797_v31, 0 }
 0x265   : > { %v1343_v40 = vsel %vm585_vm2, %v5877_v56, %v1335_v33  ;;  %v1349_v45 = vsel %vm585_vm2, %v1335_v33, %v5877_v56  ;;  %1809 = vmatpush1.bf16.msra.mxu1 %v1803_v55 }
 0x266   : > { %v1352_v48 = vmul.f32 %v1349_v45, %v5649_v58  ;;  %v1353_v51 = vmul.f32 %v1343_v40, %v5652_v59 }
 0x267   : > { %v1357_v52 = vpop.permute.xlu1 %1356 }
 0x268   : > { %v1354_v60 = vpack.c.bf16 %v1352_v48, %v1350_v32  ;;  %v1355_v54 = vpack.c.bf16 %v1353_v51, %v1351_v29  ;;  %4974 = vmatmul.mubr.msk.bf16.vlgmr.msra.gmra.mrb[4].mxu0 %vm1489_vm13, %v1480_v11  ;;  %v1413_v56 = vpop.permute.xlu0 %1412  ;;  %4990 = vmatmul.mubr.msk.bf16.vlgmr.msra.gmra.mrb[0].mxu1 %vm1489_vm13, %v1794_v34  ;;  %v1602_v11 = vpack.c.bf16 %v4976_v18, %v4975_v10  ;;  %v1734_v10 = vrot.slane %v1381_v44, 2  ;;  %v4980_v18 = vld [vmem:[%s7205_s4 + $0x38] sm:$0xff] }
 0x269   : > { %v1415_v63 = vsel %vm684_vm5, %v1411_v30, %v1413_v56  ;;  %v1423_v17 = vsel %vm684_vm5, %v1413_v56, %v1411_v30  ;;  %1648 = vmatprep.mubr.bf16.mxu0 %v5430_v2  ;;  %1904 = vmatprep.mubr.bf16.mxu1 %v5430_v2  ;;  %v1858_v34 = vpack.c.bf16 %v4992_v24, %v4991_v21 }
 0x26a   : > { %v1605_v8 = vrot.slane %v1354_v60, 2  ;;  %v1606_v3 = vrot.slane %v1355_v54, 2  ;;  %v1426_v4 = vmul.f32 %v1415_v63, %v5728_v27  ;;  %v1427_v7 = vmul.f32 %v1423_v17, %v5712_v1 }
 0x26b   : > { %v1363_v50 = vpop.permute.xlu1 %1362 }
 0x26c   : > { %v1428_v53 = vpack.c.bf16 %v1426_v4, %v1424_v57  ;;  %v1429_v14 = vpack.c.bf16 %v1427_v7, %v1425_v61  ;;  %4977 = vmatprep.subr.msk.bf16.mxu0 %vm1493_vm12, %v1606_v3  ;;  %v1433_v15 = vpop.permute.xlu0 %1432  ;;  %v1611_v16 = vsel %vm1493_vm12, %v1605_v8, 0  ;;  %v1372_v28 = vsel %vm618_vm3, %v1357_v52, %v1363_v50 }
 0x26d   : > { %1617 = vmatpush1.bf16.msra.mxu0 %v1611_v16  ;;  %v1366_v30 = vsel %vm618_vm3, %v1363_v50, %v1357_v52  ;;  %v1374_v36 = vmul.f32 %v1372_v28, %v5668_v23  ;;  %v4979_v16 = vld [vmem:[%s7205_s4 + $0x30] sm:$0xff] }
 0x26e   : > { %v1861_v25 = vrot.slane %v1428_v53, 2  ;;  %v1862_v26 = vrot.slane %v1429_v14, 2  ;;  %v1375_v29 = vmul.f32 %v1366_v30, %v5665_v22 }
 0x26f   : > { %v1431_v31 = vpop.permute.xlu1 %1430 }
 0x270   : > { %4993 = vmatprep.subr.msk.bf16.mxu1 %vm1493_vm12, %v1862_v26  ;;  %v1359_v32 = vpop.permute.xlu0 %1358  ;;  %v1867_v33 = vsel %vm1493_vm12, %v1861_v25, 0  ;;  %v1438_v40 = vsel %vm717_vm6, %v1431_v31, %v1433_v15  ;;  %v1446_v47 = vsel %vm717_vm6, %v1433_v15, %v1431_v31  ;;  %v4995_v25 = vld [vmem:[%s7205_s4 + $0x70] sm:$0xff] }
 0x271   : > { %v1367_v45 = vsel %vm618_vm3, %v5916_v9, %v1359_v32  ;;  %v1373_v55 = vsel %vm618_vm3, %v1359_v32, %v5916_v9  ;;  %1873 = vmatpush1.bf16.msra.mxu1 %v1867_v33  ;;  %v1448_v57 = vmul.f32 %v1438_v40, %v5592_v12  ;;  %v1449_v61 = vmul.f32 %v1446_v47, %v5595_v13 }
 0x272   : > { %v1376_v48 = vmul.f32 %v1373_v55, %v5668_v23  ;;  %v1377_v51 = vmul.f32 %v1367_v45, %v5665_v22  ;;  %v1666_v32 = vpack.c.bf16 %v4980_v18, %v4979_v16  ;;  %v1733_v33 = vrot.slane %v1380_v43, 2 }
 0x273   : > { %v1435_v52 = vpop.permute.xlu1 %1434 }
 0x274   : > { %v1378_v60 = vpack.c.bf16 %v1376_v48, %v1374_v36  ;;  %v1379_v54 = vpack.c.bf16 %v1377_v51, %v1375_v29  ;;  %4978 = vmatmul.mubr.msk.bf16.vlgmr.msra.gmra.mrb[4].mxu0 %vm1489_vm13, %v1602_v11  ;;  %v1437_v56 = vpop.permute.xlu0 %1436  ;;  %4994 = vmatmul.mubr.msk.bf16.vlgmr.msra.gmra.mrb[0].mxu1 %vm1489_vm13, %v1858_v34  ;;  %v1922_v36 = vpack.c.bf16 %v4996_v42, %v4995_v25  ;;  %v1739_v41 = vsel %vm1493_vm12, %v1733_v33, 0 }
 0x275   : > { %v1439_v9 = vsel %vm717_vm6, %v1435_v52, %v1437_v56  ;;  %v1447_v63 = vsel %vm717_vm6, %v1437_v56, %v1435_v52  ;;  %1712 = vmatprep.mubr.bf16.mxu0 %v5430_v2  ;;  %1968 = vmatprep.mubr.bf16.mxu1 %v5430_v2  ;;  %v4984_v52 = vld [vmem:[%s7205_s4 + $0x48] sm:$0xff] }
 0x276   : > { %v1669_v17 = vrot.slane %v1378_v60, 2  ;;  %v1670_v8 = vrot.slane %v1379_v54, 2  ;;  %v1450_v3 = vmul.f32 %v1439_v9, %v5592_v12  ;;  %v1451_v4 = vmul.f32 %v1447_v63, %v5595_v13  ;;  %v5000_v60 = vld [vmem:[%s7205_s4 + $0x88] sm:$0xff] }
 0x277   : > { %v1455_v7 = vpop.permute.xlu1 %1454 }
 0x278   : > { %v1452_v50 = vpack.c.bf16 %v1450_v3, %v1448_v57  ;;  %v1453_v53 = vpack.c.bf16 %v1451_v4, %v1449_v61  ;;  %4981 = vmatprep.subr.msk.bf16.mxu0 %vm1493_vm12, %v1670_v8  ;;  %v1457_v14 = vpop.permute.xlu0 %1456  ;;  %v1675_v15 = vsel %vm1493_vm12, %v1669_v17, 0  ;;  %v4999_v57 = vld [vmem:[%s7205_s4 + $0x80] sm:$0xff] }
 0x279   : > { %1681 = vmatpush1.bf16.msra.mxu0 %v1675_v15  ;;  %v1462_v44 = vsel %vm750_vm7, %v1455_v7, %v1457_v14  ;;  %v1470_v26 = vsel %vm750_vm7, %v1457_v14, %v1455_v7  ;;  %v1986_v56 = vpack.c.bf16 %v5000_v60, %v4999_v57 }
 0x27a   : > { %v1925_v21 = vrot.slane %v1452_v50, 2  ;;  %v1926_v24 = vrot.slane %v1453_v53, 2  ;;  %4985 = vmatprep.subr.msk.bf16.mxu0 %vm1493_vm12, %v1734_v10  ;;  %v1472_v40 = vmul.f32 %v5771_v0, %v1462_v44  ;;  %v1473_v45 = vmul.f32 %v5752_v49, %v1470_v26 }
 0x27b   : > { %v1459_v28 = vpop.permute.xlu1 %1458 }
 0x27c   : > { %4997 = vmatprep.subr.msk.bf16.mxu1 %vm1493_vm12, %v1926_v24  ;;  %v1461_v30 = vpop.permute.xlu0 %1460  ;;  %v1931_v31 = vsel %vm1493_vm12, %v1925_v21, 0 }
 0x27d   : > { %v1463_v11 = vsel %vm750_vm7, %v1459_v28, %v1461_v30  ;;  %v1471_v34 = vsel %vm750_vm7, %v1461_v30, %v1459_v28  ;;  %1937 = vmatpush1.bf16.msra.mxu1 %v1931_v31 }
 0x27e   : > { %v1474_v55 = vmul.f32 %v5771_v0, %v1463_v11  ;;  %v1475_v29 = vmul.f32 %v5752_v49, %v1471_v34  ;;  %v4983_v49 = vld [vmem:[%s7205_s4 + $0x40] sm:$0xff] }
 0x27f   : > { %v1730_v54 = vpack.c.bf16 %v4984_v52, %v4983_v49 }
 0x280   : > { %v1476_v47 = vpack.c.bf16 %v1474_v55, %v1472_v40  ;;  %v1477_v48 = vpack.c.bf16 %v1475_v29, %v1473_v45  ;;  %4982 = vmatmul.mubr.msk.bf16.vlgmr.msra.gmra.mrb[4].mxu0 %vm1489_vm13, %v1666_v32  ;;  %4998 = vmatmul.mubr.msk.bf16.vlgmr.msra.gmra.mrb[0].mxu1 %vm1489_vm13, %v1922_v36  ;;  %v2840_v36 = vld [vmem:[%s7208_s7] sm:$0xff]  ;;  %v2841_v40 = vld [vmem:[%s7208_s7 + $0x8] sm:$0xff] }
 0x281   : > { %1745 = vmatpush1.bf16.msra.mxu0 %v1739_v41  ;;  %1776 = vmatprep.mubr.bf16.mxu0 %v5430_v2 }
 0x282   : > { %v1989_v43 = vrot.slane %v1476_v47, 2  ;;  %v1990_v51 = vrot.slane %v1477_v48, 2  ;;  %2032 = vmatprep.mubr.bf16.mxu1 %v5430_v2 }
 0x284   : > { %5001 = vmatprep.subr.msk.bf16.mxu1 %vm1493_vm12, %v1990_v51  ;;  %v1995_v0 = vsel %vm1493_vm12, %v1989_v43, 0 }
 0x285   : > { %2001 = vmatpush1.bf16.msra.mxu1 %v1995_v0 }
 0x28c   : > { %4986 = vmatmul.mubr.msk.bf16.vlgmr.msra.gmra.mrb[4].mxu0 %vm1489_vm13, %v1730_v54  ;;  %5002 = vmatmul.mubr.msk.bf16.vlgmr.msra.gmra.mrb[0].mxu1 %vm1489_vm13, %v1986_v56  ;;  %v2052_v61 = vpop.permute.xlu1 %2051 }
 0x28d   : > { %2325 = vmatprep.mubr.bf16.mxu0 %v5430_v2  ;;  %3116 = vmatprep.mubr.bf16.mxu1 %v5430_v2  ;;  %v2057_v16 = vpop.permute.xlu0 %2056 }
 0x35f   : > { %v1778_v9 = vpop.f32.mrb[4].mxu0  ;;  %v2034_v63 = vpop.f32.mrb[0].mxu1 }
 0x360   : > { %v1780_v17 = vpop.f32.mrb[5].mxu0  ;;  %v5100_v8 = vadd.f32 %v2034_v63, %v1778_v9  ;;  %v2036_v3 = vpop.f32.mrb[1].mxu1  ;;  %v5003_v9 = vld [vmem:[%s7207_s6 + $0x10] sm:$0xff]  ;;  %v5004_v63 = vld [vmem:[%s7207_s6 + $0x18] sm:$0xff] }
 0x361   : > { %v1782_v4 = vpop.f32.mrb[6].mxu0  ;;  %v5101_v7 = vadd.f32 %v2036_v3, %v1780_v17  ;;  %v2038_v50 = vpop.f32.mrb[2].mxu1 }
 0x362   : > { %v1784_v53 = vpop.f32.mrb[7].mxu0  ;;  %v2059_v14 = vadd.f32 %v5100_v8, %v2052_v61  ;;  %v5102_v15 = vadd.f32 %v2038_v50, %v1782_v4  ;;  %v2040_v10 = vpop.f32.mrb[3].mxu1 }
 0x363   : > { %v2060_v18 = vadd.f32 %v5101_v7, %v2052_v61  ;;  %v5103_v21 = vadd.f32 %v2040_v10, %v1784_v53 }
 0x364   : > { %v2067_v24 = vmul.f32 0.05, %v2059_v14  ;;  %v2061_v25 = vadd.f32 %v5102_v15, %v2057_v16  ;;  %vm2063_vm14 = vcmp.ge.f32.partialorder %v2059_v14, 0.0 }
 0x365   : > { %vm2064_vm15 = vcmp.ge.f32.partialorder %v2060_v18, 0.0  ;;  %v2068_v42 = vmul.f32 0.05, %v2060_v18  ;;  %v2062_v44 = vadd.f32 %v5103_v21, %v2057_v16 }
 0x366   : > { %vm2065_vm8 = vcmp.ge.f32.partialorder %v2061_v25, 0.0  ;;  %v2069_v26 = vmul.f32 0.05, %v2061_v25  ;;  %v6053_v31 = vsel %vm2063_vm14, %v2059_v14, %v2067_v24  ;;  %v2279_v14 = vpack.c.bf16 %v5004_v63, %v5003_v9 }
 0x367   : > { %v6051_v28 = vsel %vm2064_vm15, %v2060_v18, %v2068_v42  ;;  %vm2066_vm9 = vcmp.ge.f32.partialorder %v2062_v44, 0.0  ;;  %v2070_v30 = vmul.f32 0.05, %v2062_v44 }
 0x368   : > { %v6055_v32 = vsel %vm2065_vm8, %v2061_v25, %v2069_v26  ;;  %2103 = vrot.lane.b32.xlu1 %v6051_v28, %s5431_s25 }
 0x369   : > { %v6059_v33 = vsel %vm2066_vm9, %v2062_v44, %v2070_v30  ;;  %v2175_v11 = vpack.c.bf16 %v6055_v32, %v6053_v31 }
 0x36a   : > { %2105 = vrot.lane.b32.xlu0 %v6059_v33, %s5431_s25  ;;  %v2176_v34 = vpack.c.bf16 %v6059_v33, %v6051_v28 }
 0x36c   : > { %2109 = vrot.lane.b32.xlu1 %v6053_v31, %s5431_s25 }
 0x36e   : > { %2111 = vrot.lane.b32.xlu0 %v6055_v32, %s5431_s25 }
 0x370   : > { %2077 = vrot.lane.b32.xlu1 %v6051_v28, %s5432_s26 }
 0x372   : > { %2079 = vrot.lane.b32.xlu0 %v6059_v33, %s5432_s26 }
 0x374   : > { %2085 = vrot.lane.b32.xlu1 %v6053_v31, %s5432_s26 }
 0x376   : > { %2087 = vrot.lane.b32.xlu0 %v6055_v32, %s5432_s26 }
 0x378   : > { %2127 = vrot.lane.b32.xlu1 %v6051_v28, %s5433_s27 }
 0x37a   : > { %2129 = vrot.lane.b32.xlu0 %v6059_v33, %s5433_s27 }
 0x37c   : > { %2133 = vrot.lane.b32.xlu1 %v6053_v31, %s5433_s27 }
 0x37e   : > { %2135 = vrot.lane.b32.xlu0 %v6055_v32, %s5433_s27 }
 0x380   : > { %2151 = vrot.lane.b32.xlu1 %v6051_v28, %s5434_s28 }
 0x382   : > { %2153 = vrot.lane.b32.xlu0 %v6059_v33, %s5434_s28 }
 0x384   : > { %2157 = vrot.lane.b32.xlu1 %v6053_v31, %s5434_s28 }
 0x386   : > { %2159 = vrot.lane.b32.xlu0 %v6055_v32, %s5434_s28 }
 0x388   : > { %2177 = vrot.lane.b32.xlu1 %v6053_v31, %s7255_s29 }
 0x38a   : > { %2179 = vrot.lane.b32.xlu0 %v6051_v28, %s7255_s29 }
 0x38c   : > { %2181 = vrot.lane.b32.xlu1 %v6055_v32, %s7255_s29 }
 0x38e   : > { %2183 = vrot.lane.b32.xlu0 %v6059_v33, %s7255_s29 }
 0x390   : > { %2201 = vrot.lane.b32.xlu1 %v6053_v31, %s7256_s30 }
 0x392   : > { %2203 = vrot.lane.b32.xlu0 %v6051_v28, %s7256_s30 }
 0x394   : > { %2205 = vrot.lane.b32.xlu1 %v6055_v32, %s7256_s30 }
 0x396   : > { %2207 = vrot.lane.b32.xlu0 %v6059_v33, %s7256_s30 }
 0x398   : > { %2225 = vrot.lane.b32.xlu1 %v6053_v31, %s7253_s14 }
 0x39a   : > { %2227 = vrot.lane.b32.xlu0 %v6051_v28, %s7253_s14 }
 0x39c   : > { %2229 = vrot.lane.b32.xlu1 %v6055_v32, %s7253_s14 }
 0x39e   : > { %2231 = vrot.lane.b32.xlu0 %v6059_v33, %s7253_s14 }
 0x3a0   : > { %2249 = vrot.lane.b32.xlu1 %v6053_v31, %s7254_s16 }
 0x3a2   : > { %2251 = vrot.lane.b32.xlu0 %v6051_v28, %s7254_s16 }
 0x3a4   : > { %2253 = vrot.lane.b32.xlu1 %v6055_v32, %s7254_s16 }
 0x3a6   : > { %2255 = vrot.lane.b32.xlu0 %v6059_v33, %s7254_s16  ;;  %v5014_v33 = vld [vmem:[%s7207_s6 + $0x38] sm:$0xff] }
 0x3a8   : > { %2844 = vperm.xlu1 %5227, %v2840_v36  }
 0x3aa   : > { %2849 = vperm.xlu0 %5226, %v2841_v40  }
 0x3da   : > { %v2104_v45 = vpop.permute.xlu1 %2103 }
 0x3dc   : > { %v2106_v55 = vpop.permute.xlu0 %2105 }
 0x3de   : > { %v2110_v29 = vpop.permute.xlu1 %2109 }
 0x3df   : > { %v2113_v47 = vsel %vm552_vm0, %v2110_v29, %v2104_v45  ;;  %v2119_v48 = vsel %vm552_vm0, %v2104_v45, %v2110_v29 }
 0x3e0   : > { %v2112_v41 = vpop.permute.xlu0 %2111  ;;  %v2121_v0 = vmul.f32 %v2119_v48, %v5608_v20  ;;  %v2122_v49 = vmul.f32 %v2113_v47, %v5605_v19 }
 0x3e1   : > { %v2114_v43 = vsel %vm552_vm0, %v2112_v41, %v2106_v55  ;;  %v2120_v51 = vsel %vm552_vm0, %v2106_v55, %v2112_v41 }
 0x3e2   : > { %v2123_v52 = vmul.f32 %v2120_v51, %v5608_v20  ;;  %v2124_v57 = vmul.f32 %v2114_v43, %v5605_v19  ;;  %v2078_v60 = vpop.permute.xlu1 %2077  ;;  %v2273_v43 = vld [vmem:[%s7207_s6] sm:$0xff]  ;;  %v2274_v51 = vld [vmem:[%s7207_s6 + $0x8] sm:$0xff] }
 0x3e4   : > { %v2126_v54 = vpack.c.bf16 %v2124_v57, %v2122_v49  ;;  %v2080_v56 = vpop.permute.xlu0 %2079  ;;  %v2125_v61 = vpack.c.bf16 %v2123_v52, %v2121_v0 }
 0x3e6   : > { %v2283_v17 = vrot.slane %v2126_v54, 2  ;;  %v2086_v8 = vpop.permute.xlu1 %2085  ;;  %v2282_v3 = vrot.slane %v2125_v61, 2  ;;  %v2275_v61 = vpack.c.bf16 %v2274_v51, %v2273_v43 }
 0x3e7   : > { %v2089_v4 = vsel %vm519_vm1, %v2086_v8, %v2078_v60  ;;  %v2095_v7 = vsel %vm519_vm1, %v2078_v60, %v2086_v8 }
 0x3e8   : > { %5005 = vmatprep.subr.msk.bf16.mxu0 %vm1493_vm12, %v2283_v17  ;;  %v2088_v50 = vpop.permute.xlu0 %2087  ;;  %v2288_v53 = vsel %vm1493_vm12, %v2282_v3, 0  ;;  %v2097_v16 = vmul.f32 %v2095_v7, %v5626_v38  ;;  %v2098_v18 = vmul.f32 %v2089_v4, %v5629_v39 }
 0x3e9   : > { %v2090_v15 = vsel %vm519_vm1, %v2088_v50, %v2080_v56  ;;  %v2096_v10 = vsel %vm519_vm1, %v2080_v56, %v2088_v50  ;;  %2294 = vmatpush1.bf16.msra.mxu0 %v2288_v53 }
 0x3ea   : > { %v2099_v21 = vmul.f32 %v2096_v10, %v5626_v38  ;;  %v2100_v24 = vmul.f32 %v2090_v15, %v5629_v39  ;;  %v2128_v25 = vpop.permute.xlu1 %2127 }
 0x3ec   : > { %v2102_v42 = vpack.c.bf16 %v2100_v24, %v2098_v18  ;;  %5006 = vmatmul.mubr.msk.bf16.vlgmr.msra.gmra.mrb[8].mxu0 %vm1489_vm13, %v2279_v14  ;;  %v2130_v44 = vpop.permute.xlu0 %2129  ;;  %v2101_v26 = vpack.c.bf16 %v2099_v21, %v2097_v16 }
 0x3ed   : > { %2381 = vmatprep.mubr.bf16.mxu0 %v5430_v2 }
 0x3ee   : > { %v2339_v30 = vrot.slane %v2102_v42, 2  ;;  %v2134_v36 = vpop.permute.xlu1 %2133  ;;  %v2338_v40 = vrot.slane %v2101_v26, 2  ;;  %v5009_v42 = vld [vmem:[%s7207_s6 + $0x20] sm:$0xff] }
 0x3ef   : > { %v2137_v45 = vsel %vm585_vm2, %v2134_v36, %v2128_v25  ;;  %v2143_v55 = vsel %vm585_vm2, %v2128_v25, %v2134_v36 }
 0x3f0   : > { %5007 = vmatprep.subr.msk.bf16.mxu0 %vm1493_vm12, %v2339_v30  ;;  %v2136_v29 = vpop.permute.xlu0 %2135  ;;  %v2344_v47 = vsel %vm1493_vm12, %v2338_v40, 0  ;;  %v2145_v0 = vmul.f32 %v2143_v55, %v5649_v58  ;;  %v2146_v49 = vmul.f32 %v2137_v45, %v5652_v59 }
 0x3f1   : > { %v2138_v48 = vsel %vm585_vm2, %v2136_v29, %v2130_v44  ;;  %v2144_v41 = vsel %vm585_vm2, %v2130_v44, %v2136_v29  ;;  %2350 = vmatpush1.bf16.msra.mxu0 %v2344_v47  ;;  %v5010_v44 = vld [vmem:[%s7207_s6 + $0x28] sm:$0xff]  ;;  %v2527_v47 = vrot.slane %v2176_v34, 2 }
 0x3f2   : > { %v2147_v52 = vmul.f32 %v2144_v41, %v5649_v58  ;;  %v2148_v57 = vmul.f32 %v2138_v48, %v5652_v59  ;;  %v2152_v60 = vpop.permute.xlu1 %2151  ;;  %v2395_v36 = vpack.c.bf16 %v5010_v44, %v5009_v42 }
 0x3f4   : > { %v2150_v54 = vpack.c.bf16 %v2148_v57, %v2146_v49  ;;  %v2154_v56 = vpop.permute.xlu0 %2153  ;;  %v2149_v9 = vpack.c.bf16 %v2147_v52, %v2145_v0  ;;  %v5013_v0 = vld [vmem:[%s7207_s6 + $0x30] sm:$0xff] }
 0x3f5   : > { %v2459_v57 = vpack.c.bf16 %v5014_v33, %v5013_v0 }
 0x3f6   : > { %v2399_v63 = vrot.slane %v2150_v54, 2  ;;  %v2158_v17 = vpop.permute.xlu1 %2157  ;;  %v2398_v8 = vrot.slane %v2149_v9, 2 }
 0x3f7   : > { %v2161_v3 = vsel %vm618_vm3, %v2158_v17, %v2152_v60  ;;  %v2167_v4 = vsel %vm618_vm3, %v2152_v60, %v2158_v17  ;;  %v2526_v60 = vrot.slane %v2175_v11, 2 }
 0x3f8   : > { %5008 = vmatmul.mubr.msk.bf16.vlgmr.msra.gmra.mrb[8].mxu0 %vm1489_vm13, %v2275_v61  ;;  %5011 = vmatprep.subr.msk.bf16.mxu0 %vm1493_vm12, %v2399_v63  ;;  %v2160_v7 = vpop.permute.xlu0 %2159  ;;  %v2404_v50 = vsel %vm1493_vm12, %v2398_v8, 0  ;;  %v2169_v15 = vmul.f32 %v2167_v4, %v5668_v23  ;;  %v2170_v10 = vmul.f32 %v2161_v3, %v5665_v22 }
 0x3f9   : > { %v2162_v53 = vsel %vm618_vm3, %v2160_v7, %v2154_v56  ;;  %v2168_v14 = vsel %vm618_vm3, %v2154_v56, %v2160_v7  ;;  %2410 = vmatpush1.bf16.msra.mxu0 %v2404_v50  ;;  %2441 = vmatprep.mubr.bf16.mxu0 %v5430_v2  ;;  %v2532_v8 = vsel %vm1493_vm12, %v2526_v60, 0 }
 0x3fa   : > { %v2171_v16 = vmul.f32 %v2168_v14, %v5668_v23  ;;  %v2172_v18 = vmul.f32 %v2162_v53, %v5665_v22  ;;  %v2178_v30 = vpop.permute.xlu1 %2177  ;;  %v5017_v53 = vld [vmem:[%s7207_s6 + $0x40] sm:$0xff]  ;;  %v5018_v14 = vld [vmem:[%s7207_s6 + $0x48] sm:$0xff] }
 0x3fc   : > { %v2174_v21 = vpack.c.bf16 %v2172_v18, %v2170_v10  ;;  %v2180_v24 = vpop.permute.xlu0 %2179  ;;  %v2173_v25 = vpack.c.bf16 %v2171_v16, %v2169_v15  ;;  %v2523_v18 = vpack.c.bf16 %v5018_v14, %v5017_v53 }
 0x3fd   : > { %v2193_v41 = vsel %vm651_vm4, %v2180_v24, %v2178_v30  ;;  %v2185_v61 = vsel %vm651_vm4, %v2178_v30, %v2180_v24 }
 0x3fe   : > { %v2463_v26 = vrot.slane %v2174_v21, 2  ;;  %v2462_v40 = vrot.slane %v2173_v25, 2  ;;  %v2182_v55 = vpop.permute.xlu1 %2181  ;;  %v2196_v34 = vmul.f32 %v2193_v41, %v5689_v46  ;;  %v2195_v32 = vmul.f32 %v2185_v61, %v5705_v62  ;;  %v5021_v41 = vld [vmem:[%s7207_s6 + $0x50] sm:$0xff] }
 0x400   : > { %5015 = vmatprep.subr.msk.bf16.mxu0 %vm1493_vm12, %v2463_v26  ;;  %v2184_v45 = vpop.permute.xlu0 %2183  ;;  %v2468_v29 = vsel %vm1493_vm12, %v2462_v40, 0 }
 0x401   : > { %v2194_v48 = vsel %vm651_vm4, %v2184_v45, %v2182_v55  ;;  %v2186_v54 = vsel %vm651_vm4, %v2182_v55, %v2184_v45 }
 0x402   : > { %v2198_v43 = vmul.f32 %v2194_v48, %v5689_v46  ;;  %v2202_v49 = vpop.permute.xlu1 %2201  ;;  %v2197_v9 = vmul.f32 %v2186_v54, %v5705_v62 }
 0x404   : > { %5012 = vmatmul.mubr.msk.bf16.vlgmr.msra.gmra.mrb[8].mxu0 %vm1489_vm13, %v2395_v36  ;;  %v2204_v51 = vpop.permute.xlu0 %2203  ;;  %v2200_v52 = vpack.c.bf16 %v2198_v43, %v2196_v34  ;;  %v2199_v50 = vpack.c.bf16 %v2197_v9, %v2195_v32  ;;  %v5022_v43 = vld [vmem:[%s7207_s6 + $0x58] sm:$0xff] }
 0x405   : > { %2474 = vmatpush1.bf16.msra.mxu0 %v2468_v29  ;;  %2505 = vmatprep.mubr.bf16.mxu0 %v5430_v2  ;;  %v2217_v11 = vsel %vm684_vm5, %v2204_v51, %v2202_v49  ;;  %v2209_v42 = vsel %vm684_vm5, %v2202_v49, %v2204_v51  ;;  %v2587_v34 = vpack.c.bf16 %v5022_v43, %v5021_v41 }
 0x406   : > { %5019 = vmatprep.subr.msk.bf16.mxu0 %vm1493_vm12, %v2527_v47  ;;  %v2591_v63 = vrot.slane %v2200_v52, 2  ;;  %v2206_v17 = vpop.permute.xlu1 %2205  ;;  %v2220_v15 = vmul.f32 %v2217_v11, %v5712_v1  ;;  %v2590_v21 = vrot.slane %v2199_v50, 2  ;;  %v2219_v45 = vmul.f32 %v2209_v42, %v5728_v27 }
 0x407   : > { %v3609_v41 = vpack.c.bf16 %v6053_v31, %v6053_v31  ;;  %v3604_v43 = vpack.c.bf16 %v5795_v37, %v5795_v37 }
 0x408   : > { %v2208_v56 = vpop.permute.xlu0 %2207  ;;  %v2596_v36 = vsel %vm1493_vm12, %v2590_v21, 0 }
 0x409   : > { %v2218_v3 = vsel %vm684_vm5, %v2208_v56, %v2206_v17  ;;  %v2210_v24 = vsel %vm684_vm5, %v2206_v17, %v2208_v56 }
 0x40a   : > { %v2222_v4 = vmul.f32 %v2218_v3, %v5712_v1  ;;  %v2226_v10 = vpop.permute.xlu1 %2225  ;;  %v2221_v44 = vmul.f32 %v2210_v24, %v5728_v27  ;;  %v6263_v3 = vld [vmem:[%s7202_s1 + $0x18] ss:$0 sm:$0xff] }
 0x40c   : > { %v2228_v7 = vpop.permute.xlu0 %2227  ;;  %v2224_v16 = vpack.c.bf16 %v2222_v4, %v2220_v15  ;;  %v2223_v48 = vpack.c.bf16 %v2221_v44, %v2219_v45  ;;  %v5025_v4 = vld [vmem:[%s7207_s6 + $0x60] sm:$0xff] }
 0x40d   : > { %v2241_v55 = vsel %vm717_vm6, %v2228_v7, %v2226_v10  ;;  %v2233_v60 = vsel %vm717_vm6, %v2226_v10, %v2228_v7  ;;  %v5026_v7 = vld [vmem:[%s7207_s6 + $0x68] sm:$0xff] }
 0x40e   : > { %v2655_v26 = vrot.slane %v2224_v16, 2  ;;  %v2230_v30 = vpop.permute.xlu1 %2229  ;;  %v2244_v51 = vmul.f32 %v2241_v55, %v5595_v13  ;;  %v2654_v49 = vrot.slane %v2223_v48, 2  ;;  %v2243_v17 = vmul.f32 %v2233_v60, %v5592_v12 }
 0x40f   : > { %v2651_v14 = vpack.c.bf16 %v5026_v7, %v5025_v4  ;;  %v3610_v55 = vpack.c.bf16 %v6051_v28, %v6051_v28  ;;  %v3617_v28 = vsel %vm3615_vm10, %v3609_v41, 0 }
 0x410   : > { %5016 = vmatmul.mubr.msk.bf16.vlgmr.msra.gmra.mrb[8].mxu0 %vm1489_vm13, %v2459_v57  ;;  %v2232_v25 = vpop.permute.xlu0 %2231  ;;  %v2660_v9 = vsel %vm1493_vm12, %v2654_v49, 0  ;;  %v3601_v49 = vld [vmem:[%s7211_s10 + $0x8] sm:$0xff] }
 0x411   : > { %2538 = vmatpush1.bf16.msra.mxu0 %v2532_v8  ;;  %2569 = vmatprep.mubr.bf16.mxu0 %v5430_v2  ;;  %v2242_v40 = vsel %vm717_vm6, %v2232_v25, %v2230_v30  ;;  %v2234_v52 = vsel %vm717_vm6, %v2230_v30, %v2232_v25  ;;  %v5030_v30 = vld [vmem:[%s7207_s6 + $0x78] sm:$0xff] }
 0x412   : > { %5023 = vmatprep.subr.msk.bf16.mxu0 %vm1493_vm12, %v2591_v63  ;;  %v2246_v29 = vmul.f32 %v2242_v40, %v5595_v13  ;;  %v2250_v0 = vpop.permute.xlu1 %2249  ;;  %v2245_v54 = vmul.f32 %v2234_v52, %v5592_v12 }
 0x414   : > { %v2252_v47 = vpop.permute.xlu0 %2251  ;;  %v2248_v33 = vpack.c.bf16 %v2246_v29, %v2244_v51  ;;  %v2247_v11 = vpack.c.bf16 %v2245_v54, %v2243_v17  ;;  %v5033_v29 = vld [vmem:[%s7207_s6 + $0x80] sm:$0xff]  ;;  %v5063_v51 = vld [vmem:[%s7211_s10 + $0x10] sm:$0xff] }
 0x415   : > { %v2265_v8 = vsel %vm750_vm7, %v2252_v47, %v2250_v0  ;;  %v2257_v16 = vsel %vm750_vm7, %v2250_v0, %v2252_v47  ;;  %v5034_v47 = vld [vmem:[%s7207_s6 + $0x88] sm:$0xff]  ;;  %v5064_v0 = vld [vmem:[%s7211_s10 + $0x18] sm:$0xff] }
 0x416   : > { %v2719_v56 = vrot.slane %v2248_v33, 2  ;;  %v2254_v61 = vpop.permute.xlu1 %2253  ;;  %v2268_v50 = vmul.f32 %v6263_v3, %v2265_v8  ;;  %v2718_v15 = vrot.slane %v2247_v11, 2  ;;  %v2779_v48 = vpack.c.bf16 %v5034_v47, %v5033_v29 }
 0x417   : > { %v3608_v31 = vpack.c.bf16 %v5064_v0, %v5063_v51  ;;  %v3603_v33 = vpack.c.bf16 %v5793_v35, %v5793_v35 }
 0x418   : > { %v2256_v57 = vpop.permute.xlu0 %2255  ;;  %v2724_v25 = vsel %vm1493_vm12, %v2718_v15, 0 }
 0x419   : > { %v2266_v63 = vsel %vm750_vm7, %v2256_v57, %v2254_v61  ;;  %v2258_v10 = vsel %vm750_vm7, %v2254_v61, %v2256_v57  ;;  %v3669_v37 = vsel %vm3615_vm10, %v3603_v33, 0 }
 0x41a   : > { %v2270_v32 = vmul.f32 %v6263_v3, %v2266_v63 }
 0x41c   : > { %5020 = vmatmul.mubr.msk.bf16.vlgmr.msra.gmra.mrb[8].mxu0 %vm1489_vm13, %v2523_v18  ;;  %v2272_v53 = vpack.c.bf16 %v2270_v32, %v2268_v50  ;;  %v6278_v18 = vld [vmem:[%s7202_s1 + $0x10] ss:$0 sm:$0xff] }
 0x41d   : > { %2602 = vmatpush1.bf16.msra.mxu0 %v2596_v36  ;;  %2633 = vmatprep.mubr.bf16.mxu0 %v5430_v2  ;;  %v2269_v21 = vmul.f32 %v6278_v18, %v2258_v10  ;;  %v2267_v42 = vmul.f32 %v6278_v18, %v2257_v16 }
 0x41e   : > { %5027 = vmatprep.subr.msk.bf16.mxu0 %vm1493_vm12, %v2655_v26  ;;  %v2783_v24 = vrot.slane %v2272_v53, 2  ;;  %v5029_v26 = vld [vmem:[%s7207_s6 + $0x70] sm:$0xff] }
 0x41f   : > { %v2271_v44 = vpack.c.bf16 %v2269_v21, %v2267_v42  ;;  %v2715_v36 = vpack.c.bf16 %v5030_v30, %v5029_v26  ;;  %v3592_v42 = vld [vmem:[%s7210_s9] sm:$0xf]  ;;  %v3864_v26 = vld [vmem:[%s7214_s13 + $0x8] sm:$0xff] }
 0x421   : > { %v2782_v40 = vrot.slane %v2271_v44, 2  ;;  %v3863_v44 = vld [vmem:[%s7214_s13] sm:$0xff] }
 0x423   : > { %v2788_v45 = vsel %vm1493_vm12, %v2782_v40, 0 }
 0x427   : > { %v2845_v35 = vpop.permute.xlu1 %2844 }
 0x428   : > { %5024 = vmatmul.mubr.msk.bf16.vlgmr.msra.gmra.mrb[8].mxu0 %vm1489_vm13, %v2587_v34  ;;  %v3600_v34 = vld [vmem:[%s7211_s10] sm:$0xff] }
 0x429   : > { %2666 = vmatpush1.bf16.msra.mxu0 %v2660_v9  ;;  %2697 = vmatprep.mubr.bf16.mxu0 %v5430_v2  ;;  %v3602_v52 = vpack.c.bf16 %v3601_v49, %v3600_v34  ;;  %v5037_v34 = vld [vmem:[%s7209_s8 + $0x4] sm:$0xf] }
 0x42a   : > { %5031 = vmatprep.subr.msk.bf16.mxu0 %vm1493_vm12, %v2719_v56  ;;  %v2850_v56 = vpop.permute.xlu0 %2849 }
 0x434   : > { %5028 = vmatmul.mubr.msk.bf16.vlgmr.msra.gmra.mrb[8].mxu0 %vm1489_vm13, %v2651_v14 }
 0x435   : > { %2730 = vmatpush1.bf16.msra.mxu0 %v2724_v25  ;;  %2761 = vmatprep.mubr.bf16.mxu0 %v5430_v2 }
 0x436   : > { %5035 = vmatprep.subr.msk.bf16.mxu0 %vm1493_vm12, %v2783_v24 }
 0x440   : > { %5032 = vmatmul.mubr.msk.bf16.vlgmr.msra.gmra.mrb[8].mxu0 %vm1489_vm13, %v2715_v36 }
 0x441   : > { %2794 = vmatpush1.bf16.msra.mxu0 %v2788_v45  ;;  %2825 = vmatprep.mubr.bf16.mxu0 %v5430_v2 }
 0x442   : > { %5065 = vmatprep.subr.msk.bf16.mxu0 %vm3615_vm10, %v3610_v55 }
 0x44c   : > { %5036 = vmatmul.mubr.msk.bf16.vlgmr.msra.gmra.mrb[8].mxu0 %vm1489_vm13, %v2779_v48 }
 0x44d   : > { %3623 = vmatpush1.bf16.msra.mxu0 %v3617_v28  ;;  %3654 = vmatprep.mubr.bf16.mxu0 %v5430_v2 }
 0x44e   : > { %5067 = vmatprep.subr.msk.bf16.mxu0 %vm3615_vm10, %v3604_v43 }
 0x454   : > { %5066 = vmatmul.mubr.msk.bf16.vlgmr.msra.gmra.mrb[12].mxu0 %vm3611_vm11, %v3608_v31 }
 0x455   : > { %3675 = vmatpush1.bf16.msra.mxu0 %v3669_v37  ;;  %3706 = vmatprep.mubr.bf16.mxu0 %v5430_v2 }
 0x460   : > { %5068 = vmatmul.mubr.msk.bf16.vlgmr.msra.gmra.mrb[12].mxu0 %vm3611_vm11, %v3602_v52 }
 0x461   : > { %3764 = vmatprep.mubr.bf16.mxu0 %v5430_v2 }
 0x51f   : > { %v2827_v57 = vpop.f32.mrb[8].mxu0 }
 0x520   : > { %v2852_v60 = vadd.f32 %v2845_v35, %v2827_v57  ;;  %v2829_v54 = vpop.f32.mrb[9].mxu0 }
 0x521   : > { %v2853_v61 = vadd.f32 %v2845_v35, %v2829_v54  ;;  %v2831_v9 = vpop.f32.mrb[10].mxu0  ;;  %v3070_v54 = vpack.c.bf16 %v5037_v34, %v5037_v34 }
 0x522   : > { %vm2856_vm14 = vcmp.ge.f32.partialorder %v2852_v60, 0.0  ;;  %v2860_v63 = vmul.f32 0.05, %v2852_v60  ;;  %v2854_v17 = vadd.f32 %v2850_v56, %v2831_v9  ;;  %v2833_v8 = vpop.f32.mrb[11].mxu0 }
 0x523   : > { %vm2857_vm15 = vcmp.ge.f32.partialorder %v2853_v61, 0.0  ;;  %v2861_v32 = vmul.f32 0.05, %v2853_v61  ;;  %v2855_v11 = vadd.f32 %v2850_v56, %v2833_v8 }
 0x524   : > { %v6331_v4 = vsel %vm2856_vm14, %v2852_v60, %v2860_v63  ;;  %vm2858_vm8 = vcmp.ge.f32.partialorder %v2854_v17, 0.0  ;;  %v2862_v7 = vmul.f32 0.05, %v2854_v17 }
 0x525   : > { %v6333_v50 = vsel %vm2857_vm15, %v2853_v61, %v2861_v32  ;;  %vm2859_vm9 = vcmp.ge.f32.partialorder %v2855_v11, 0.0  ;;  %v2863_v53 = vmul.f32 0.05, %v2855_v11  ;;  %2902 = vrot.lane.b32.xlu1 %v6331_v4, %s5431_s25  ;;  %v3721_v14 = vpack.c.bf16 %v6331_v4, %v6331_v4 }
 0x526   : > { %v6339_v15 = vsel %vm2858_vm8, %v2854_v17, %v2862_v7  ;;  %v3722_v10 = vpack.c.bf16 %v6333_v50, %v6333_v50 }
 0x527   : > { %v6343_v16 = vsel %vm2859_vm9, %v2855_v11, %v2863_v53  ;;  %2904 = vrot.lane.b32.xlu0 %v6339_v15, %s5431_s25  ;;  %v3727_v21 = vsel %vm3615_vm10, %v3721_v14, 0  ;;  %v2968_v24 = vpack.c.bf16 %v6339_v15, %v6331_v4  ;;  %v3066_v14 = vld [vmem:[%s7209_s8] sm:$0xf] }
 0x528   : > { %5071 = vmatprep.subr.msk.bf16.mxu0 %vm3615_vm10, %v3722_v10  ;;  %v2969_v25 = vpack.c.bf16 %v6343_v16, %v6333_v50 }
 0x529   : > { %2896 = vrot.lane.b32.xlu1 %v6333_v50, %s5431_s25  ;;  %3733 = vmatpush1.bf16.msra.mxu0 %v3727_v21 }
 0x52b   : > { %2898 = vrot.lane.b32.xlu0 %v6343_v16, %s5431_s25 }
 0x52d   : > { %2878 = vrot.lane.b32.xlu1 %v6331_v4, %s5432_s26 }
 0x52f   : > { %2880 = vrot.lane.b32.xlu0 %v6339_v15, %s5432_s26 }
 0x531   : > { %2870 = vrot.lane.b32.xlu1 %v6333_v50, %s5432_s26 }
 0x533   : > { %2872 = vrot.lane.b32.xlu0 %v6343_v16, %s5432_s26 }
 0x535   : > { %2920 = vrot.lane.b32.xlu1 %v6333_v50, %s5433_s27 }
 0x537   : > { %2928 = vrot.lane.b32.xlu0 %v6339_v15, %s5433_s27 }
 0x539   : > { %2926 = vrot.lane.b32.xlu1 %v6331_v4, %s5433_s27 }
 0x53b   : > { %2922 = vrot.lane.b32.xlu0 %v6343_v16, %s5433_s27 }
 0x53d   : > { %2944 = vrot.lane.b32.xlu1 %v6333_v50, %s5434_s28 }
 0x53f   : > { %2946 = vrot.lane.b32.xlu0 %v6343_v16, %s5434_s28 }
 0x541   : > { %2950 = vrot.lane.b32.xlu1 %v6331_v4, %s5434_s28 }
 0x543   : > { %2952 = vrot.lane.b32.xlu0 %v6339_v15, %s5434_s28 }
 0x545   : > { %2970 = vrot.lane.b32.xlu1 %v6331_v4, %s7255_s29 }
 0x547   : > { %2972 = vrot.lane.b32.xlu0 %v6333_v50, %s7255_s29 }
 0x549   : > { %2974 = vrot.lane.b32.xlu1 %v6339_v15, %s7255_s29 }
 0x54b   : > { %2976 = vrot.lane.b32.xlu0 %v6343_v16, %s7255_s29 }
 0x54d   : > { %2994 = vrot.lane.b32.xlu1 %v6331_v4, %s7256_s30 }
 0x54f   : > { %2996 = vrot.lane.b32.xlu0 %v6333_v50, %s7256_s30 }
 0x551   : > { %2998 = vrot.lane.b32.xlu1 %v6339_v15, %s7256_s30 }
 0x553   : > { %3000 = vrot.lane.b32.xlu0 %v6343_v16, %s7256_s30 }
 0x555   : > { %3018 = vrot.lane.b32.xlu1 %v6331_v4, %s7253_s14 }
 0x557   : > { %3020 = vrot.lane.b32.xlu0 %v6333_v50, %s7253_s14 }
 0x559   : > { %3022 = vrot.lane.b32.xlu1 %v6339_v15, %s7253_s14 }
 0x55b   : > { %3024 = vrot.lane.b32.xlu0 %v6343_v16, %s7253_s14 }
 0x55d   : > { %3042 = vrot.lane.b32.xlu1 %v6331_v4, %s7254_s16 }
 0x55f   : > { %3044 = vrot.lane.b32.xlu0 %v6333_v50, %s7254_s16 }
 0x561   : > { %3046 = vrot.lane.b32.xlu1 %v6339_v15, %s7254_s16 }
 0x563   : > { %3048 = vrot.lane.b32.xlu0 %v6343_v16, %s7254_s16  ;;  %s4858_s16 = sld [smem:[#allocation2]] }
 0x565   : > { %3595 = vperm.xlu1 %5227, %v3592_v42  }
 0x567   : > { %3869 = vperm.xlu0 %5226, %v3863_v44  }
 0x569   : > { %3874 = vperm.xlu1 %5227, %v3864_v26   ;;  %s4864_s30 = ssub.f32 1.0, %s4858_s16 }
 0x597   : > { %v2903_v30 = vpop.permute.xlu1 %2902 }
 0x599   : > { %v2905_v36 = vpop.permute.xlu0 %2904 }
 0x59b   : > { %v2897_v40 = vpop.permute.xlu1 %2896 }
 0x59c   : > { %v2906_v45 = vsel %vm552_vm0, %v2903_v30, %v2897_v40  ;;  %v2912_v55 = vsel %vm552_vm0, %v2897_v40, %v2903_v30  ;;  %v3067_v30 = vpack.c.bf16 %v3066_v14, %v3066_v14 }
 0x59d   : > { %v2899_v29 = vpop.permute.xlu0 %2898  ;;  %v2914_v41 = vmul.f32 %v2912_v55, %v5608_v20  ;;  %v2915_v28 = vmul.f32 %v2906_v45, %v5605_v19 }
 0x59e   : > { %v2907_v47 = vsel %vm552_vm0, %v2905_v36, %v2899_v29  ;;  %v2913_v48 = vsel %vm552_vm0, %v2899_v29, %v2905_v36 }
 0x59f   : > { %v2916_v43 = vmul.f32 %v2913_v48, %v5608_v20  ;;  %v2917_v51 = vmul.f32 %v2907_v47, %v5605_v19  ;;  %v2879_v0 = vpop.permute.xlu1 %2878 }
 0x5a1   : > { %v2919_v31 = vpack.c.bf16 %v2917_v51, %v2915_v28  ;;  %v2881_v33 = vpop.permute.xlu0 %2880  ;;  %v2918_v37 = vpack.c.bf16 %v2916_v43, %v2914_v41  ;;  %v5042_v51 = vld [vmem:[%s7209_s8 + $0x8] sm:$0xf] }
 0x5a3   : > { %v3074_v49 = vrot.slane %v2919_v31, 2  ;;  %v2871_v52 = vpop.permute.xlu1 %2870  ;;  %v3073_v35 = vrot.slane %v2918_v37, 2 }
 0x5a4   : > { %v2882_v57 = vsel %vm519_vm1, %v2879_v0, %v2871_v52  ;;  %v2888_v60 = vsel %vm519_vm1, %v2871_v52, %v2879_v0 }
 0x5a5   : > { %5038 = vmatprep.subr.msk.bf16.mxu1 %vm1493_vm12, %v3074_v49  ;;  %v2873_v20 = vpop.permute.xlu0 %2872  ;;  %v3079_v19 = vsel %vm1493_vm12, %v3073_v35, 0  ;;  %v2890_v9 = vmul.f32 %v2888_v60, %v5626_v38  ;;  %v2891_v63 = vmul.f32 %v2882_v57, %v5629_v39  ;;  %v3181_v49 = vpack.c.bf16 %v5042_v51, %v5042_v51 }
 0x5a6   : > { %v2883_v56 = vsel %vm519_vm1, %v2881_v33, %v2873_v20  ;;  %v2889_v61 = vsel %vm519_vm1, %v2873_v20, %v2881_v33  ;;  %3085 = vmatpush1.bf16.msra.mxu1 %v3079_v19 }
 0x5a7   : > { %v2892_v17 = vmul.f32 %v2889_v61, %v5626_v38  ;;  %v2893_v8 = vmul.f32 %v2883_v56, %v5629_v39  ;;  %v2921_v32 = vpop.permute.xlu1 %2920 }
 0x5a9   : > { %v2895_v11 = vpack.c.bf16 %v2893_v8, %v2891_v63  ;;  %5039 = vmatmul.mubr.msk.bf16.vlgmr.msra.gmra.mrb[4].mxu1 %vm1489_vm13, %v3070_v54  ;;  %v2929_v7 = vpop.permute.xlu0 %2928  ;;  %v2894_v53 = vpack.c.bf16 %v2892_v17, %v2890_v9  ;;  %v5045_v63 = vld [vmem:[%s7209_s8 + $0xc] sm:$0xf] }
 0x5aa   : > { %3170 = vmatprep.mubr.bf16.mxu1 %v5430_v2  ;;  %v3240_v14 = vpack.c.bf16 %v5045_v63, %v5045_v63 }
 0x5ab   : > { %v3128_v10 = vrot.slane %v2895_v11, 2  ;;  %v2927_v21 = vpop.permute.xlu1 %2926  ;;  %v3127_v42 = vrot.slane %v2894_v53, 2  ;;  %v3303_v53 = vrot.slane %v2969_v25, 2  ;;  %v5048_v25 = vld [vmem:[%s7209_s8 + $0x10] sm:$0xf] }
 0x5ac   : > { %v2930_v44 = vsel %vm585_vm2, %v2927_v21, %v2921_v32  ;;  %v2936_v38 = vsel %vm585_vm2, %v2921_v32, %v2927_v21 }
 0x5ad   : > { %5040 = vmatprep.subr.msk.bf16.mxu1 %vm1493_vm12, %v3128_v10  ;;  %v2923_v39 = vpop.permute.xlu0 %2922  ;;  %v3133_v26 = vsel %vm1493_vm12, %v3127_v42, 0  ;;  %v2938_v45 = vmul.f32 %v2936_v38, %v5649_v58  ;;  %v2939_v55 = vmul.f32 %v2930_v44, %v5652_v59  ;;  %v3302_v10 = vrot.slane %v2968_v24, 2 }
 0x5ae   : > { %v2931_v36 = vsel %vm585_vm2, %v2929_v7, %v2923_v39  ;;  %v2937_v40 = vsel %vm585_vm2, %v2923_v39, %v2929_v7  ;;  %3139 = vmatpush1.bf16.msra.mxu1 %v3133_v26 }
 0x5af   : > { %v2940_v29 = vmul.f32 %v2937_v40, %v5649_v58  ;;  %v2941_v47 = vmul.f32 %v2931_v36, %v5652_v59  ;;  %v2945_v48 = vpop.permute.xlu1 %2944  ;;  %v3308_v15 = vsel %vm1493_vm12, %v3302_v10, 0 }
 0x5b1   : > { %v2943_v41 = vpack.c.bf16 %v2941_v47, %v2939_v55  ;;  %5041 = vmatmul.mubr.msk.bf16.vlgmr.msra.gmra.mrb[8].mxu1 %vm1489_vm13, %v3067_v30  ;;  %v2947_v28 = vpop.permute.xlu0 %2946  ;;  %v2942_v43 = vpack.c.bf16 %v2940_v29, %v2938_v45  ;;  %v3299_v45 = vpack.c.bf16 %v5048_v25, %v5048_v25 }
 0x5b2   : > { %3227 = vmatprep.mubr.bf16.mxu1 %v5430_v2 }
 0x5b3   : > { %v3185_v0 = vrot.slane %v2943_v41, 2  ;;  %v2951_v31 = vpop.permute.xlu1 %2950  ;;  %v3184_v33 = vrot.slane %v2942_v43, 2 }
 0x5b4   : > { %v2954_v37 = vsel %vm618_vm3, %v2951_v31, %v2945_v48  ;;  %v2960_v58 = vsel %vm618_vm3, %v2945_v48, %v2951_v31 }
 0x5b5   : > { %5043 = vmatprep.subr.msk.bf16.mxu1 %vm1493_vm12, %v3185_v0  ;;  %v2953_v59 = vpop.permute.xlu0 %2952  ;;  %v3190_v34 = vsel %vm1493_vm12, %v3184_v33, 0  ;;  %v2962_v57 = vmul.f32 %v2960_v58, %v5668_v23  ;;  %v2963_v60 = vmul.f32 %v2954_v37, %v5665_v22  ;;  %v5051_v58 = vld [vmem:[%s7209_s8 + $0x14] sm:$0xf] }
 0x5b6   : > { %v2955_v52 = vsel %vm618_vm3, %v2953_v59, %v2947_v28  ;;  %v2961_v35 = vsel %vm618_vm3, %v2947_v28, %v2953_v59  ;;  %3196 = vmatpush1.bf16.msra.mxu1 %v3190_v34 }
 0x5b7   : > { %v2964_v20 = vmul.f32 %v2961_v35, %v5668_v23  ;;  %v2965_v19 = vmul.f32 %v2955_v52, %v5665_v22  ;;  %v2971_v54 = vpop.permute.xlu1 %2970  ;;  %v3358_v52 = vpack.c.bf16 %v5051_v58, %v5051_v58 }
 0x5b9   : > { %v2967_v56 = vpack.c.bf16 %v2965_v19, %v2963_v60  ;;  %5044 = vmatmul.mubr.msk.bf16.vlgmr.msra.gmra.mrb[12].mxu1 %vm1489_vm13, %v3181_v49  ;;  %v2973_v61 = vpop.permute.xlu0 %2972  ;;  %v2966_v9 = vpack.c.bf16 %v2964_v20, %v2962_v57 }
 0x5ba   : > { %3286 = vmatprep.mubr.bf16.mxu1 %v5430_v2  ;;  %v2978_v11 = vsel %vm651_vm4, %v2971_v54, %v2973_v61  ;;  %v2986_v23 = vsel %vm651_vm4, %v2973_v61, %v2971_v54 }
 0x5bb   : > { %v3244_v17 = vrot.slane %v2967_v56, 2  ;;  %v2975_v8 = vpop.permute.xlu1 %2974  ;;  %v3243_v32 = vrot.slane %v2966_v9, 2  ;;  %v2988_v44 = vmul.f32 %v2978_v11, %v5705_v62  ;;  %v2989_v38 = vmul.f32 %v2986_v23, %v5689_v46 }
 0x5bd   : > { %5046 = vmatprep.subr.msk.bf16.mxu1 %vm1493_vm12, %v3244_v17  ;;  %v2977_v22 = vpop.permute.xlu0 %2976  ;;  %v3249_v7 = vsel %vm1493_vm12, %v3243_v32, 0  ;;  %v5054_v32 = vld [vmem:[%s7209_s8 + $0x18] sm:$0xf] }
 0x5be   : > { %v2979_v21 = vsel %vm651_vm4, %v2975_v8, %v2977_v22  ;;  %v2987_v42 = vsel %vm651_vm4, %v2977_v22, %v2975_v8  ;;  %3255 = vmatpush1.bf16.msra.mxu1 %v3249_v7  ;;  %v3417_v7 = vpack.c.bf16 %v5054_v32, %v5054_v32 }
 0x5bf   : > { %v2990_v39 = vmul.f32 %v2979_v21, %v5705_v62  ;;  %v2991_v26 = vmul.f32 %v2987_v42, %v5689_v46  ;;  %v2995_v50 = vpop.permute.xlu1 %2994  ;;  %5049 = vmatprep.subr.msk.bf16.mxu1 %vm1493_vm12, %v3303_v53 }
 0x5c1   : > { %v2993_v16 = vpack.c.bf16 %v2991_v26, %v2989_v38  ;;  %5047 = vmatmul.mubr.msk.bf16.vlgmr.msra.gmra.mrb[16].mxu1 %vm1489_vm13, %v3240_v14  ;;  %v2997_v4 = vpop.permute.xlu0 %2996  ;;  %v2992_v24 = vpack.c.bf16 %v2990_v39, %v2988_v44 }
 0x5c2   : > { %3314 = vmatpush1.bf16.msra.mxu1 %v3308_v15  ;;  %3345 = vmatprep.mubr.bf16.mxu1 %v5430_v2  ;;  %v3002_v46 = vsel %vm684_vm5, %v2995_v50, %v2997_v4  ;;  %v3010_v36 = vsel %vm684_vm5, %v2997_v4, %v2995_v50 }
 0x5c3   : > { %v3362_v62 = vrot.slane %v2993_v16, 2  ;;  %v2999_v30 = vpop.permute.xlu1 %2998  ;;  %v3361_v55 = vrot.slane %v2992_v24, 2  ;;  %v3012_v48 = vmul.f32 %v3002_v46, %v5728_v27  ;;  %v3013_v41 = vmul.f32 %v3010_v36, %v5712_v1  ;;  %v5057_v16 = vld [vmem:[%s7209_s8 + $0x1c] sm:$0xf]  ;;  %v5060_v24 = vld [vmem:[%s7209_s8 + $0x20] sm:$0xf] }
 0x5c4   : > { %v3476_v15 = vpack.c.bf16 %v5057_v16, %v5057_v16  ;;  %v3535_v25 = vpack.c.bf16 %v5060_v24, %v5060_v24  ;;  %v5073_v24 = vld [vmem:[%s7211_s10 + $0x30] sm:$0xff] }
 0x5c5   : > { %v3001_v40 = vpop.permute.xlu0 %3000  ;;  %5052 = vmatprep.subr.msk.bf16.mxu1 %vm1493_vm12, %v3362_v62  ;;  %v3367_v33 = vsel %vm1493_vm12, %v3361_v55, 0  ;;  %v5069_v62 = vld [vmem:[%s7211_s10 + $0x20] sm:$0xff] }
 0x5c6   : > { %v3003_v29 = vsel %vm684_vm5, %v2999_v30, %v3001_v40  ;;  %v3011_v47 = vsel %vm684_vm5, %v3001_v40, %v2999_v30  ;;  %v5070_v30 = vld [vmem:[%s7211_s10 + $0x28] sm:$0xff]  ;;  %vm4101_vm5 = vcmask 1043456  }
 0x5c7   : > { %v3014_v28 = vmul.f32 %v3003_v29, %v5728_v27  ;;  %v3015_v43 = vmul.f32 %v3011_v47, %v5712_v1  ;;  %v3019_v51 = vpop.permute.xlu1 %3018  ;;  %v3720_v46 = vpack.c.bf16 %v5070_v30, %v5069_v62 }
 0x5c9   : > { %v3017_v0 = vpack.c.bf16 %v3015_v43, %v3013_v41  ;;  %v3021_v31 = vpop.permute.xlu0 %3020  ;;  %5050 = vmatmul.mubr.msk.bf16.vlgmr.msra.gmra.mrb[20].mxu1 %vm1489_vm13, %v3299_v45  ;;  %v3016_v37 = vpack.c.bf16 %v3014_v28, %v3012_v48  ;;  %5072 = vmatmul.mubr.msk.bf16.vlgmr.msra.gmra.mrb[12].mxu0 %vm3611_vm11, %v3720_v46 }
 0x5ca   : > { %3373 = vmatpush1.bf16.msra.mxu1 %v3367_v33  ;;  %3404 = vmatprep.mubr.bf16.mxu1 %v5430_v2  ;;  %v3026_v27 = vsel %vm717_vm6, %v3019_v51, %v3021_v31  ;;  %v3034_v1 = vsel %vm717_vm6, %v3021_v31, %v3019_v51 }
 0x5cb   : > { %v3421_v59 = vrot.slane %v3017_v0, 2  ;;  %v3023_v34 = vpop.permute.xlu1 %3022  ;;  %v3420_v35 = vrot.slane %v3016_v37, 2  ;;  %v3036_v20 = vmul.f32 %v3026_v27, %v5592_v12  ;;  %v3037_v19 = vmul.f32 %v3034_v1, %v5595_v13  ;;  %3826 = vmatprep.mubr.bf16.mxu0 %v5430_v2 }
 0x5cd   : > { %v3025_v49 = vpop.permute.xlu0 %3024  ;;  %5055 = vmatprep.subr.msk.bf16.mxu1 %vm1493_vm12, %v3421_v59  ;;  %v3426_v17 = vsel %vm1493_vm12, %v3420_v35, 0 }
 0x5ce   : > { %v3027_v57 = vsel %vm717_vm6, %v3023_v34, %v3025_v49  ;;  %v3035_v60 = vsel %vm717_vm6, %v3025_v49, %v3023_v34  ;;  %vm4052_vm6 = vcmask 64512  }
 0x5cf   : > { %v3038_v54 = vmul.f32 %v3027_v57, %v5592_v12  ;;  %v3039_v56 = vmul.f32 %v3035_v60, %v5595_v13  ;;  %v3043_v61 = vpop.permute.xlu1 %3042 }
 0x5d1   : > { %v3041_v9 = vpack.c.bf16 %v3039_v56, %v3037_v19  ;;  %v3045_v63 = vpop.permute.xlu0 %3044  ;;  %5053 = vmatmul.mubr.msk.bf16.vlgmr.msra.gmra.mrb[24].mxu1 %vm1489_vm13, %v3358_v52  ;;  %v3040_v8 = vpack.c.bf16 %v3038_v54, %v3036_v20 }
 0x5d2   : > { %3432 = vmatpush1.bf16.msra.mxu1 %v3426_v17  ;;  %3463 = vmatprep.mubr.bf16.mxu1 %v5430_v2  ;;  %v3050_v12 = vsel %vm750_vm7, %v3043_v61, %v3045_v63  ;;  %v3058_v13 = vsel %vm750_vm7, %v3045_v63, %v3043_v61 }
 0x5d3   : > { %v3480_v11 = vrot.slane %v3041_v9, 2  ;;  %v3047_v23 = vpop.permute.xlu1 %3046  ;;  %v3479_v53 = vrot.slane %v3040_v8, 2  ;;  %v3060_v21 = vmul.f32 %v6278_v18, %v3050_v12  ;;  %v3061_v42 = vmul.f32 %v6263_v3, %v3058_v13 }
 0x5d5   : > { %v3049_v22 = vpop.permute.xlu0 %3048  ;;  %5058 = vmatprep.subr.msk.bf16.mxu1 %vm1493_vm12, %v3480_v11  ;;  %v3485_v26 = vsel %vm1493_vm12, %v3479_v53, 0 }
 0x5d6   : > { %v3051_v14 = vsel %vm750_vm7, %v3047_v23, %v3049_v22  ;;  %v3059_v10 = vsel %vm750_vm7, %v3049_v22, %v3047_v23 }
 0x5d7   : > { %v3062_v44 = vmul.f32 %v6278_v18, %v3051_v14  ;;  %v3063_v38 = vmul.f32 %v6263_v3, %v3059_v10 }
 0x5d9   : > { %v3065_v39 = vpack.c.bf16 %v3063_v38, %v3061_v42  ;;  %5056 = vmatmul.mubr.msk.bf16.vlgmr.msra.gmra.mrb[28].mxu1 %vm1489_vm13, %v3417_v7  ;;  %v3064_v50 = vpack.c.bf16 %v3062_v44, %v3060_v21 }
 0x5da   : > { %3491 = vmatpush1.bf16.msra.mxu1 %v3485_v26  ;;  %3522 = vmatprep.mubr.bf16.mxu1 %v5430_v2 }
 0x5db   : > { %v3539_v4 = vrot.slane %v3065_v39, 2  ;;  %v3538_v18 = vrot.slane %v3064_v50, 2 }
 0x5dd   : > { %5061 = vmatprep.subr.msk.bf16.mxu1 %vm1493_vm12, %v3539_v4  ;;  %v3544_v3 = vsel %vm1493_vm12, %v3538_v18, 0 }
 0x5e1   : > { %5059 = vmatmul.mubr.msk.bf16.vlgmr.msra.gmra.mrb[32].mxu1 %vm1489_vm13, %v3476_v15 }
 0x5e2   : > { %3550 = vmatpush1.bf16.msra.mxu1 %v3544_v3  ;;  %3581 = vmatprep.mubr.bf16.mxu1 %v5430_v2 }
 0x5e4   : > { %v3596_v26 = vpop.permute.xlu1 %3595 }
 0x5e9   : > { %5062 = vmatmul.mubr.msk.bf16.vlgmr.msra.gmra.mrb[36].mxu1 %vm1489_vm13, %v3535_v25  ;;  %v5074_v25 = vld [vmem:[%s7211_s10 + $0x38] sm:$0xff] }
 0x5ea   : > { %4140 = vmatprep.mubr.bf16.mxu1 %v5430_v2  ;;  %v3782_v46 = vpack.c.bf16 %v5074_v25, %v5073_v24 }
 0x67c   : > { %v3118_v36 = vpop.f32.mrb[4].mxu1 }
 0x67d   : > { %v3120_v40 = vpop.f32.mrb[5].mxu1 }
 0x67e   : > { %v3122_v45 = vpop.f32.mrb[6].mxu1 }
 0x67f   : > { %v3123_v55 = vpop.f32.mrb[7].mxu1 }
 0x684   : > { %v3172_v29 = vpop.f32.mrb[8].mxu1 }
 0x685   : > { %v3173_v47 = vadd.f32 %v3172_v29, %v3118_v36  ;;  %v3174_v48 = vpop.f32.mrb[9].mxu1  ;;  %v3857_v36 = vld [vmem:[%s7213_s12] sm:$0xff] }
 0x686   : > { %v3175_v41 = vadd.f32 %v3174_v48, %v3120_v40  ;;  %v3176_v28 = vpop.f32.mrb[10].mxu1  ;;  %v3858_v40 = vld [vmem:[%s7213_s12 + $0x8] sm:$0xff] }
 0x687   : > { %v3177_v43 = vpop.f32.mrb[11].mxu1  ;;  %v3861_v45 = vpack.c.bf16 %v3858_v40, %v3857_v36 }
 0x688   : > { %v3875_v43 = vpop.permute.xlu1 %3874 }
 0x68c   : > { %v3229_v51 = vpop.f32.mrb[12].mxu1 }
 0x68d   : > { %v3236_v0 = vadd.f32 %v3229_v51, %v3173_v47  ;;  %v3231_v31 = vpop.f32.mrb[13].mxu1  ;;  %v3870_v47 = vpop.permute.xlu0 %3869 }
 0x68e   : > { %v3237_v33 = vadd.f32 %v3231_v31, %v3175_v41  ;;  %v3233_v37 = vpop.f32.mrb[14].mxu1 }
 0x68f   : > { %v3234_v58 = vpop.f32.mrb[15].mxu1 }
 0x694   : > { %v3288_v59 = vpop.f32.mrb[16].mxu1 }
 0x695   : > { %v3295_v34 = vadd.f32 %v3288_v59, %v3236_v0  ;;  %v3290_v27 = vpop.f32.mrb[17].mxu1 }
 0x696   : > { %v3296_v1 = vadd.f32 %v3290_v27, %v3237_v33  ;;  %v3292_v49 = vpop.f32.mrb[18].mxu1 }
 0x697   : > { %v3293_v52 = vpop.f32.mrb[19].mxu1 }
 0x69c   : > { %v3347_v35 = vpop.f32.mrb[20].mxu1 }
 0x69d   : > { %v3354_v57 = vadd.f32 %v3347_v35, %v3295_v34  ;;  %v3349_v60 = vpop.f32.mrb[21].mxu1 }
 0x69e   : > { %v3355_v20 = vadd.f32 %v3349_v60, %v3296_v1  ;;  %v3351_v19 = vpop.f32.mrb[22].mxu1 }
 0x69f   : > { %v3352_v54 = vpop.f32.mrb[23].mxu1 }
 0x6a4   : > { %v3406_v56 = vpop.f32.mrb[24].mxu1 }
 0x6a5   : > { %v3413_v61 = vadd.f32 %v3406_v56, %v3354_v57  ;;  %v3408_v9 = vpop.f32.mrb[25].mxu1 }
 0x6a6   : > { %v3414_v63 = vadd.f32 %v3408_v9, %v3355_v20  ;;  %v3410_v17 = vpop.f32.mrb[26].mxu1 }
 0x6a7   : > { %v3411_v8 = vpop.f32.mrb[27].mxu1 }
 0x6ac   : > { %v3465_v32 = vpop.f32.mrb[28].mxu1 }
 0x6ad   : > { %v3472_v11 = vadd.f32 %v3465_v32, %v3413_v61  ;;  %v3467_v12 = vpop.f32.mrb[29].mxu1 }
 0x6ae   : > { %v3473_v13 = vadd.f32 %v3467_v12, %v3414_v63  ;;  %v3469_v23 = vpop.f32.mrb[30].mxu1 }
 0x6af   : > { %v3470_v22 = vpop.f32.mrb[31].mxu1 }
 0x6b4   : > { %v3524_v7 = vpop.f32.mrb[32].mxu1 }
 0x6b5   : > { %v3531_v53 = vadd.f32 %v3524_v7, %v3472_v11  ;;  %v3526_v14 = vpop.f32.mrb[33].mxu1 }
 0x6b6   : > { %v3532_v10 = vadd.f32 %v3526_v14, %v3473_v13  ;;  %v3528_v21 = vpop.f32.mrb[34].mxu1 }
 0x6b7   : > { %v3529_v42 = vpop.f32.mrb[35].mxu1 }
 0x6bc   : > { %v3583_v44 = vpop.f32.mrb[36].mxu1 }
 0x6bd   : > { %v3590_v38 = vadd.f32 %v3583_v44, %v3531_v53  ;;  %v3585_v39 = vpop.f32.mrb[37].mxu1 }
 0x6be   : > { %v3591_v50 = vadd.f32 %v3585_v39, %v3532_v10  ;;  %v3587_v16 = vpop.f32.mrb[38].mxu1 }
 0x6bf   : > { %v3598_v4 = vadd.f32 %v3596_v26, %v3590_v38  ;;  %v3588_v15 = vpop.f32.mrb[39].mxu1 }
 0x6c0   : > { %v3599_v18 = vadd.f32 %v3596_v26, %v3591_v50 }
 0x6c1   : > { %v3783_v3 = vpack.c.bf16 %v3598_v4, %v3598_v4 }
 0x6c2   : > { %v3784_v62 = vpack.c.bf16 %v3599_v18, %v3599_v18 }
 0x6c3   : > { %v3789_v30 = vsel %vm3615_vm10, %v3783_v3, 0 }
 0x6c4   : > { %5075 = vmatprep.subr.msk.bf16.mxu0 %vm3615_vm10, %v3784_v62 }
 0x6c5   : > { %3795 = vmatpush1.bf16.msra.mxu0 %v3789_v30 }
 0x6c6   : > { %3893 = vmatprep.subr.bf16.mxu0 %v5562_v5 }
 0x6c8   : > { %5076 = vmatmul.mubr.msk.bf16.vlgmr.msra.gmra.mrb[12].mxu0 %vm3611_vm11, %v3782_v46 }
 0x6c9   : > { %3894 = vmatpush1.bf16.msra.mxu0 %v5564_v6  ;;  %3925 = vmatprep.mubr.bf16.mxu0 %v5430_v2 }
 0x6d0   : > { %5077 = vmatmul.mubr.msk.bf16.vlgmr.msra.gmra.mrb[16].mxu0 %vm552_vm0, %v3861_v45 }
 0x6d1   : > { %3935 = vmatprep.mubr.bf16.mxu0 %v5430_v2 }
 0x79b   : > { %v6583_v5 = vpop.f32.mrb[12].mxu0 }
 0x79c   : > { %7257 = vst [vmem:[#allocation3_spill] sm:$0xff] %v6583_v5  ;;  %v6585_v55 = vpop.f32.mrb[13].mxu0 }
 0x79d   : > { %7258 = vst [vmem:[#allocation4_spill] sm:$0xff] %v6585_v55  ;;  %v6587_v6 = vpop.f32.mrb[14].mxu0 }
 0x79e   : > { %7259 = vst [vmem:[#allocation5_spill] sm:$0xff] %v6587_v6  ;;  %v6589_v29 = vpop.f32.mrb[15].mxu0 }
 0x79f   : > { %7260 = vst [vmem:[#allocation6_spill] sm:$0xff] %v6589_v29 }
 0x7a3   : > { %v3927_v48 = vpop.f32.mrb[16].mxu0 }
 0x7a4   : > { %v3928_v41 = vadd.f32 %v3927_v48, %v3870_v47  ;;  %v3929_v28 = vpop.f32.mrb[17].mxu0 }
 0x7a5   : > { %v3930_v51 = vadd.f32 %v3929_v28, %v3870_v47  ;;  %v3931_v0 = vpop.f32.mrb[18].mxu0 }
 0x7a6   : > { %vm3946_vm1 = vcmp.ge.f32.partialorder %v3928_v41, 0.0  ;;  %v3954_v31 = vmul.f32 0.25, %v3928_v41  ;;  %v3932_v33 = vadd.f32 %v3931_v0, %v3875_v43  ;;  %v3933_v37 = vpop.f32.mrb[19].mxu0 }
 0x7a7   : > { %vm3947_vm2 = vcmp.ge.f32.partialorder %v3930_v51, 0.0  ;;  %v3955_v58 = vmul.f32 0.25, %v3930_v51  ;;  %v3934_v59 = vadd.f32 %v3933_v37, %v3875_v43 }
 0x7a8   : > { %vm3948_vm3 = vcmp.ge.f32.partialorder %v3932_v33, 0.0  ;;  %v3956_v34 = vmul.f32 0.25, %v3932_v33  ;;  %v3962_v27 = vsel %vm3946_vm1, %v3928_v41, %v3954_v31 }
 0x7a9   : > { %vm3949_vm4 = vcmp.ge.f32.partialorder %v3934_v59, 0.0  ;;  %v3957_v1 = vmul.f32 0.25, %v3934_v59  ;;  %3970 = vxpose.xlu0.b32.start.end [1/1] (short) %v3962_v27, 128  ;;  %v3963_v49 = vsel %vm3947_vm2, %v3930_v51, %v3955_v58 }
 0x7aa   : > { %v3964_v52 = vsel %vm3948_vm3, %v3932_v33, %v3956_v34  ;;  %4002 = vxpose.xlu1.b32.start.end [1/1] (short) %v3963_v49, 128 }
 0x7ab   : > { %v4050_v35 = vpack.c.bf16 %v3964_v52, %v3964_v52  ;;  %v3965_v57 = vsel %vm3949_vm4, %v3934_v59, %v3957_v1 }
 0x7ac   : > { %v4051_v60 = vpack.c.bf16 %v3965_v57, %v3965_v57 }
 0x7ad   : > { %v4103_v20 = vsel %vm4101_vm5, %v4050_v35, 0 }
 0x7ae   : > { %5079 = vmatprep.subr.msk.bf16.mxu1 %vm4101_vm5, %v4051_v60 }
 0x7af   : > { %4109 = vmatpush1.bf16.msra.mxu1 %v4103_v20 }
 0x829   : > { %v3986_v19 = vpop.trf.xlu0 }
 0x82a   : > { %v4018_v22 = vpop.trf.xlu1 }
 0x82d   : > { %v3987_v54 = vpop.trf.xlu0 }
 0x82e   : > { %v4034_v56 = vpack.c.bf16 %v3987_v54, %v3986_v19  ;;  %v4019_v14 = vpop.trf.xlu1 }
 0x82f   : > { %v4042_v24 = vpack.c.bf16 %v4019_v14, %v4018_v22 }
 0x830   : > { %5080 = vmatmul.mubr.msk.bf16.vlgmr.msra.gmra.mrb[40].mxu1 %vm4052_vm6, %v4034_v56 }
 0x831   : > { %v3988_v61 = vpop.trf.xlu0  ;;  %4150 = vmatprep.mubr.bf16.mxu1 %v5430_v2 }
 0x832   : > { %v4020_v42 = vpop.trf.xlu1 }
 0x835   : > { %v3989_v9 = vpop.trf.xlu0 }
 0x836   : > { %v4035_v63 = vpack.c.bf16 %v3989_v9, %v3988_v61  ;;  %v4021_v39 = vpop.trf.xlu1 }
 0x837   : > { %v4043_v30 = vpack.c.bf16 %v4021_v39, %v4020_v42 }
 0x838   : > { %5081 = vmatmul.mubr.msk.bf16.gmra.mrb[44].mxu1 %vm4052_vm6, %v4035_v63 }
 0x839   : > { %v3990_v17 = vpop.trf.xlu0  ;;  %4160 = vmatprep.mubr.bf16.mxu1 %v5430_v2 }
 0x83a   : > { %v4022_v4 = vpop.trf.xlu1 }
 0x83d   : > { %v3991_v8 = vpop.trf.xlu0 }
 0x83e   : > { %v4036_v32 = vpack.c.bf16 %v3991_v8, %v3990_v17  ;;  %v4023_v3 = vpop.trf.xlu1 }
 0x83f   : > { %v4044_v36 = vpack.c.bf16 %v4023_v3, %v4022_v4 }
 0x840   : > { %5082 = vmatmul.mubr.msk.bf16.gmra.mrb[48].mxu1 %vm4052_vm6, %v4036_v32 }
 0x841   : > { %v3992_v11 = vpop.trf.xlu0  ;;  %4170 = vmatprep.mubr.bf16.mxu1 %v5430_v2 }
 0x842   : > { %v4024_v25 = vpop.trf.xlu1 }
 0x845   : > { %v3993_v12 = vpop.trf.xlu0 }
 0x846   : > { %v4037_v13 = vpack.c.bf16 %v3993_v12, %v3992_v11  ;;  %v4025_v62 = vpop.trf.xlu1 }
 0x847   : > { %v4045_v47 = vpack.c.bf16 %v4025_v62, %v4024_v25 }
 0x848   : > { %5083 = vmatmul.mubr.msk.bf16.gmra.mrb[52].mxu1 %vm4052_vm6, %v4037_v13 }
 0x849   : > { %v3994_v23 = vpop.trf.xlu0  ;;  %4180 = vmatprep.mubr.bf16.mxu1 %v5430_v2 }
 0x84a   : > { %v4026_v46 = vpop.trf.xlu1 }
 0x84d   : > { %v3995_v7 = vpop.trf.xlu0 }
 0x84e   : > { %v4038_v53 = vpack.c.bf16 %v3995_v7, %v3994_v23  ;;  %v4027_v40 = vpop.trf.xlu1 }
 0x84f   : > { %v4046_v41 = vpack.c.bf16 %v4027_v40, %v4026_v46 }
 0x850   : > { %5084 = vmatmul.mubr.msk.bf16.gmra.mrb[56].mxu1 %vm4052_vm6, %v4038_v53 }
 0x851   : > { %v3996_v10 = vpop.trf.xlu0  ;;  %4190 = vmatprep.mubr.bf16.mxu1 %v5430_v2 }
 0x852   : > { %v4028_v45 = vpop.trf.xlu1 }
 0x855   : > { %v3997_v21 = vpop.trf.xlu0 }
 0x856   : > { %v4039_v44 = vpack.c.bf16 %v3997_v21, %v3996_v10  ;;  %v4029_v48 = vpop.trf.xlu1 }
 0x857   : > { %v4047_v43 = vpack.c.bf16 %v4029_v48, %v4028_v45 }
 0x858   : > { %5085 = vmatmul.mubr.msk.bf16.gmra.mrb[60].mxu1 %vm4052_vm6, %v4039_v44 }
 0x859   : > { %v3998_v38 = vpop.trf.xlu0  ;;  %4200 = vmatprep.mubr.bf16.mxu1 %v5430_v2 }
 0x85a   : > { %v4030_v28 = vpop.trf.xlu1 }
 0x85d   : > { %v3999_v26 = vpop.trf.xlu0 }
 0x85e   : > { %v4040_v50 = vpack.c.bf16 %v3999_v26, %v3998_v38  ;;  %v4031_v51 = vpop.trf.xlu1 }
 0x85f   : > { %v4048_v31 = vpack.c.bf16 %v4031_v51, %v4030_v28 }
 0x860   : > { %5086 = vmatmul.mubr.msk.bf16.gmra.mrb[64].mxu1 %vm4052_vm6, %v4040_v50 }
 0x861   : > { %v4000_v16 = vpop.trf.xlu0  ;;  %4210 = vmatprep.mubr.bf16.mxu1 %v5430_v2 }
 0x862   : > { %v4032_v0 = vpop.trf.xlu1 }
 0x865   : > { %v4001_v15 = vpop.trf.xlu0 }
 0x866   : > { %v4041_v18 = vpack.c.bf16 %v4001_v15, %v4000_v16  ;;  %v4033_v33 = vpop.trf.xlu1 }
 0x867   : > { %v4049_v37 = vpack.c.bf16 %v4033_v33, %v4032_v0 }
 0x868   : > { %5087 = vmatmul.mubr.msk.bf16.gmra.mrb[68].mxu1 %vm4052_vm6, %v4041_v18 }
 0x869   : > { %4220 = vmatprep.mubr.bf16.mxu1 %v5430_v2 }
 0x870   : > { %5088 = vmatmul.mubr.msk.bf16.gmra.mrb[72].mxu1 %vm4052_vm6, %v4042_v24 }
 0x871   : > { %4230 = vmatprep.mubr.bf16.mxu1 %v5430_v2 }
 0x878   : > { %5089 = vmatmul.mubr.msk.bf16.gmra.mrb[76].mxu1 %vm4052_vm6, %v4043_v30 }
 0x879   : > { %4240 = vmatprep.mubr.bf16.mxu1 %v5430_v2 }
 0x880   : > { %5090 = vmatmul.mubr.msk.bf16.gmra.mrb[80].mxu1 %vm4052_vm6, %v4044_v36 }
 0x881   : > { %4250 = vmatprep.mubr.bf16.mxu1 %v5430_v2 }
 0x888   : > { %5091 = vmatmul.mubr.msk.bf16.gmra.mrb[84].mxu1 %vm4052_vm6, %v4045_v47 }
 0x889   : > { %4260 = vmatprep.mubr.bf16.mxu1 %v5430_v2 }
 0x890   : > { %5092 = vmatmul.mubr.msk.bf16.gmra.mrb[88].mxu1 %vm4052_vm6, %v4046_v41 }
 0x891   : > { %4270 = vmatprep.mubr.bf16.mxu1 %v5430_v2 }
 0x898   : > { %5093 = vmatmul.mubr.msk.bf16.gmra.mrb[92].mxu1 %vm4052_vm6, %v4047_v43 }
 0x899   : > { %4280 = vmatprep.mubr.bf16.mxu1 %v5430_v2 }
 0x8a0   : > { %5094 = vmatmul.mubr.msk.bf16.gmra.mrb[96].mxu1 %vm4052_vm6, %v4048_v31 }
 0x8a1   : > { %4290 = vmatprep.mubr.bf16.mxu1 %v5430_v2 }
 0x8a8   : > { %5095 = vmatmul.mubr.msk.bf16.gmra.mrb[100].mxu1 %vm4052_vm6, %v4049_v37 }
 0x903   : > { %v6622_v58 = vpop.f32.mrb[40].mxu1 }
 0x904   : > { %v6624_v59 = vpop.f32.mrb[41].mxu1 }
 0x905   : > { %v4301_v34 = vmax.f32 %v6622_v58, %v6624_v59  ;;  %v6628_v27 = vpop.f32.mrb[42].mxu1 }
 0x906   : > { %v6630_v1 = vpop.f32.mrb[43].mxu1 }
 0x907   : > { %v4304_v49 = vmax.f32 %v6628_v27, %v6630_v1  ;;  %4302 = vmax.xlane.f32.xlu0 %v4301_v34 }
 0x909   : > { %4305 = vmax.xlane.f32.xlu1 %v4304_v49 }
 0x90b   : > { %v6634_v2 = vpop.f32.mrb[44].mxu1 }
 0x90c   : > { %v6636_v52 = vpop.f32.mrb[45].mxu1 }
 0x90d   : > { %v4307_v35 = vmax.f32 %v6634_v2, %v6636_v52  ;;  %v6640_v57 = vpop.f32.mrb[46].mxu1 }
 0x90e   : > { %v6642_v60 = vpop.f32.mrb[47].mxu1 }
 0x90f   : > { %4308 = vmax.xlane.f32.xlu0 %v4307_v35  ;;  %v4310_v20 = vmax.f32 %v6640_v57, %v6642_v60 }
 0x913   : > { %4311 = vmax.xlane.f32.xlu0 %v4310_v20  ;;  %v6646_v19 = vpop.f32.mrb[48].mxu1 }
 0x914   : > { %v6648_v54 = vpop.f32.mrb[49].mxu1 }
 0x915   : > { %v4313_v56 = vmax.f32 %v6646_v19, %v6648_v54  ;;  %v6652_v61 = vpop.f32.mrb[50].mxu1 }
 0x916   : > { %v6654_v9 = vpop.f32.mrb[51].mxu1 }
 0x917   : > { %v4316_v63 = vmax.f32 %v6652_v61, %v6654_v9  ;;  %4314 = vmax.xlane.f32.xlu1 %v4313_v56 }
 0x919   : > { %4317 = vmax.xlane.f32.xlu0 %v4316_v63 }
 0x91b   : > { %v6658_v17 = vpop.f32.mrb[52].mxu1 }
 0x91c   : > { %v6660_v8 = vpop.f32.mrb[53].mxu1 }
 0x91d   : > { %v4319_v32 = vmax.f32 %v6658_v17, %v6660_v8  ;;  %v6664_v11 = vpop.f32.mrb[54].mxu1 }
 0x91e   : > { %v6666_v12 = vpop.f32.mrb[55].mxu1 }
 0x91f   : > { %v4322_v13 = vmax.f32 %v6664_v11, %v6666_v12  ;;  %4320 = vmax.xlane.f32.xlu1 %v4319_v32 }
 0x921   : > { %4323 = vmax.xlane.f32.xlu0 %v4322_v13 }
 0x923   : > { %v6670_v23 = vpop.f32.mrb[56].mxu1 }
 0x924   : > { %v6672_v22 = vpop.f32.mrb[57].mxu1 }
 0x925   : > { %v4325_v7 = vmax.f32 %v6670_v23, %v6672_v22  ;;  %v6676_v53 = vpop.f32.mrb[58].mxu1 }
 0x926   : > { %v6678_v14 = vpop.f32.mrb[59].mxu1 }
 0x927   : > { %v4328_v10 = vmax.f32 %v6676_v53, %v6678_v14  ;;  %4326 = vmax.xlane.f32.xlu1 %v4325_v7 }
 0x929   : > { %4329 = vmax.xlane.f32.xlu0 %v4328_v10 }
 0x92b   : > { %v6682_v21 = vpop.f32.mrb[60].mxu1 }
 0x92c   : > { %v6684_v42 = vpop.f32.mrb[61].mxu1 }
 0x92d   : > { %v4331_v44 = vmax.f32 %v6682_v21, %v6684_v42  ;;  %v6688_v38 = vpop.f32.mrb[62].mxu1 }
 0x92e   : > { %v6690_v39 = vpop.f32.mrb[63].mxu1 }
 0x92f   : > { %v4334_v26 = vmax.f32 %v6688_v38, %v6690_v39  ;;  %4332 = vmax.xlane.f32.xlu1 %v4331_v44 }
 0x931   : > { %4335 = vmax.xlane.f32.xlu0 %v4334_v26 }
 0x933   : > { %v6694_v50 = vpop.f32.mrb[64].mxu1 }
 0x934   : > { %v6696_v16 = vpop.f32.mrb[65].mxu1 }
 0x935   : > { %v4337_v4 = vmax.f32 %v6694_v50, %v6696_v16  ;;  %v6700_v15 = vpop.f32.mrb[66].mxu1 }
 0x936   : > { %v6702_v18 = vpop.f32.mrb[67].mxu1 }
 0x937   : > { %v4340_v3 = vmax.f32 %v6700_v15, %v6702_v18  ;;  %4338 = vmax.xlane.f32.xlu1 %v4337_v4 }
 0x939   : > { %4341 = vmax.xlane.f32.xlu0 %v4340_v3 }
 0x93b   : > { %v6706_v24 = vpop.f32.mrb[68].mxu1 }
 0x93c   : > { %v6708_v25 = vpop.f32.mrb[69].mxu1 }
 0x93d   : > { %v4343_v62 = vmax.f32 %v6706_v24, %v6708_v25  ;;  %v6712_v30 = vpop.f32.mrb[70].mxu1 }
 0x93e   : > { %v6714_v46 = vpop.f32.mrb[71].mxu1 }
 0x93f   : > { %v4346_v36 = vmax.f32 %v6712_v30, %v6714_v46  ;;  %4344 = vmax.xlane.f32.xlu1 %v4343_v62 }
 0x941   : > { %4347 = vmax.xlane.f32.xlu0 %v4346_v36 }
 0x943   : > { %v6718_v40 = vpop.f32.mrb[72].mxu1 }
 0x944   : > { %v6720_v45 = vpop.f32.mrb[73].mxu1 }
 0x945   : > { %v4349_v47 = vmax.f32 %v6718_v40, %v6720_v45  ;;  %v6724_v48 = vpop.f32.mrb[74].mxu1 }
 0x946   : > { %v6726_v41 = vpop.f32.mrb[75].mxu1 }
 0x947   : > { %7261 = vst [vmem:[#allocation7_spill] sm:$0xff] %v6726_v41  ;;  %v4352_v28 = vmax.f32 %v6724_v48, %v6726_v41  ;;  %4350 = vmax.xlane.f32.xlu1 %v4349_v47 }
 0x949   : > { %4353 = vmax.xlane.f32.xlu0 %v4352_v28 }
 0x94b   : > { %v6730_v43 = vpop.f32.mrb[76].mxu1 }
 0x94c   : > { %7262 = vst [vmem:[#allocation8_spill] sm:$0xff] %v6730_v43  ;;  %v6732_v51 = vpop.f32.mrb[77].mxu1 }
 0x94d   : > { %7263 = vst [vmem:[#allocation9_spill] sm:$0xff] %v6732_v51  ;;  %v4355_v0 = vmax.f32 %v6730_v43, %v6732_v51  ;;  %v6736_v31 = vpop.f32.mrb[78].mxu1 }
 0x94e   : > { %7264 = vst [vmem:[#allocation10_spill] sm:$0xff] %v6736_v31  ;;  %v6738_v33 = vpop.f32.mrb[79].mxu1 }
 0x94f   : > { %7265 = vst [vmem:[#allocation11_spill] sm:$0xff] %v6738_v33  ;;  %v4358_v37 = vmax.f32 %v6736_v31, %v6738_v33  ;;  %4356 = vmax.xlane.f32.xlu1 %v4355_v0 }
 0x951   : > { %4359 = vmax.xlane.f32.xlu0 %v4358_v37 }
 0x953   : > { %v6742_v34 = vpop.f32.mrb[80].mxu1 }
 0x954   : > { %7266 = vst [vmem:[#allocation12_spill] sm:$0xff] %v6742_v34  ;;  %v6744_v49 = vpop.f32.mrb[81].mxu1 }
 0x955   : > { %7267 = vst [vmem:[#allocation13_spill] sm:$0xff] %v6744_v49  ;;  %v4361_v35 = vmax.f32 %v6742_v34, %v6744_v49  ;;  %v6748_v20 = vpop.f32.mrb[82].mxu1 }
 0x956   : > { %7268 = vst [vmem:[#allocation14_spill] sm:$0xff] %v6748_v20  ;;  %v6750_v56 = vpop.f32.mrb[83].mxu1 }
 0x957   : > { %7269 = vst [vmem:[#allocation15_spill] sm:$0xff] %v6750_v56  ;;  %v4364_v63 = vmax.f32 %v6748_v20, %v6750_v56  ;;  %4362 = vmax.xlane.f32.xlu1 %v4361_v35  ;;  %v3860_v35 = vld [vmem:[%s7213_s12 + $0x18] sm:$0xff] }
 0x959   : > { %4365 = vmax.xlane.f32.xlu0 %v4364_v63 }
 0x95b   : > { %v6754_v32 = vpop.f32.mrb[84].mxu1 }
 0x95c   : > { %7270 = vst [vmem:[#allocation16_spill] sm:$0xff] %v6754_v32  ;;  %v6756_v13 = vpop.f32.mrb[85].mxu1 }
 0x95d   : > { %7271 = vst [vmem:[#allocation17_spill] sm:$0xff] %v6756_v13  ;;  %v4367_v7 = vmax.f32 %v6754_v32, %v6756_v13  ;;  %v6760_v10 = vpop.f32.mrb[86].mxu1  ;;  %v3859_v32 = vld [vmem:[%s7213_s12 + $0x10] sm:$0xff] }
 0x95e   : > { %7272 = vst [vmem:[#allocation18_spill] sm:$0xff] %v6760_v10  ;;  %v6762_v44 = vpop.f32.mrb[87].mxu1  ;;  %v3862_v56 = vpack.c.bf16 %v3860_v35, %v3859_v32 }
 0x95f   : > { %7273 = vst [vmem:[#allocation19_spill] sm:$0xff] %v6762_v44  ;;  %v4370_v26 = vmax.f32 %v6760_v10, %v6762_v44  ;;  %4368 = vmax.xlane.f32.xlu1 %v4367_v7 }
 0x960   : > { %5078 = vmatmul.mubr.msk.bf16.gmra.mrb[20].mxu0 %vm552_vm0, %v3862_v56 }
 0x961   : > { %4371 = vmax.xlane.f32.xlu0 %v4370_v26 }
 0x963   : > { %v6766_v4 = vpop.f32.mrb[88].mxu1 }
 0x964   : > { %v6768_v3 = vpop.f32.mrb[89].mxu1 }
 0x965   : > { %v6772_v36 = vpop.f32.mrb[90].mxu1 }
 0x966   : > { %v6774_v47 = vpop.f32.mrb[91].mxu1 }
 0x96b   : > { %v6778_v0 = vpop.f32.mrb[92].mxu1 }
 0x96c   : > { %v6780_v37 = vpop.f32.mrb[93].mxu1 }
 0x96d   : > { %v6784_v63 = vpop.f32.mrb[94].mxu1 }
 0x96e   : > { %v6786_v7 = vpop.f32.mrb[95].mxu1 }
 0x973   : > { %v6790_v62 = vpop.f32.mrb[96].mxu1 }
 0x974   : > { %v6792_v29 = vpop.f32.mrb[97].mxu1 }
 0x975   : > { %v6796_v6 = vpop.f32.mrb[98].mxu1 }
 0x976   : > { %v6798_v55 = vpop.f32.mrb[99].mxu1 }
 0x97b   : > { %v6802_v5 = vpop.f32.mrb[100].mxu1 }
 0x97c   : > { %v6804_v44 = vpop.f32.mrb[101].mxu1 }
 0x97d   : > { %v6808_v10 = vpop.f32.mrb[102].mxu1 }
 0x97e   : > { %v6810_v13 = vpop.f32.mrb[103].mxu1 }
 0x994   : > { %v4303_v20 = vpop.xlane.xlu0 %4302 }
 0x995   : > { %v4397_v26 = vsub.f32 %v6622_v58, %v4303_v20  ;;  %v4398_v49 = vsub.f32 %v6624_v59, %v4303_v20 }
 0x996   : > { %v4306_v34 = vpop.xlane.xlu1 %4305 }
 0x997   : > { %v4461_v33 = vmul.f32 1.442695, %v4397_v26  ;;  %v4463_v31 = vmul.f32 1.442695, %v4398_v49  ;;  %v4399_v28 = vsub.f32 %v6628_v27, %v4306_v34  ;;  %v4400_v51 = vsub.f32 %v6630_v1, %v4306_v34 }
 0x999   : > { %5228 = vpow2.f32 %v4461_v33  ;;  %v4465_v43 = vmul.f32 1.442695, %v4399_v28  ;;  %v4467_v41 = vmul.f32 1.442695, %v4400_v51 }
 0x99a   : > { %5230 = vpow2.f32 %v4463_v31 }
 0x99b   : > { %5232 = vpow2.f32 %v4465_v43 }
 0x99c   : > { %5234 = vpow2.f32 %v4467_v41  ;;  %v4309_v32 = vpop.xlane.xlu0 %4308 }
 0x99d   : > { %v4401_v56 = vsub.f32 %v6634_v2, %v4309_v32  ;;  %v4402_v58 = vsub.f32 %v6636_v52, %v4309_v32 }
 0x99f   : > { %v4469_v35 = vmul.f32 1.442695, %v4401_v56  ;;  %v4471_v59 = vmul.f32 1.442695, %v4402_v58 }
 0x9a0   : > { %v4312_v20 = vpop.xlane.xlu0 %4311 }
 0x9a1   : > { %5236 = vpow2.f32 %v4469_v35  ;;  %v4403_v49 = vsub.f32 %v6640_v57, %v4312_v20  ;;  %v4404_v27 = vsub.f32 %v6642_v60, %v4312_v20 }
 0x9a2   : > { %5238 = vpow2.f32 %v4471_v59  ;;  %v7274_v59 = vmax.f32 %v6766_v4, %v6768_v3 }
 0x9a3   : > { %v6829_v1 = vpop.eup %5228  ;;  %v4473_v51 = vmul.f32 1.442695, %v4403_v49  ;;  %v4475_v31 = vmul.f32 1.442695, %v4404_v27 }
 0x9a4   : > { %v6831_v43 = vpop.eup %5230  ;;  %v4315_v41 = vpop.xlane.xlu1 %4314 }
 0x9a5   : > { %v6833_v33 = vpop.eup %5232  ;;  %5240 = vpow2.f32 %v4473_v51  ;;  %v4405_v2 = vsub.f32 %v6646_v19, %v4315_v41  ;;  %v4406_v52 = vsub.f32 %v6648_v54, %v4315_v41  ;;  %v4589_v57 = vadd.f32 %v6831_v43, %v6829_v1 }
 0x9a6   : > { %v6839_v34 = vpop.eup %5234  ;;  %5242 = vpow2.f32 %v4475_v31  ;;  %v4318_v60 = vpop.xlane.xlu0 %4317  ;;  %v7275_v51 = vmax.f32 %v6772_v36, %v6774_v47 }
 0x9a7   : > { %v4477_v28 = vmul.f32 1.442695, %v4405_v2  ;;  %v4479_v26 = vmul.f32 1.442695, %v4406_v52  ;;  %v4407_v32 = vsub.f32 %v6652_v61, %v4318_v60  ;;  %v4408_v56 = vsub.f32 %v6654_v9, %v4318_v60  ;;  %4590 = vadd.xlane.f32.xlu1 %v4589_v57 }
 0x9a8   : > { %v4592_v58 = vadd.f32 %v6839_v34, %v6833_v33 }
 0x9a9   : > { %5244 = vpow2.f32 %v4477_v28  ;;  %v4481_v19 = vmul.f32 1.442695, %v4407_v32  ;;  %v4483_v54 = vmul.f32 1.442695, %v4408_v56  ;;  %v7276_v56 = vmax.f32 %v6778_v0, %v6780_v37 }
 0x9aa   : > { %5246 = vpow2.f32 %v4479_v26  ;;  %4593 = vadd.xlane.f32.xlu0 %v4592_v58 }
 0x9ab   : > { %v6845_v35 = vpop.eup %5236  ;;  %5248 = vpow2.f32 %v4481_v19  ;;  %4374 = vmax.xlane.f32.xlu1 %v7274_v59 }
 0x9ac   : > { %v6850_v20 = vpop.eup %5238  ;;  %5250 = vpow2.f32 %v4483_v54  ;;  %v4321_v61 = vpop.xlane.xlu1 %4320 }
 0x9ad   : > { %v4409_v9 = vsub.f32 %v6658_v17, %v4321_v61  ;;  %v4410_v49 = vsub.f32 %v6660_v8, %v4321_v61  ;;  %v4595_v27 = vadd.f32 %v6850_v20, %v6845_v35 }
 0x9ae   : > { %4377 = vmax.xlane.f32.xlu0 %v7275_v51  ;;  %v4324_v31 = vpop.xlane.xlu0 %4323 }
 0x9af   : > { %v6859_v41 = vpop.eup %5240  ;;  %v4485_v2 = vmul.f32 1.442695, %v4409_v9  ;;  %v4487_v52 = vmul.f32 1.442695, %v4410_v49  ;;  %v4411_v57 = vsub.f32 %v6664_v11, %v4324_v31  ;;  %v4412_v60 = vsub.f32 %v6666_v12, %v4324_v31  ;;  %4596 = vadd.xlane.f32.xlu1 %v4595_v27 }
 0x9b0   : > { %v6863_v17 = vpop.eup %5242 }
 0x9b1   : > { %5252 = vpow2.f32 %v4485_v2  ;;  %v4489_v8 = vmul.f32 1.442695, %v4411_v57  ;;  %v4491_v28 = vmul.f32 1.442695, %v4412_v60  ;;  %v4598_v26 = vadd.f32 %v6863_v17, %v6859_v41 }
 0x9b2   : > { %5254 = vpow2.f32 %v4487_v52  ;;  %v7277_v2 = vmax.f32 %v6784_v63, %v6786_v7 }
 0x9b3   : > { %v6867_v32 = vpop.eup %5244  ;;  %5256 = vpow2.f32 %v4489_v8  ;;  %4599 = vadd.xlane.f32.xlu0 %v4598_v26  ;;  %4380 = vmax.xlane.f32.xlu1 %v7276_v56 }
 0x9b4   : > { %v6872_v11 = vpop.eup %5246  ;;  %5258 = vpow2.f32 %v4491_v28  ;;  %v4327_v12 = vpop.xlane.xlu1 %4326 }
 0x9b5   : > { %v6874_v58 = vpop.eup %5248  ;;  %v4413_v19 = vsub.f32 %v6670_v23, %v4327_v12  ;;  %v4414_v54 = vsub.f32 %v6672_v22, %v4327_v12  ;;  %v4601_v59 = vadd.f32 %v6872_v11, %v6867_v32 }
 0x9b6   : > { %v6880_v61 = vpop.eup %5250  ;;  %v4330_v9 = vpop.xlane.xlu0 %4329 }
 0x9b7   : > { %v4493_v49 = vmul.f32 1.442695, %v4413_v19  ;;  %v4495_v27 = vmul.f32 1.442695, %v4414_v54  ;;  %v4415_v51 = vsub.f32 %v6676_v53, %v4330_v9  ;;  %v4416_v31 = vsub.f32 %v6678_v14, %v4330_v9  ;;  %4602 = vadd.xlane.f32.xlu1 %v4601_v59  ;;  %4383 = vmax.xlane.f32.xlu0 %v7277_v2 }
 0x9b8   : > { %v4604_v52 = vadd.f32 %v6880_v61, %v6874_v58  ;;  %v7278_v53 = vmax.f32 %v6790_v62, %v6792_v29 }
 0x9b9   : > { %5260 = vpow2.f32 %v4493_v49  ;;  %v4497_v23 = vmul.f32 1.442695, %v4415_v51  ;;  %v4499_v22 = vmul.f32 1.442695, %v4416_v31 }
 0x9ba   : > { %5262 = vpow2.f32 %v4495_v27  ;;  %v7279_v27 = vmax.f32 %v6796_v6, %v6798_v55 }
 0x9bb   : > { %v6889_v57 = vpop.eup %5252  ;;  %5264 = vpow2.f32 %v4497_v23  ;;  %4605 = vadd.xlane.f32.xlu0 %v4604_v52  ;;  %4386 = vmax.xlane.f32.xlu1 %v7278_v53 }
 0x9bc   : > { %v6894_v14 = vpop.eup %5254  ;;  %5266 = vpow2.f32 %v4499_v22  ;;  %v4333_v60 = vpop.xlane.xlu1 %4332 }
 0x9bd   : > { %v6896_v8 = vpop.eup %5256  ;;  %v4417_v28 = vsub.f32 %v6682_v21, %v4333_v60  ;;  %v4418_v26 = vsub.f32 %v6684_v42, %v4333_v60  ;;  %v4607_v56 = vadd.f32 %v6894_v14, %v6889_v57 }
 0x9be   : > { %v6902_v12 = vpop.eup %5258  ;;  %v4336_v19 = vpop.xlane.xlu0 %4335 }
 0x9bf   : > { %v4501_v54 = vmul.f32 1.442695, %v4417_v28  ;;  %v4503_v59 = vmul.f32 1.442695, %v4418_v26  ;;  %v4419_v9 = vsub.f32 %v6688_v38, %v4336_v19  ;;  %v4420_v49 = vsub.f32 %v6690_v39, %v4336_v19  ;;  %4608 = vadd.xlane.f32.xlu1 %v4607_v56  ;;  %4389 = vmax.xlane.f32.xlu0 %v7279_v27 }
 0x9c0   : > { %v4610_v51 = vadd.f32 %v6902_v12, %v6896_v8  ;;  %v7280_v38 = vmax.f32 %v6802_v5, %v6804_v44 }
 0x9c1   : > { %5268 = vpow2.f32 %v4501_v54  ;;  %v4505_v21 = vmul.f32 1.442695, %v4419_v9  ;;  %v4507_v42 = vmul.f32 1.442695, %v4420_v49 }
 0x9c2   : > { %5270 = vpow2.f32 %v4503_v59  ;;  %v7281_v59 = vmax.f32 %v6808_v10, %v6810_v13 }
 0x9c3   : > { %v6911_v31 = vpop.eup %5260  ;;  %5272 = vpow2.f32 %v4505_v21  ;;  %4611 = vadd.xlane.f32.xlu0 %v4610_v51  ;;  %4392 = vmax.xlane.f32.xlu1 %v7280_v38 }
 0x9c4   : > { %v6916_v39 = vpop.eup %5262  ;;  %5274 = vpow2.f32 %v4507_v42  ;;  %v4339_v2 = vpop.xlane.xlu1 %4338 }
 0x9c5   : > { %v6918_v23 = vpop.eup %5264  ;;  %v4421_v22 = vsub.f32 %v6694_v50, %v4339_v2  ;;  %v4422_v52 = vsub.f32 %v6696_v16, %v4339_v2  ;;  %v4613_v53 = vadd.f32 %v6916_v39, %v6911_v31 }
 0x9c6   : > { %v6924_v60 = vpop.eup %5266  ;;  %v4342_v28 = vpop.xlane.xlu0 %4341 }
 0x9c7   : > { %v4509_v26 = vmul.f32 1.442695, %v4421_v22  ;;  %v4511_v56 = vmul.f32 1.442695, %v4422_v52  ;;  %v4423_v19 = vsub.f32 %v6700_v15, %v4342_v28  ;;  %v4424_v54 = vsub.f32 %v6702_v18, %v4342_v28  ;;  %4614 = vadd.xlane.f32.xlu1 %v4613_v53  ;;  %4395 = vmax.xlane.f32.xlu0 %v7281_v59 }
 0x9c8   : > { %v4616_v9 = vadd.f32 %v6924_v60, %v6918_v23 }
 0x9c9   : > { %5276 = vpow2.f32 %v4509_v26  ;;  %v4513_v50 = vmul.f32 1.442695, %v4423_v19  ;;  %v4515_v16 = vmul.f32 1.442695, %v4424_v54 }
 0x9ca   : > { %5278 = vpow2.f32 %v4511_v56 }
 0x9cb   : > { %v6933_v49 = vpop.eup %5268  ;;  %5280 = vpow2.f32 %v4513_v50  ;;  %4617 = vadd.xlane.f32.xlu0 %v4616_v9 }
 0x9cc   : > { %v6935_v27 = vpop.eup %5270  ;;  %5282 = vpow2.f32 %v4515_v16  ;;  %v4345_v15 = vpop.xlane.xlu1 %4344 }
 0x9cd   : > { %v6937_v18 = vpop.eup %5272  ;;  %v4425_v21 = vsub.f32 %v6706_v24, %v4345_v15  ;;  %v4426_v42 = vsub.f32 %v6708_v25, %v4345_v15  ;;  %v4619_v51 = vadd.f32 %v6935_v27, %v6933_v49 }
 0x9ce   : > { %v6943_v38 = vpop.eup %5274  ;;  %v4348_v2 = vpop.xlane.xlu0 %4347 }
 0x9cf   : > { %v4517_v22 = vmul.f32 1.442695, %v4425_v21  ;;  %v4519_v52 = vmul.f32 1.442695, %v4426_v42  ;;  %v4427_v53 = vsub.f32 %v6712_v30, %v4348_v2  ;;  %v4428_v28 = vsub.f32 %v6714_v46, %v4348_v2  ;;  %4620 = vadd.xlane.f32.xlu1 %v4619_v51  ;;  %v7282_v51 = vld [vmem:[#allocation7_spill] sm:$0xff] }
 0x9d0   : > { %v4622_v26 = vadd.f32 %v6943_v38, %v6937_v18 }
 0x9d1   : > { %5284 = vpow2.f32 %v4517_v22  ;;  %v4521_v24 = vmul.f32 1.442695, %v4427_v53  ;;  %v4523_v56 = vmul.f32 1.442695, %v4428_v28 }
 0x9d2   : > { %5286 = vpow2.f32 %v4519_v52  ;;  %4623 = vadd.xlane.f32.xlu0 %v4622_v26 }
 0x9d3   : > { %v6949_v25 = vpop.eup %5276  ;;  %5288 = vpow2.f32 %v4521_v24 }
 0x9d4   : > { %v6951_v19 = vpop.eup %5278  ;;  %5290 = vpow2.f32 %v4523_v56  ;;  %v4351_v54 = vpop.xlane.xlu1 %4350  ;;  %v7286_v56 = vld [vmem:[#allocation9_spill] sm:$0xff] }
 0x9d5   : > { %v6953_v59 = vpop.eup %5280  ;;  %v4429_v30 = vsub.f32 %v6718_v40, %v4351_v54  ;;  %v4430_v46 = vsub.f32 %v6720_v45, %v4351_v54  ;;  %v4625_v50 = vadd.f32 %v6951_v19, %v6949_v25 }
 0x9d6   : > { %v6959_v16 = vpop.eup %5282  ;;  %v4354_v9 = vpop.xlane.xlu0 %4353 }
 0x9d7   : > { %v4525_v15 = vmul.f32 1.442695, %v4429_v30  ;;  %v4527_v21 = vmul.f32 1.442695, %v4430_v46  ;;  %v4431_v42 = vsub.f32 %v6724_v48, %v4354_v9  ;;  %v4432_v2 = vsub.f32 %v7282_v51, %v4354_v9  ;;  %4626 = vadd.xlane.f32.xlu1 %v4625_v50  ;;  %v7285_v48 = vld [vmem:[#allocation8_spill] sm:$0xff]  ;;  %v7289_v51 = vld [vmem:[#allocation11_spill] sm:$0xff] }
 0x9d8   : > { %v4628_v22 = vadd.f32 %v6959_v16, %v6953_v59 }
 0x9d9   : > { %5292 = vpow2.f32 %v4525_v15  ;;  %v4529_v40 = vmul.f32 1.442695, %v4431_v42  ;;  %v4531_v52 = vmul.f32 1.442695, %v4432_v2 }
 0x9da   : > { %5294 = vpow2.f32 %v4527_v21  ;;  %4629 = vadd.xlane.f32.xlu0 %v4628_v22  ;;  %v7288_v21 = vld [vmem:[#allocation10_spill] sm:$0xff] }
 0x9db   : > { %v6965_v45 = vpop.eup %5284  ;;  %5296 = vpow2.f32 %v4529_v40 }
 0x9dc   : > { %7283 = vst [vmem:[#allocation7_spill] sm:$0xff] %v6965_v45  ;;  %v6967_v53 = vpop.eup %5286  ;;  %5298 = vpow2.f32 %v4531_v52  ;;  %v4357_v28 = vpop.xlane.xlu1 %4356 }
 0x9dd   : > { %v6969_v26 = vpop.eup %5288  ;;  %v4433_v24 = vsub.f32 %v7285_v48, %v4357_v28  ;;  %v4434_v54 = vsub.f32 %v7286_v56, %v4357_v28  ;;  %v4631_v30 = vadd.f32 %v6967_v53, %v6965_v45  ;;  %v7297_v45 = vld [vmem:[#allocation15_spill] sm:$0xff] }
 0x9de   : > { %7284 = vst [vmem:[#allocation20_spill] sm:$0xff] %v6969_v26  ;;  %v6975_v46 = vpop.eup %5290  ;;  %v4360_v50 = vpop.xlane.xlu0 %4359 }
 0x9df   : > { %7287 = vst [vmem:[#allocation8_spill] sm:$0xff] %v6975_v46  ;;  %v4533_v9 = vmul.f32 1.442695, %v4433_v24  ;;  %v4535_v15 = vmul.f32 1.442695, %v4434_v54  ;;  %v4435_v42 = vsub.f32 %v7288_v21, %v4360_v50  ;;  %v4436_v2 = vsub.f32 %v7289_v51, %v4360_v50  ;;  %4632 = vadd.xlane.f32.xlu1 %v4631_v30  ;;  %v7293_v54 = vld [vmem:[#allocation12_spill] sm:$0xff] }
 0x9e0   : > { %v4634_v22 = vadd.f32 %v6975_v46, %v6969_v26  ;;  %v7294_v30 = vld [vmem:[#allocation13_spill] sm:$0xff] }
 0x9e1   : > { %5300 = vpow2.f32 %v4533_v9  ;;  %v4537_v40 = vmul.f32 1.442695, %v4435_v42  ;;  %v4539_v52 = vmul.f32 1.442695, %v4436_v2 }
 0x9e2   : > { %5302 = vpow2.f32 %v4535_v15  ;;  %4635 = vadd.xlane.f32.xlu0 %v4634_v22  ;;  %v7296_v22 = vld [vmem:[#allocation14_spill] sm:$0xff] }
 0x9e3   : > { %v6981_v28 = vpop.eup %5292  ;;  %5304 = vpow2.f32 %v4537_v40 }
 0x9e4   : > { %7290 = vst [vmem:[#allocation9_spill] sm:$0xff] %v6981_v28  ;;  %v6983_v48 = vpop.eup %5294  ;;  %5306 = vpow2.f32 %v4539_v52  ;;  %v4363_v24 = vpop.xlane.xlu1 %4362 }
 0x9e5   : > { %7291 = vst [vmem:[#allocation10_spill] sm:$0xff] %v6983_v48  ;;  %v6985_v56 = vpop.eup %5296  ;;  %v4437_v50 = vsub.f32 %v7293_v54, %v4363_v24  ;;  %v4438_v21 = vsub.f32 %v7294_v30, %v4363_v24  ;;  %v4637_v9 = vadd.f32 %v6983_v48, %v6981_v28  ;;  %v7300_v28 = vld [vmem:[#allocation18_spill] sm:$0xff] }
 0x9e6   : > { %7292 = vst [vmem:[#allocation11_spill] sm:$0xff] %v6985_v56  ;;  %v6991_v42 = vpop.eup %5298  ;;  %v4366_v15 = vpop.xlane.xlu0 %4365 }
 0x9e7   : > { %7295 = vst [vmem:[#allocation12_spill] sm:$0xff] %v6991_v42  ;;  %v4541_v51 = vmul.f32 1.442695, %v4437_v50  ;;  %v4543_v2 = vmul.f32 1.442695, %v4438_v21  ;;  %v4439_v40 = vsub.f32 %v7296_v22, %v4366_v15  ;;  %v4440_v26 = vsub.f32 %v7297_v45, %v4366_v15  ;;  %4638 = vadd.xlane.f32.xlu1 %v4637_v9  ;;  %v7298_v22 = vld [vmem:[#allocation16_spill] sm:$0xff] }
 0x9e8   : > { %v4640_v52 = vadd.f32 %v6991_v42, %v6985_v56  ;;  %v7299_v9 = vld [vmem:[#allocation17_spill] sm:$0xff]  ;;  %v7301_v56 = vld [vmem:[#allocation19_spill] sm:$0xff] }
 0x9e9   : > { %5308 = vpow2.f32 %v4541_v51  ;;  %v4545_v54 = vmul.f32 1.442695, %v4439_v40  ;;  %v4547_v46 = vmul.f32 1.442695, %v4440_v26 }
 0x9ea   : > { %5310 = vpow2.f32 %v4543_v2  ;;  %4641 = vadd.xlane.f32.xlu0 %v4640_v52 }
 0x9eb   : > { %v6997_v24 = vpop.eup %5300  ;;  %5312 = vpow2.f32 %v4545_v54 }
 0x9ec   : > { %v6999_v30 = vpop.eup %5302  ;;  %5314 = vpow2.f32 %v4547_v46  ;;  %v4369_v50 = vpop.xlane.xlu1 %4368 }
 0x9ed   : > { %v7001_v21 = vpop.eup %5304  ;;  %v4441_v45 = vsub.f32 %v7298_v22, %v4369_v50  ;;  %v4442_v15 = vsub.f32 %v7299_v9, %v4369_v50  ;;  %v4643_v51 = vadd.f32 %v6999_v30, %v6997_v24 }
 0x9ee   : > { %v7007_v40 = vpop.eup %5306  ;;  %v4372_v26 = vpop.xlane.xlu0 %4371 }
 0x9ef   : > { %v4549_v2 = vmul.f32 1.442695, %v4441_v45  ;;  %v4551_v52 = vmul.f32 1.442695, %v4442_v15  ;;  %v4443_v54 = vsub.f32 %v7300_v28, %v4372_v26  ;;  %v4444_v42 = vsub.f32 %v7301_v56, %v4372_v26  ;;  %4644 = vadd.xlane.f32.xlu1 %v4643_v51 }
 0x9f0   : > { %v4646_v46 = vadd.f32 %v7007_v40, %v7001_v21 }
 0x9f1   : > { %5316 = vpow2.f32 %v4549_v2  ;;  %v4553_v22 = vmul.f32 1.442695, %v4443_v54  ;;  %v4555_v48 = vmul.f32 1.442695, %v4444_v42 }
 0x9f2   : > { %5318 = vpow2.f32 %v4551_v52  ;;  %4647 = vadd.xlane.f32.xlu0 %v4646_v46 }
 0x9f3   : > { %v7013_v50 = vpop.eup %5308  ;;  %5320 = vpow2.f32 %v4553_v22 }
 0x9f4   : > { %7302 = vst [vmem:[#allocation13_spill] sm:$0xff] %v7013_v50  ;;  %v7015_v9 = vpop.eup %5310  ;;  %5322 = vpow2.f32 %v4555_v48 }
 0x9f5   : > { %v7017_v45 = vpop.eup %5312  ;;  %v4649_v28 = vadd.f32 %v7015_v9, %v7013_v50 }
 0x9f6   : > { %7303 = vst [vmem:[#allocation14_spill] sm:$0xff] %v7017_v45  ;;  %v7021_v56 = vpop.eup %5314 }
 0x9f7   : > { %7304 = vst [vmem:[#allocation15_spill] sm:$0xff] %v7021_v56  ;;  %4650 = vadd.xlane.f32.xlu1 %v4649_v28  ;;  %v4652_v15 = vadd.f32 %v7021_v56, %v7017_v45 }
 0x9f9   : > { %4653 = vadd.xlane.f32.xlu0 %v4652_v15 }
 0x9fb   : > { %v7025_v42 = vpop.eup %5316 }
 0x9fc   : > { %7305 = vst [vmem:[#allocation16_spill] sm:$0xff] %v7025_v42  ;;  %v7027_v51 = vpop.eup %5318 }
 0x9fd   : > { %7306 = vst [vmem:[#allocation17_spill] sm:$0xff] %v7027_v51  ;;  %v7029_v26 = vpop.eup %5320  ;;  %v4655_v48 = vadd.f32 %v7027_v51, %v7025_v42 }
 0x9fe   : > { %7307 = vst [vmem:[#allocation18_spill] sm:$0xff] %v7029_v26  ;;  %v7033_v2 = vpop.eup %5322 }
 0x9ff   : > { %7308 = vst [vmem:[#allocation19_spill] sm:$0xff] %v7033_v2  ;;  %4656 = vadd.xlane.f32.xlu1 %v4655_v48  ;;  %v4658_v52 = vadd.f32 %v7033_v2, %v7029_v26 }
 0xa01   : > { %4659 = vadd.xlane.f32.xlu0 %v4658_v52 }
 0xa34   : > { %v4591_v54 = vpop.xlane.xlu1 %4590 }
 0xa35   : > { %5324 = vrcp.f32 %v4591_v54 }
 0xa37   : > { %v4594_v46 = vpop.xlane.xlu0 %4593 }
 0xa38   : > { %5326 = vrcp.f32 %v4594_v46  ;;  %v4375_v22 = vpop.xlane.xlu1 %4374 }
 0xa39   : > { %v4445_v28 = vsub.f32 %v6766_v4, %v4375_v22  ;;  %v4446_v15 = vsub.f32 %v6768_v3, %v4375_v22 }
 0xa3b   : > { %v4557_v50 = vmul.f32 1.442695, %v4445_v28  ;;  %v4559_v45 = vmul.f32 1.442695, %v4446_v15  ;;  %v4378_v56 = vpop.xlane.xlu0 %4377 }
 0xa3c   : > { %v4447_v42 = vsub.f32 %v6772_v36, %v4378_v56  ;;  %v4448_v48 = vsub.f32 %v6774_v47, %v4378_v56  ;;  %v4597_v51 = vpop.xlane.xlu1 %4596 }
 0xa3d   : > { %5328 = vpow2.f32 %v4557_v50 }
 0xa3e   : > { %5330 = vpow2.f32 %v4559_v45  ;;  %v4561_v52 = vmul.f32 1.442695, %v4447_v42  ;;  %v4563_v26 = vmul.f32 1.442695, %v4448_v48 }
 0xa3f   : > { %v5325_v54 = vpop.eup %5324  ;;  %5332 = vrcp.f32 %v4597_v51 }
 0xa40   : > { %5334 = vpow2.f32 %v4561_v52  ;;  %v4600_v46 = vpop.xlane.xlu0 %4599  ;;  %v4381_v2 = vpop.xlane.xlu1 %4380  ;;  %v4718_v36 = vmul.f32 %v5325_v54, %v6831_v43  ;;  %v4717_v28 = vmul.f32 %v5325_v54, %v6829_v1 }
 0xa41   : > { %5336 = vpow2.f32 %v4563_v26  ;;  %v4449_v4 = vsub.f32 %v6778_v0, %v4381_v2  ;;  %v4450_v3 = vsub.f32 %v6780_v37, %v4381_v2 }
 0xa42   : > { %v5327_v22 = vpop.eup %5326  ;;  %5338 = vrcp.f32 %v4600_v46 }
 0xa43   : > { %v4565_v47 = vmul.f32 1.442695, %v4449_v4  ;;  %v4567_v56 = vmul.f32 1.442695, %v4450_v3  ;;  %v4720_v50 = vmul.f32 %v5327_v22, %v6839_v34  ;;  %v4719_v45 = vmul.f32 %v5327_v22, %v6833_v33 }
 0xa44   : > { %v4603_v42 = vpop.xlane.xlu1 %4602  ;;  %v4384_v51 = vpop.xlane.xlu0 %4383 }
 0xa45   : > { %5340 = vpow2.f32 %v4565_v47  ;;  %v4451_v26 = vsub.f32 %v6784_v63, %v4384_v51  ;;  %v4452_v0 = vsub.f32 %v6786_v7, %v4384_v51  ;;  %v4784_v37 = vpack.c.bf16 %v4720_v50, %v4718_v36 }
 0xa46   : > { %5342 = vpow2.f32 %v4567_v56  ;;  %v4783_v2 = vpack.c.bf16 %v4719_v45, %v4717_v28 }
 0xa47   : > { %v7049_v15 = vpop.eup %5328  ;;  %5344 = vrcp.f32 %v4603_v42  ;;  %v4569_v43 = vmul.f32 1.442695, %v4451_v26  ;;  %v4571_v48 = vmul.f32 1.442695, %v4452_v0  ;;  %4815 = vmatprep.subr.bf16.mxu1 %v4784_v37 }
 0xa48   : > { %v7051_v34 = vpop.eup %5330  ;;  %4816 = vmatpush1.bf16.xpose.msra.mxu1 %v4783_v2  ;;  %v4606_v33 = vpop.xlane.xlu0 %4605 }
 0xa49   : > { %v4387_v52 = vpop.xlane.xlu1 %4386  ;;  %v5333_v1 = vpop.eup %5332  ;;  %5346 = vpow2.f32 %v4569_v43  ;;  %v4661_v54 = vadd.f32 %v7051_v34, %v7049_v15 }
 0xa4a   : > { %v4453_v63 = vsub.f32 %v6790_v62, %v4387_v52  ;;  %v4454_v7 = vsub.f32 %v6792_v29, %v4387_v52  ;;  %v7057_v46 = vpop.eup %5334  ;;  %5348 = vpow2.f32 %v4571_v48  ;;  %v4722_v29 = vmul.f32 %v5333_v1, %v6850_v20 }
 0xa4b   : > { %v7059_v4 = vpop.eup %5336  ;;  %5350 = vrcp.f32 %v4606_v33  ;;  %4662 = vadd.xlane.f32.xlu1 %v4661_v54  ;;  %v4721_v51 = vmul.f32 %v5333_v1, %v6845_v35 }
 0xa4c   : > { %v4573_v3 = vmul.f32 1.442695, %v4453_v63  ;;  %v4575_v22 = vmul.f32 1.442695, %v4454_v7  ;;  %v5339_v36 = vpop.eup %5338  ;;  %v4390_v56 = vpop.xlane.xlu0 %4389  ;;  %v4664_v62 = vadd.f32 %v7059_v4, %v7057_v46 }
 0xa4d   : > { %v4609_v47 = vpop.xlane.xlu1 %4608  ;;  %v4455_v50 = vsub.f32 %v6796_v6, %v4390_v56  ;;  %v4456_v45 = vsub.f32 %v6798_v55, %v4390_v56  ;;  %v4724_v42 = vmul.f32 %v5339_v36, %v6863_v17  ;;  %v4723_v28 = vmul.f32 %v5339_v36, %v6859_v41 }
 0xa4e   : > { %5352 = vpow2.f32 %v4573_v3  ;;  %4665 = vadd.xlane.f32.xlu0 %v4664_v62 }
 0xa4f   : > { %5354 = vpow2.f32 %v4575_v22  ;;  %v7069_v26 = vpop.eup %5340  ;;  %v4577_v0 = vmul.f32 1.442695, %v4455_v50  ;;  %v4579_v37 = vmul.f32 1.442695, %v4456_v45  ;;  %v4786_v2 = vpack.c.bf16 %v4724_v42, %v4722_v29 }
 0xa50   : > { %v7071_v43 = vpop.eup %5342  ;;  %5356 = vrcp.f32 %v4609_v47  ;;  %v4612_v20 = vpop.xlane.xlu0 %4611  ;;  %v4785_v48 = vpack.c.bf16 %v4723_v28, %v4721_v51 }
 0xa51   : > { %v4393_v6 = vpop.xlane.xlu1 %4392  ;;  %v5345_v55 = vpop.eup %5344  ;;  %5358 = vpow2.f32 %v4577_v0  ;;  %4817 = vmatprep.subr.bf16.mxu1 %v4786_v2  ;;  %v4667_v41 = vadd.f32 %v7071_v43, %v7069_v26 }
 0xa52   : > { %v4457_v17 = vsub.f32 %v6802_v5, %v4393_v6  ;;  %v4458_v35 = vsub.f32 %v6804_v44, %v4393_v6  ;;  %5360 = vpow2.f32 %v4579_v37  ;;  %4818 = vmatpush1.bf16.xpose.msra.mxu1 %v4785_v48  ;;  %v4726_v54 = vmul.f32 %v5345_v55, %v6872_v11 }
 0xa53   : > { %v7077_v33 = vpop.eup %5346  ;;  %5362 = vrcp.f32 %v4612_v20  ;;  %4668 = vadd.xlane.f32.xlu1 %v4667_v41  ;;  %v4725_v56 = vmul.f32 %v5345_v55, %v6867_v32 }
 0xa54   : > { %v4581_v52 = vmul.f32 1.442695, %v4457_v17  ;;  %v4583_v1 = vmul.f32 1.442695, %v4458_v35  ;;  %v7079_v63 = vpop.eup %5348  ;;  %v4396_v7 = vpop.xlane.xlu0 %4395 }
 0xa55   : > { %v5351_v3 = vpop.eup %5350  ;;  %v4615_v5 = vpop.xlane.xlu1 %4614  ;;  %v4459_v44 = vsub.f32 %v6808_v10, %v4396_v7  ;;  %v4460_v22 = vsub.f32 %v6810_v13, %v4396_v7  ;;  %v4670_v36 = vadd.f32 %v7079_v63, %v7077_v33 }
 0xa56   : > { %5364 = vpow2.f32 %v4581_v52  ;;  %v4728_v47 = vmul.f32 %v5351_v3, %v6880_v61  ;;  %v4727_v62 = vmul.f32 %v5351_v3, %v6874_v58 }
 0xa57   : > { %5366 = vpow2.f32 %v4583_v1  ;;  %v4585_v11 = vmul.f32 1.442695, %v4459_v44  ;;  %v4587_v50 = vmul.f32 1.442695, %v4460_v22  ;;  %4671 = vadd.xlane.f32.xlu0 %v4670_v36 }
 0xa58   : > { %v7089_v29 = vpop.eup %5352  ;;  %5368 = vrcp.f32 %v4615_v5  ;;  %v4788_v10 = vpack.c.bf16 %v4728_v47, %v4726_v54  ;;  %v4618_v13 = vpop.xlane.xlu0 %4617  ;;  %v4787_v42 = vpack.c.bf16 %v4727_v62, %v4725_v56 }
 0xa59   : > { %v7091_v45 = vpop.eup %5354  ;;  %5370 = vpow2.f32 %v4585_v11 }
 0xa5a   : > { %v4673_v51 = vadd.f32 %v7091_v45, %v7089_v29  ;;  %v5357_v61 = vpop.eup %5356  ;;  %5372 = vpow2.f32 %v4587_v50  ;;  %4819 = vmatprep.subr.bf16.mxu1 %v4788_v10 }
 0xa5b   : > { %v7095_v32 = vpop.eup %5358  ;;  %5374 = vrcp.f32 %v4618_v13  ;;  %4820 = vmatpush1.bf16.xpose.msra.mxu1 %v4787_v42  ;;  %v4730_v2 = vmul.f32 %v5357_v61, %v6894_v14  ;;  %v4729_v6 = vmul.f32 %v5357_v61, %v6889_v57  ;;  %v3865_v61 = vld [vmem:[%s7214_s13 + $0x10] sm:$0xff] }
 0xa5c   : > { %4674 = vadd.xlane.f32.xlu1 %v4673_v51  ;;  %v7097_v58 = vpop.eup %5360  ;;  %v4621_v28 = vpop.xlane.xlu1 %4620 }
 0xa5d   : > { %v5363_v0 = vpop.eup %5362  ;;  %v4676_v37 = vadd.f32 %v7097_v58, %v7095_v32  ;;  %5376 = vrcp.f32 %v4621_v28  ;;  %v7128_v28 = vpop.f32.mrb[20].mxu0 }
 0xa5e   : > { %v4732_v20 = vmul.f32 %v5363_v0, %v6902_v12  ;;  %v4731_v48 = vmul.f32 %v5363_v0, %v6896_v8 }
 0xa5f   : > { %4677 = vadd.xlane.f32.xlu0 %v4676_v37  ;;  %v4624_v17 = vpop.xlane.xlu0 %4623 }
 0xa60   : > { %v7105_v55 = vpop.eup %5364  ;;  %5378 = vrcp.f32 %v4624_v17  ;;  %v4790_v41 = vpack.c.bf16 %v4732_v20, %v4730_v2  ;;  %v4789_v52 = vpack.c.bf16 %v4731_v48, %v4729_v6  ;;  %v3841_v2 = vld [vmem:[%s7212_s11] sm:$0xff] }
 0xa61   : > { %v7107_v35 = vpop.eup %5366 }
 0xa62   : > { %v4679_v1 = vadd.f32 %v7107_v35, %v7105_v55  ;;  %v5369_v14 = vpop.eup %5368  ;;  %4821 = vmatprep.subr.bf16.mxu1 %v4790_v41 }
 0xa63   : > { %v7111_v7 = vpop.eup %5370  ;;  %4822 = vmatpush1.bf16.xpose.msra.mxu1 %v4789_v52  ;;  %v4734_v3 = vmul.f32 %v5369_v14, %v6916_v39  ;;  %v4733_v44 = vmul.f32 %v5369_v14, %v6911_v31  ;;  %v3866_v52 = vld [vmem:[%s7214_s13 + $0x18] sm:$0xff] }
 0xa64   : > { %4680 = vadd.xlane.f32.xlu1 %v4679_v1  ;;  %v7113_v57 = vpop.eup %5372  ;;  %v4627_v8 = vpop.xlane.xlu1 %4626  ;;  %v7309_v1 = vld [vmem:[#allocation8_spill] sm:$0xff] }
 0xa65   : > { %v5375_v12 = vpop.eup %5374  ;;  %v4682_v54 = vadd.f32 %v7113_v57, %v7111_v7  ;;  %5380 = vrcp.f32 %v4627_v8 }
 0xa66   : > { %v4736_v5 = vmul.f32 %v5375_v12, %v6924_v60  ;;  %v4735_v22 = vmul.f32 %v5375_v12, %v6918_v23 }
 0xa67   : > { %4683 = vadd.xlane.f32.xlu0 %v4682_v54  ;;  %v4630_v36 = vpop.xlane.xlu0 %4629  ;;  %v5377_v47 = vpop.eup %5376 }
 0xa68   : > { %5382 = vrcp.f32 %v4630_v36  ;;  %v4792_v56 = vpack.c.bf16 %v4736_v5, %v4734_v3  ;;  %v4791_v62 = vpack.c.bf16 %v4735_v22, %v4733_v44  ;;  %v4738_v50 = vmul.f32 %v5377_v47, %v6935_v27  ;;  %v7310_v3 = vld [vmem:[#allocation20_spill] sm:$0xff]  ;;  %v7311_v22 = vld [vmem:[#allocation7_spill] sm:$0xff] }
 0xa69   : > { %v4737_v23 = vmul.f32 %v5377_v47, %v6933_v49 }
 0xa6a   : > { %v5379_v11 = vpop.eup %5378  ;;  %4823 = vmatprep.subr.bf16.mxu1 %v4792_v56 }
 0xa6b   : > { %4824 = vmatpush1.bf16.xpose.msra.mxu1 %v4791_v62  ;;  %v4740_v39 = vmul.f32 %v5379_v11, %v6943_v38  ;;  %v4739_v60 = vmul.f32 %v5379_v11, %v6937_v18  ;;  %v7130_v38 = vpop.f32.mrb[21].mxu0  ;;  %v7312_v62 = vld [vmem:[#allocation10_spill] sm:$0xff] }
 0xa6c   : > { %v4633_v10 = vpop.xlane.xlu1 %4632  ;;  %v7147_v8 = vpop.f32.mrb[22].mxu0 }
 0xa6d   : > { %v4794_v13 = vpack.c.bf16 %v4740_v39, %v4738_v50  ;;  %5384 = vrcp.f32 %v4633_v10  ;;  %v4793_v51 = vpack.c.bf16 %v4739_v60, %v4737_v23  ;;  %v7149_v12 = vpop.f32.mrb[23].mxu0  ;;  %v7313_v50 = vld [vmem:[#allocation12_spill] sm:$0xff]  ;;  %v7314_v60 = vld [vmem:[#allocation11_spill] sm:$0xff] }
 0xa6f   : > { %4825 = vmatprep.subr.bf16.mxu1 %v4794_v13  ;;  %v4636_v31 = vpop.xlane.xlu0 %4635  ;;  %v5381_v42 = vpop.eup %5380 }
 0xa70   : > { %5386 = vrcp.f32 %v4636_v31  ;;  %v4742_v18 = vmul.f32 %v5381_v42, %v6951_v19  ;;  %v4741_v48 = vmul.f32 %v5381_v42, %v6949_v25  ;;  %v7315_v42 = vld [vmem:[#allocation9_spill] sm:$0xff] }
 0xa72   : > { %v5383_v27 = vpop.eup %5382 }
 0xa73   : > { %4826 = vmatpush1.bf16.xpose.msra.mxu1 %v4793_v51  ;;  %v4744_v0 = vmul.f32 %v5383_v27, %v6959_v16  ;;  %v4743_v20 = vmul.f32 %v5383_v27, %v6953_v59  ;;  %v3842_v16 = vld [vmem:[%s7212_s11 + $0x8] sm:$0xff] }
 0xa74   : > { %v4639_v37 = vpop.xlane.xlu1 %4638 }
 0xa75   : > { %3879 = vperm.xlu1 %5227, %v3865_v61   ;;  %v4796_v49 = vpack.c.bf16 %v4744_v0, %v4742_v18  ;;  %5388 = vrcp.f32 %v4639_v37  ;;  %v4795_v19 = vpack.c.bf16 %v4743_v20, %v4741_v48 }
 0xa77   : > { %4827 = vmatprep.subr.bf16.mxu1 %v4796_v49  ;;  %v4642_v6 = vpop.xlane.xlu0 %4641  ;;  %v5385_v17 = vpop.eup %5384 }
 0xa78   : > { %5390 = vrcp.f32 %v4642_v6  ;;  %v4746_v59 = vmul.f32 %v5385_v17, %v6967_v53  ;;  %v4745_v36 = vmul.f32 %v5385_v17, %v7311_v22  ;;  %v7320_v22 = vld [vmem:[#allocation19_spill] sm:$0xff] }
 0xa79   : > { %3845 = vperm.xlu1 %5227, %v3841_v2  }
 0xa7a   : > { %v5387_v41 = vpop.eup %5386 }
 0xa7b   : > { %4828 = vmatpush1.bf16.xpose.msra.mxu1 %v4795_v19  ;;  %v4748_v14 = vmul.f32 %v5387_v41, %v7309_v1  ;;  %v4747_v5 = vmul.f32 %v5387_v41, %v7310_v3 }
 0xa7c   : > { %v4645_v25 = vpop.xlane.xlu1 %4644 }
 0xa7d   : > { %3850 = vperm.xlu1 %5227, %v3842_v16   ;;  %3884 = vperm.xlu0 %5226, %v3866_v52   ;;  %v4798_v54 = vpack.c.bf16 %v4748_v14, %v4746_v59  ;;  %5392 = vrcp.f32 %v4645_v25  ;;  %v4797_v53 = vpack.c.bf16 %v4747_v5, %v4745_v36  ;;  %v7316_v52 = vld [vmem:[#allocation15_spill] sm:$0xff]  ;;  %v7318_v25 = vld [vmem:[#allocation13_spill] sm:$0xff] }
 0xa7e   : > { %v7319_v5 = vld [vmem:[#allocation17_spill] sm:$0xff] }
 0xa7f   : > { %4829 = vmatprep.subr.bf16.mxu1 %v4798_v54  ;;  %v4648_v44 = vpop.xlane.xlu0 %4647  ;;  %v5389_v47 = vpop.eup %5388 }
 0xa80   : > { %5394 = vrcp.f32 %v4648_v44  ;;  %v4750_v11 = vmul.f32 %v5389_v47, %v7312_v62  ;;  %v4749_v51 = vmul.f32 %v5389_v47, %v7315_v42  ;;  %v7321_v47 = vld [vmem:[#allocation18_spill] sm:$0xff] }
 0xa82   : > { %v5391_v56 = vpop.eup %5390 }
 0xa83   : > { %4830 = vmatpush1.bf16.xpose.msra.mxu1 %v4797_v53  ;;  %v4752_v39 = vmul.f32 %v5391_v56, %v7313_v50  ;;  %v4751_v31 = vmul.f32 %v5391_v56, %v7314_v60  ;;  %v7322_v53 = vld [vmem:[#allocation16_spill] sm:$0xff] }
 0xa84   : > { %v4651_v10 = vpop.xlane.xlu1 %4650 }
 0xa85   : > { %5396 = vrcp.f32 %v4651_v10  ;;  %v4800_v13 = vpack.c.bf16 %v4752_v39, %v4750_v11  ;;  %v4799_v27 = vpack.c.bf16 %v4751_v31, %v4749_v51 }
 0xa86   : > { %v4654_v23 = vpop.xlane.xlu0 %4653 }
 0xa87   : > { %4831 = vmatprep.subr.bf16.mxu1 %v4800_v13  ;;  %5398 = vrcp.f32 %v4654_v23  ;;  %v5393_v61 = vpop.eup %5392 }
 0xa88   : > { %v4754_v0 = vmul.f32 %v5393_v61, %v6999_v30  ;;  %v4753_v17 = vmul.f32 %v5393_v61, %v6997_v24 }
 0xa8a   : > { %v5395_v18 = vpop.eup %5394 }
 0xa8b   : > { %4832 = vmatpush1.bf16.xpose.msra.mxu1 %v4799_v27  ;;  %v4756_v37 = vmul.f32 %v5395_v18, %v7007_v40  ;;  %v4755_v20 = vmul.f32 %v5395_v18, %v7001_v21  ;;  %v7317_v40 = vld [vmem:[#allocation14_spill] sm:$0xff] }
 0xa8c   : > { %v4657_v49 = vpop.xlane.xlu1 %4656 }
 0xa8d   : > { %5400 = vrcp.f32 %v4657_v49  ;;  %v4802_v2 = vpack.c.bf16 %v4756_v37, %v4754_v0  ;;  %v4801_v16 = vpack.c.bf16 %v4755_v20, %v4753_v17 }
 0xa8e   : > { %v4660_v6 = vpop.xlane.xlu0 %4659 }
 0xa8f   : > { %v5397_v48 = vpop.eup %5396  ;;  %4833 = vmatprep.subr.bf16.mxu1 %v4802_v2  ;;  %5402 = vrcp.f32 %v4660_v6 }
 0xa90   : > { %v4758_v41 = vmul.f32 %v5397_v48, %v7015_v9  ;;  %v4757_v21 = vmul.f32 %v5397_v48, %v7318_v25 }
 0xa91   : > { %v5399_v19 = vpop.eup %5398 }
 0xa92   : > { %v4760_v59 = vmul.f32 %v5399_v19, %v7316_v52  ;;  %v4759_v1 = vmul.f32 %v5399_v19, %v7317_v40 }
 0xa93   : > { %4834 = vmatpush1.bf16.xpose.msra.mxu1 %v4801_v16 }
 0xa94   : > { %v4804_v30 = vpack.c.bf16 %v4760_v59, %v4758_v41  ;;  %v4803_v3 = vpack.c.bf16 %v4759_v1, %v4757_v21 }
 0xa96   : > { %4835 = vmatprep.subr.bf16.mxu1 %v4804_v30 }
 0xa97   : > { %v5401_v14 = vpop.eup %5400 }
 0xa98   : > { %v4762_v44 = vmul.f32 %v5401_v14, %v7319_v5  ;;  %v4761_v56 = vmul.f32 %v5401_v14, %v7322_v53  ;;  %v7324_v53 = vld [vmem:[#allocation4_spill] sm:$0xff] }
 0xa99   : > { %v5403_v54 = vpop.eup %5402 }
 0xa9a   : > { %v4764_v24 = vmul.f32 %v5403_v54, %v7320_v22  ;;  %v4763_v9 = vmul.f32 %v5403_v54, %v7321_v47 }
 0xa9b   : > { %4836 = vmatpush1.bf16.xpose.msra.mxu1 %v4803_v3 }
 0xa9c   : > { %v4806_v36 = vpack.c.bf16 %v4764_v24, %v4762_v44  ;;  %v4805_v62 = vpack.c.bf16 %v4763_v9, %v4761_v56 }
 0xa9e   : > { %4837 = vmatprep.subr.bf16.mxu1 %v4806_v36 }
 0xaa3   : > { %4838 = vmatpush1.bf16.xpose.msra.mxu1 %v4805_v62  ;;  %v4865_v62 = vstv %s4864_s30 }
 0xad8   : > { %v4663_v11 = vpop.xlane.xlu1 %4662 }
 0xad9   : > { %5404 = vrcp.f32 %v4663_v11  ;;  %v7325_v11 = vld [vmem:[#allocation5_spill] sm:$0xff] }
 0xadb   : > { %v4666_v50 = vpop.xlane.xlu0 %4665 }
 0xadc   : > { %5406 = vrcp.f32 %v4666_v50 }
 0xae0   : > { %v4669_v39 = vpop.xlane.xlu1 %4668 }
 0xae1   : > { %5408 = vrcp.f32 %v4669_v39  ;;  %v7326_v39 = vld [vmem:[#allocation6_spill] sm:$0xff] }
 0xae3   : > { %v5405_v10 = vpop.eup %5404 }
 0xae4   : > { %v4672_v13 = vpop.xlane.xlu0 %4671  ;;  %v4766_v31 = vmul.f32 %v5405_v10, %v7051_v34  ;;  %v4765_v42 = vmul.f32 %v5405_v10, %v7049_v15 }
 0xae5   : > { %5410 = vrcp.f32 %v4672_v13 }
 0xae6   : > { %v5407_v60 = vpop.eup %5406 }
 0xae7   : > { %v4768_v23 = vmul.f32 %v5407_v60, %v7059_v4  ;;  %v4767_v51 = vmul.f32 %v5407_v60, %v7057_v46 }
 0xae9   : > { %v4675_v61 = vpop.xlane.xlu1 %4674  ;;  %v4808_v27 = vpack.c.bf16 %v4768_v23, %v4766_v31  ;;  %v4807_v18 = vpack.c.bf16 %v4767_v51, %v4765_v42 }
 0xaea   : > { %5412 = vrcp.f32 %v4675_v61 }
 0xaeb   : > { %4839 = vmatprep.subr.bf16.mxu1 %v4808_v27  ;;  %v5409_v37 = vpop.eup %5408 }
 0xaec   : > { %4840 = vmatpush1.bf16.xpose.msra.mxu1 %v4807_v18  ;;  %v4678_v0 = vpop.xlane.xlu0 %4677  ;;  %v4770_v20 = vmul.f32 %v5409_v37, %v7071_v43  ;;  %v4769_v4 = vmul.f32 %v5409_v37, %v7069_v26 }
 0xaed   : > { %5414 = vrcp.f32 %v4678_v0 }
 0xaef   : > { %v5411_v49 = vpop.eup %5410 }
 0xaf0   : > { %v4772_v34 = vmul.f32 %v5411_v49, %v7079_v63  ;;  %v4771_v15 = vmul.f32 %v5411_v49, %v7077_v33 }
 0xaf1   : > { %v4681_v2 = vpop.xlane.xlu1 %4680 }
 0xaf2   : > { %5416 = vrcp.f32 %v4681_v2  ;;  %v4810_v46 = vpack.c.bf16 %v4772_v34, %v4770_v20  ;;  %v4809_v6 = vpack.c.bf16 %v4771_v15, %v4769_v4 }
 0xaf4   : > { %4841 = vmatprep.subr.bf16.mxu1 %v4810_v46  ;;  %v4684_v48 = vpop.xlane.xlu0 %4683  ;;  %v5413_v17 = vpop.eup %5412 }
 0xaf5   : > { %5418 = vrcp.f32 %v4684_v48  ;;  %4842 = vmatpush1.bf16.xpose.msra.mxu1 %v4809_v6  ;;  %v3880_v19 = vpop.permute.xlu1 %3879  ;;  %v4774_v41 = vmul.f32 %v5413_v17, %v7091_v45  ;;  %v4773_v63 = vmul.f32 %v5413_v17, %v7089_v29 }
 0xaf6   : > { %v3938_v33 = vadd.f32 %v7128_v28, %v3880_v19  ;;  %v3940_v52 = vadd.f32 %v7130_v38, %v3880_v19 }
 0xaf7   : > { %v5415_v16 = vpop.eup %5414 }
 0xaf8   : > { %v4776_v43 = vmul.f32 %v5415_v16, %v7097_v58  ;;  %v4775_v26 = vmul.f32 %v5415_v16, %v7095_v32  ;;  %v3958_v14 = vmul.f32 0.25, %v3938_v33  ;;  %v3959_v25 = vmul.f32 0.25, %v3940_v52 }
 0xaf9   : > { %vm3950_vm0 = vcmp.ge.f32.partialorder %v3938_v33, 0.0  ;;  %vm3951_vm7 = vcmp.ge.f32.partialorder %v3940_v52, 0.0 }
 0xafa   : > { %v4812_v59 = vpack.c.bf16 %v4776_v43, %v4774_v41  ;;  %v4811_v30 = vpack.c.bf16 %v4775_v26, %v4773_v63  ;;  %v3966_v5 = vsel %vm3950_vm0, %v3938_v33, %v3958_v14 }
 0xafc   : > { %v5417_v40 = vpop.eup %5416  ;;  %4843 = vmatprep.subr.bf16.mxu1 %v4812_v59  ;;  %v3885_v1 = vpop.permute.xlu0 %3884 }
 0xafd   : > { %v3942_v21 = vadd.f32 %v7147_v8, %v3885_v1  ;;  %v3944_v45 = vadd.f32 %v7149_v12, %v3885_v1  ;;  %4844 = vmatpush1.bf16.xpose.msra.mxu1 %v4811_v30  ;;  %v4778_v32 = vmul.f32 %v5417_v40, %v7107_v35  ;;  %v4777_v58 = vmul.f32 %v5417_v40, %v7105_v55  ;;  %v3846_v55 = vpop.permute.xlu1 %3845 }
 0xafe   : > { %v3967_v8 = vsel %vm3951_vm7, %v3940_v52, %v3959_v25  ;;  %v3854_v56 = vadd.f32 %v3846_v55, %v7324_v53 }
 0xaff   : > { %v5419_v29 = vpop.eup %5418  ;;  %vm3952_vm12 = vcmp.ge.f32.partialorder %v3942_v21, 0.0  ;;  %vm3953_vm13 = vcmp.ge.f32.partialorder %v3944_v45, 0.0  ;;  %v3960_v28 = vmul.f32 0.25, %v3942_v21  ;;  %v3961_v38 = vmul.f32 0.25, %v3944_v45 }
 0xb00   : > { %v4780_v54 = vmul.f32 %v5419_v29, %v7113_v57  ;;  %v4779_v3 = vmul.f32 %v5419_v29, %v7111_v7  ;;  %v7323_v57 = vld [vmem:[#allocation3_spill] sm:$0xff]  ;;  %v4859_v7 = vstv %s4858_s16 }
 0xb01   : > { %v3968_v44 = vsel %vm3952_vm12, %v3942_v21, %v3960_v28  ;;  %v3969_v22 = vsel %vm3953_vm13, %v3944_v45, %v3961_v38  ;;  %v3851_v35 = vpop.permute.xlu1 %3850  ;;  %v3853_v9 = vadd.f32 %v3846_v55, %v7323_v57  ;;  %v4861_v42 = vmul.f32 %v4859_v7, %v3854_v56 }
 0xb02   : > { %v4814_v12 = vpack.c.bf16 %v4780_v54, %v4778_v32  ;;  %v4813_v24 = vpack.c.bf16 %v4779_v3, %v4777_v58  ;;  %v4781_v36 = vpack.c.bf16 %v3968_v44, %v3966_v5  ;;  %v4782_v47 = vpack.c.bf16 %v3969_v22, %v3967_v8 }
 0xb03   : > { %v3855_v50 = vadd.f32 %v3851_v35, %v7325_v11  ;;  %v3856_v10 = vadd.f32 %v3851_v35, %v7326_v39  ;;  %v4860_v60 = vmul.f32 %v4859_v7, %v3853_v9 }
 0xb04   : > { %4845 = vmatprep.subr.bf16.mxu1 %v4814_v12  ;;  %4847 = vmatprep.mubr.bf16.mxu1 %v4782_v47 }
 0xb05   : > { %4846 = vmatpush1.bf16.xpose.msra.mxu1 %v4813_v24  ;;  %v4862_v27 = vmul.f32 %v4859_v7, %v3855_v50  ;;  %v4863_v49 = vmul.f32 %v4859_v7, %v3856_v10 }
 0xb0c   : > { %4848 = vmatmul.mubr.bf16.vlgmr.msra.gmra.mrb[104].mxu1 %v4781_v36 }
 0xbdf   : > { %v4849_v13 = vpop.f32.mrb[104].mxu1 }
 0xbe0   : > { %v4866_v31 = vmul.f32 %v4865_v62, %v4849_v13  ;;  %v4851_v23 = vpop.f32.mrb[105].mxu1 }
 0xbe1   : > { %v4867_v51 = vmul.f32 %v4865_v62, %v4851_v23  ;;  %v4853_v61 = vpop.f32.mrb[106].mxu1 }
 0xbe2   : > { %v4870_v18 = vadd.f32 %v4866_v31, %v4860_v60  ;;  %v4868_v0 = vmul.f32 %v4865_v62, %v4853_v61  ;;  %v4855_v37 = vpop.f32.mrb[107].mxu1 }
 0xbe3   : > { %v4871_v2 = vadd.f32 %v4867_v51, %v4861_v42  ;;  %v4869_v20 = vmul.f32 %v4865_v62, %v4855_v37 }
 0xbe4   : > { %4874 = vst [vmem:[%s495_s22] sm:$0xff] %v4870_v18  ;;  %v4872_v34 = vadd.f32 %v4868_v0, %v4862_v27 }
 0xbe5   : > { %4875 = vst [vmem:[%s495_s22 + $0x8] sm:$0xff] %v4871_v2  ;;  %v4873_v4 = vadd.f32 %v4869_v20, %v4863_v49 }
 0xbe6   : > { %4876 = vst [vmem:[%s495_s22 + $0x10] sm:$0xff] %v4872_v34 }
 0xbe7   : > { %4877 = vst [vmem:[%s495_s22 + $0x18] sm:$0xff] %v4873_v4 }
 0xbe8 PF: > { %s26_s20 = sadd.s32 1, %s5428_s20  }
 0xbe9   : > { %p23_p4 = scmp.ge.s32.totalorder %s26_s20, 4  }
 0xbeb   :  { %25 = sbr.rel (!%p23_p4) target bundleno = 2 (0x2), region = 145 }

</bundles_post_ra>
